<compile_context>
chip_gen: v7x
topology: tpu7x:2x2x1
jax: 0.10.0
libtpu: 0.0.40
codegen_flags: <defaults>
</compile_context>

<pallas_src>
import functools
import math

import jax
import jax.numpy as jnp
from jax.experimental import pallas as pl
from jax.experimental.pallas import tpu as pltpu


# ----------------------------------------------------------------------------
# In-kernel helpers
# ----------------------------------------------------------------------------

def _layernorm(z, eps):
    # LayerNorm without learned affine (AdaLN blocks modulate instead).
    mu = jnp.mean(z, axis=-1, keepdims=True)
    var = jnp.mean((z - mu) * (z - mu), axis=-1, keepdims=True)
    return (z - mu) * jax.lax.rsqrt(var + eps)


# ----------------------------------------------------------------------------
# Fused DiT kernel: prologue (layer==0) + per-layer body + epilogue (layer==L-1)
# ----------------------------------------------------------------------------

def _dit_kernel(lat_ref, noi_ref, c1_ref, c2_ref,
                pw_ref, pb_ref, pos_ref,
                tf_ref, tw1_ref, tb1_ref, tw2_ref, tb2_ref, lab_ref,
                wada_ref, bada_ref, wqkv_ref, bqkv_ref, wo_ref, bo_ref,
                w1_ref, b1_ref, w2_ref, b2_ref,
                fwada_ref, fbada_ref, hw_ref, hb_ref,
                out_ref,
                x_sc, csil_sc,
                *, num_heads, eps):
    layer = pl.program_id(0)
    num_layers = pl.num_programs(0)

    B, S, D = x_sc.shape
    BS = B * S
    H = num_heads
    hd = D // H

    # ---------------- prologue: q_sample + patch/pos embed + context -------
    @pl.when(layer == 0)
    def _prologue():
        # GaussianDiffusion.q_sample on the patchified latent.
        noised = c1_ref[...] * lat_ref[...] + c2_ref[...] * noi_ref[...]   # (B,S,P)
        P = noised.shape[-1]
        n2 = noised.reshape(BS, P).astype(jnp.bfloat16)
        emb = jnp.dot(n2, pw_ref[...], preferred_element_type=jnp.float32)
        x_sc[...] = emb.reshape(B, S, D) + pb_ref[...] + pos_ref[...]

        # TimestepEmbeddingLayer MLP (Linear -> SiLU -> Linear) + label emb.
        th = jnp.dot(tf_ref[...].astype(jnp.bfloat16), tw1_ref[...],
                     preferred_element_type=jnp.float32) + tb1_ref[...]
        th = th * jax.nn.sigmoid(th)
        tt = jnp.dot(th.astype(jnp.bfloat16), tw2_ref[...],
                     preferred_element_type=jnp.float32) + tb2_ref[...]
        ctx = tt + lab_ref[...]                                            # (B, D)
        # Hoisted: SiLU(ctx) is what every adaLN modulation consumes.
        csil_sc[...] = (ctx * jax.nn.sigmoid(ctx)).astype(jnp.bfloat16)

    # ---------------- one AdaLN-Zero DiT decoder layer ---------------------
    x = x_sc[...]                                      # (B, S, D) f32, VMEM-resident
    cs = csil_sc[...]                                  # (B, D) bf16

    # adaLN modulation: single lane-dense (B, D) @ (D, 6D) matmul.
    mod = jnp.dot(cs, wada_ref[0], preferred_element_type=jnp.float32) + bada_ref[0]
    shift_msa = mod[:, 0 * D:1 * D][:, None, :]
    scale_msa = mod[:, 1 * D:2 * D][:, None, :]
    gate_msa = mod[:, 2 * D:3 * D][:, None, :]
    shift_mlp = mod[:, 3 * D:4 * D][:, None, :]
    scale_mlp = mod[:, 4 * D:5 * D][:, None, :]
    gate_mlp = mod[:, 5 * D:6 * D][:, None, :]

    # ---- self-attention branch ----
    xm = _layernorm(x, eps) * (1.0 + scale_msa) + shift_msa                # (B,S,D)
    xm2 = xm.reshape(BS, D).astype(jnp.bfloat16)
    # Fused QKV projection: (BS, D) @ (D, 3D).
    qkv = jnp.dot(xm2, wqkv_ref[0], preferred_element_type=jnp.float32) + bqkv_ref[0]

    inv_sqrt_hd = 1.0 / math.sqrt(hd)
    head_outs = []
    for h_i in range(H):                               # static unrolled head loop
        q = (qkv[:, h_i * hd:(h_i + 1) * hd] * inv_sqrt_hd
             ).reshape(B, S, hd).astype(jnp.bfloat16)
        k = qkv[:, D + h_i * hd:D + (h_i + 1) * hd
                ].reshape(B, S, hd).astype(jnp.bfloat16)
        v = qkv[:, 2 * D + h_i * hd:2 * D + (h_i + 1) * hd
                ].reshape(B, S, hd).astype(jnp.bfloat16)
        s = jax.lax.dot_general(q, k, (((2,), (2,)), ((0,), (0,))),
                                preferred_element_type=jnp.float32)        # (B,S,S)
        s = s - jnp.max(s, axis=-1, keepdims=True)                         # fp32 softmax
        p = jnp.exp(s)
        p = p * pl.reciprocal(jnp.sum(p, axis=-1, keepdims=True), approx=True)
        oh = jax.lax.dot_general(p.astype(jnp.bfloat16), v,
                                 (((2,), (1,)), ((0,), (0,))),
                                 preferred_element_type=jnp.float32)       # (B,S,hd)
        head_outs.append(oh.reshape(BS, hd))

    o = jnp.concatenate(head_outs, axis=-1).astype(jnp.bfloat16)           # (BS, D)
    # Single dense output projection: (BS, D) @ (D, D).
    attn = jnp.dot(o, wo_ref[0], preferred_element_type=jnp.float32) + bo_ref[0]
    x = x + gate_msa * attn.reshape(B, S, D)

    # ---- feed-forward branch ----
    xf = _layernorm(x, eps) * (1.0 + scale_mlp) + shift_mlp
    xf2 = xf.reshape(BS, D).astype(jnp.bfloat16)
    h1 = jnp.dot(xf2, w1_ref[0], preferred_element_type=jnp.float32) + b1_ref[0]
    # TODO(synk): torch nn.GELU default is exact erf GELU; erf lowering in Mosaic is
    # not guaranteed, so the tanh approximation is used here.
    h1 = jax.nn.gelu(h1, approximate=True)
    h2 = jnp.dot(h1.astype(jnp.bfloat16), w2_ref[0],
                 preferred_element_type=jnp.float32) + b2_ref[0]
    x = x + gate_mlp * h2.reshape(B, S, D)

    x_sc[...] = x

    # ---------------- epilogue: final AdaLayerNorm + RegressionHead --------
    @pl.when(layer == num_layers - 1)
    def _epilogue():
        fmod = jnp.dot(cs, fwada_ref[...],
                       preferred_element_type=jnp.float32) + fbada_ref[...]   # (B, 2D)
        shift = fmod[:, 0:D][:, None, :]
        scale = fmod[:, D:2 * D][:, None, :]
        xh = _layernorm(x, eps) * (1.0 + scale) + shift
        y = jnp.dot(xh.reshape(BS, D).astype(jnp.bfloat16), hw_ref[...],
                    preferred_element_type=jnp.float32) + hb_ref[...]
        out_ref[...] = y.reshape(B, S, -1)                                 # lane-dense


# ----------------------------------------------------------------------------
# JAX glue: patchify / unpatchify / sinusoid / params
# ----------------------------------------------------------------------------

def patchify(x, ph, pw):
    # (B, C, H, W) -> (B, S, C*ph*pw); per-patch flattening order is (C, ph, pw)
    B, C, H, W = x.shape
    Hp, Wp = H // ph, W // pw
    x = x.reshape(B, C, Hp, ph, Wp, pw)
    x = x.transpose(0, 2, 4, 1, 3, 5)
    return x.reshape(B, Hp * Wp, C * ph * pw)


def unpatchify(y, ph, pw, C, Hp, Wp):
    # (B, S, ph*pw*C) -> (B, C, H, W); head emits (ph, pw, C) per-patch ordering.
    B = y.shape[0]
    y = y.reshape(B, Hp, Wp, ph, pw, C)
    y = y.transpose(0, 5, 1, 3, 2, 4)
    return y.reshape(B, C, Hp * ph, Wp * pw)


def timestep_frequency_embedding(t, dim):
    half = dim // 2
    freqs = jnp.exp(-math.log(10000.0) * jnp.arange(half, dtype=jnp.float32) / half)
    args = t.astype(jnp.float32)[:, None] * freqs[None, :]
    return jnp.concatenate([jnp.cos(args), jnp.sin(args)], axis=-1)


def init_params(key, cfg):
    D = cfg["hidden"]
    F = cfg["filter_size"]
    P = cfg["patch_dim"]
    S = cfg["seq_len"]
    L = cfg["num_layers"]
    std = cfg["initializer_range"]

    def nrm(k, shape, dtype=jnp.bfloat16):
        return (jax.random.normal(k, shape, dtype=jnp.float32) * std).astype(dtype)

    keys = jax.random.split(key, 16)
    head_w = nrm(keys[6], (D, cfg["patch_out"]))
    head_w = jnp.pad(head_w, ((0, 0), (0, cfg["patch_out_pad"] - cfg["patch_out"])))
    params = {
        "patch_w": nrm(keys[0], (P, D)),
        "patch_b": jnp.zeros((1, D), jnp.float32),
        "pos_emb": nrm(keys[1], (S, D), jnp.float32),
        "t_w1": nrm(keys[2], (cfg["freq"], D)),
        "t_b1": jnp.zeros((1, D), jnp.float32),
        "t_w2": nrm(keys[3], (D, D)),
        "t_b2": jnp.zeros((1, D), jnp.float32),
        "label_table": nrm(keys[4], (cfg["num_classes"] + 1, D), jnp.float32),
        "final_wada": nrm(keys[5], (D, 2 * D)),
        "final_bada": jnp.zeros((1, 2 * D), jnp.float32),
        "head_w": head_w,                                  # zero-padded to 128 lanes
        "head_b": jnp.zeros((1, cfg["patch_out_pad"]), jnp.float32),
    }
    # diffusion schedule (linear betas)
    betas = jnp.linspace(cfg["beta_start"], cfg["beta_end"],
                         cfg["num_diffusion_steps"], dtype=jnp.float32)
    params["alphas_cumprod"] = jnp.cumprod(1.0 - betas)

    lk = jax.random.split(keys[7], 7)
    # Per-layer weights stacked along a leading layer axis, fused & lane-dense:
    params["layers"] = {
        "wada": nrm(lk[0], (L, D, 6 * D)),
        "bada": jnp.zeros((L, 1, 6 * D), jnp.float32),
        "wqkv": nrm(lk[1], (L, D, 3 * D)),
        "bqkv": jnp.zeros((L, 1, 3 * D), jnp.float32),
        "wo": nrm(lk[2], (L, D, D)),
        "bo": jnp.zeros((L, 1, D), jnp.float32),
        "w1": nrm(lk[3], (L, D, F)),
        "b1": jnp.zeros((L, 1, F), jnp.float32),
        "w2": nrm(lk[4], (L, F, D)),
        "b2": jnp.zeros((L, 1, D), jnp.float32),
    }
    return params


# ----------------------------------------------------------------------------
# pallas_call wrapper
# ----------------------------------------------------------------------------

_STACKED_ORDER = ("wada", "bada", "wqkv", "bqkv", "wo", "bo", "w1", "b1", "w2", "b2")


def _const_spec(arr):
    nd = arr.ndim
    return pl.BlockSpec(arr.shape, lambda l, _n=nd: (0,) * _n)


def _stacked_spec(arr):
    nd = arr.ndim
    return pl.BlockSpec((1,) + arr.shape[1:],
                        lambda l, _n=nd: (l,) + (0,) * (_n - 1))


def _compiler_params():
    kw = dict(dimension_semantics=("arbitrary",))   # layer axis carries the activation
    try:
        cap = int(pltpu.get_tpu_info().vmem_capacity_bytes)
        # Raise the scoped limit on 128 MiB chips, stay under physical on v7x.
        kw["vmem_limit_bytes"] = max(32 << 20, min(100 << 20, int(cap * 0.8)))
    except Exception:
        pass
    return pltpu.CompilerParams(**kw)


def dit_forward(params, latent, label, diffusion_noise, timestep, cfg):
    # DiT.forward: q_sample -> forward_dit, all fused into one pallas_call.
    B = latent.shape[0]
    S, D = cfg["seq_len"], cfg["hidden"]
    L = cfg["num_layers"]

    acp = params["alphas_cumprod"]
    c1 = jnp.sqrt(acp)[timestep].astype(jnp.float32).reshape(B, 1, 1)
    c2 = jnp.sqrt(1.0 - acp)[timestep].astype(jnp.float32).reshape(B, 1, 1)
    lat_p = patchify(latent, cfg["ph"], cfg["pw"])                # (B, S, P)
    noi_p = patchify(diffusion_noise, cfg["ph"], cfg["pw"])       # (B, S, P)
    t_freq = timestep_frequency_embedding(timestep, cfg["freq"])
    lab = jnp.take(params["label_table"], label, axis=0)          # (B, D)

    const_args = [lat_p, noi_p, c1, c2,
                  params["patch_w"], params["patch_b"], params["pos_emb"],
                  t_freq, params["t_w1"], params["t_b1"],
                  params["t_w2"], params["t_b2"], lab]
    stacked_args = [params["layers"][n] for n in _STACKED_ORDER]
    final_args = [params["final_wada"], params["final_bada"],
                  params["head_w"], params["head_b"]]

    in_specs = ([_const_spec(a) for a in const_args]
                + [_stacked_spec(a) for a in stacked_args]
                + [_const_spec(a) for a in final_args])

    kernel = functools.partial(_dit_kernel,
                               num_heads=cfg["num_heads"], eps=cfg["eps"])
    y = pl.pallas_call(
        kernel,
        out_shape=jax.ShapeDtypeStruct((B, S, cfg["patch_out_pad"]), jnp.float32),
        grid=(L,),
        in_specs=in_specs,
        out_specs=pl.BlockSpec((B, S, cfg["patch_out_pad"]), lambda l: (0, 0, 0)),
        scratch_shapes=[pltpu.VMEM((B, S, D), jnp.float32),       # resident activation
                        pltpu.VMEM((B, D), jnp.bfloat16)],        # SiLU(context)
        compiler_params=_compiler_params(),
    )(*const_args, *stacked_args, *final_args)

    y = y[:, :, :cfg["patch_out"]]                                # drop lane padding
    pred_noise = unpatchify(y, cfg["ph"], cfg["pw"], cfg["latent_channels"],
                            cfg["Hp"], cfg["Wp"])
    pred_var = None
    return pred_noise, pred_var


# ----------------------------------------------------------------------------
# main
# ----------------------------------------------------------------------------

if __name__ == "__main__":
    CFG = dict(
        batch=2,
        latent_channels=4,
        latent_h=16, latent_w=16,
        ph=4, pw=4,
        hidden=256,                   # multiple of 128 -> lane-dense matmuls
        num_heads=2,                  # head_dim = 128 -> lane-aligned head slices
        filter_size=512,              # multiple of 128
        num_layers=2,
        freq=128,                     # frequency_embedding_size
        num_classes=10,
        num_diffusion_steps=50,
        beta_start=1e-4, beta_end=0.02,
        eps=1e-5,
        initializer_range=0.02,
    )
    CFG["Hp"] = CFG["latent_h"] // CFG["ph"]
    CFG["Wp"] = CFG["latent_w"] // CFG["pw"]
    CFG["seq_len"] = CFG["Hp"] * CFG["Wp"]
    CFG["patch_dim"] = CFG["latent_channels"] * CFG["ph"] * CFG["pw"]
    CFG["patch_out"] = CFG["ph"] * CFG["pw"] * CFG["latent_channels"]
    CFG["patch_out_pad"] = ((CFG["patch_out"] + 127) // 128) * 128

    key = jax.random.PRNGKey(0)
    k_param, k_x, k_noise, k_lab, k_t = jax.random.split(key, 5)

    params = init_params(k_param, CFG)

    B = CFG["batch"]
    latent = jax.random.normal(
        k_x, (B, CFG["latent_channels"], CFG["latent_h"], CFG["latent_w"]), jnp.float32)
    diffusion_noise = jax.random.normal(k_noise, latent.shape, jnp.float32)
    label = jax.random.randint(k_lab, (B,), 0, CFG["num_classes"], dtype=jnp.int32)
    timestep = jax.random.randint(k_t, (B,), 0, CFG["num_diffusion_steps"], dtype=jnp.int32)

    fwd = jax.jit(lambda p, x, lab, n, t: dit_forward(p, x, lab, n, t, CFG))
    pred_noise, pred_var = fwd(params, latent, label, diffusion_noise, timestep)
    jax.block_until_ready(pred_noise)

    assert pred_noise.shape == latent.shape
    assert pred_var is None
    print("KERNEL_OK")
</pallas_src>

<mosaic_0001>
module attributes {stable_mosaic.version = 11 : i64} {
  func.func @_dit_kernel(%arg0: i32, %arg1: memref<2x16x64xf32, #tpu.memory_space<vmem>>, %arg2: memref<2x16x64xf32, #tpu.memory_space<vmem>>, %arg3: memref<2x1x1xf32, #tpu.memory_space<vmem>>, %arg4: memref<2x1x1xf32, #tpu.memory_space<vmem>>, %arg5: memref<64x256xbf16, #tpu.memory_space<vmem>>, %arg6: memref<1x256xf32, #tpu.memory_space<vmem>>, %arg7: memref<16x256xf32, #tpu.memory_space<vmem>>, %arg8: memref<2x128xf32, #tpu.memory_space<vmem>>, %arg9: memref<128x256xbf16, #tpu.memory_space<vmem>>, %arg10: memref<1x256xf32, #tpu.memory_space<vmem>>, %arg11: memref<256x256xbf16, #tpu.memory_space<vmem>>, %arg12: memref<1x256xf32, #tpu.memory_space<vmem>>, %arg13: memref<2x256xf32, #tpu.memory_space<vmem>>, %arg14: memref<1x256x1536xbf16, #tpu.memory_space<vmem>>, %arg15: memref<1x1x1536xf32, #tpu.memory_space<vmem>>, %arg16: memref<1x256x768xbf16, #tpu.memory_space<vmem>>, %arg17: memref<1x1x768xf32, #tpu.memory_space<vmem>>, %arg18: memref<1x256x256xbf16, #tpu.memory_space<vmem>>, %arg19: memref<1x1x256xf32, #tpu.memory_space<vmem>>, %arg20: memref<1x256x512xbf16, #tpu.memory_space<vmem>>, %arg21: memref<1x1x512xf32, #tpu.memory_space<vmem>>, %arg22: memref<1x512x256xbf16, #tpu.memory_space<vmem>>, %arg23: memref<1x1x256xf32, #tpu.memory_space<vmem>>, %arg24: memref<256x512xbf16, #tpu.memory_space<vmem>>, %arg25: memref<1x512xf32, #tpu.memory_space<vmem>>, %arg26: memref<256x128xbf16, #tpu.memory_space<vmem>>, %arg27: memref<1x128xf32, #tpu.memory_space<vmem>>, %arg28: memref<2x16x128xf32, #tpu.memory_space<vmem>>, %arg29: memref<2x16x256xf32, #tpu.memory_space<vmem>>, %arg30: memref<2x256xbf16, #tpu.memory_space<vmem>>) attributes {dimension_semantics = [#tpu.dimension_semantics<arbitrary>], iteration_bounds = array<i64: 2>, scalar_prefetch = 0 : i64, scratch_operands = 2 : i64, tpu.core_type = #tpu.core_type<tc>, window_params = [{pipeline_mode = #tpu.pipeline_mode<synchronous>, transform_indices = @transform_0, window_bounds = array<i64: 2, 16, 64>}, {pipeline_mode = #tpu.pipeline_mode<synchronous>, transform_indices = @transform_1, window_bounds = array<i64: 2, 16, 64>}, {pipeline_mode = #tpu.pipeline_mode<synchronous>, transform_indices = @transform_2, window_bounds = array<i64: 2, 1, 1>}, {pipeline_mode = #tpu.pipeline_mode<synchronous>, transform_indices = @transform_3, window_bounds = array<i64: 2, 1, 1>}, {pipeline_mode = #tpu.pipeline_mode<synchronous>, transform_indices = @transform_4, window_bounds = array<i64: 64, 256>}, {pipeline_mode = #tpu.pipeline_mode<synchronous>, transform_indices = @transform_5, window_bounds = array<i64: 1, 256>}, {pipeline_mode = #tpu.pipeline_mode<synchronous>, transform_indices = @transform_6, window_bounds = array<i64: 16, 256>}, {pipeline_mode = #tpu.pipeline_mode<synchronous>, transform_indices = @transform_7, window_bounds = array<i64: 2, 128>}, {pipeline_mode = #tpu.pipeline_mode<synchronous>, transform_indices = @transform_8, window_bounds = array<i64: 128, 256>}, {pipeline_mode = #tpu.pipeline_mode<synchronous>, transform_indices = @transform_9, window_bounds = array<i64: 1, 256>}, {pipeline_mode = #tpu.pipeline_mode<synchronous>, transform_indices = @transform_10, window_bounds = array<i64: 256, 256>}, {pipeline_mode = #tpu.pipeline_mode<synchronous>, transform_indices = @transform_11, window_bounds = array<i64: 1, 256>}, {pipeline_mode = #tpu.pipeline_mode<synchronous>, transform_indices = @transform_12, window_bounds = array<i64: 2, 256>}, {transform_indices = @transform_13, window_bounds = array<i64: 1, 256, 1536>}, {transform_indices = @transform_14, window_bounds = array<i64: 1, 1, 1536>}, {transform_indices = @transform_15, window_bounds = array<i64: 1, 256, 768>}, {transform_indices = @transform_16, window_bounds = array<i64: 1, 1, 768>}, {transform_indices = @transform_17, window_bounds = array<i64: 1, 256, 256>}, {transform_indices = @transform_18, window_bounds = array<i64: 1, 1, 256>}, {transform_indices = @transform_19, window_bounds = array<i64: 1, 256, 512>}, {transform_indices = @transform_20, window_bounds = array<i64: 1, 1, 512>}, {transform_indices = @transform_21, window_bounds = array<i64: 1, 512, 256>}, {transform_indices = @transform_22, window_bounds = array<i64: 1, 1, 256>}, {pipeline_mode = #tpu.pipeline_mode<synchronous>, transform_indices = @transform_23, window_bounds = array<i64: 256, 512>}, {pipeline_mode = #tpu.pipeline_mode<synchronous>, transform_indices = @transform_24, window_bounds = array<i64: 1, 512>}, {pipeline_mode = #tpu.pipeline_mode<synchronous>, transform_indices = @transform_25, window_bounds = array<i64: 256, 128>}, {pipeline_mode = #tpu.pipeline_mode<synchronous>, transform_indices = @transform_26, window_bounds = array<i64: 1, 128>}, {pipeline_mode = #tpu.pipeline_mode<synchronous>, transform_indices = @transform_27, window_bounds = array<i64: 2, 16, 128>}]} {
    %c0_i32 = arith.constant 0 : i32
    %0 = arith.cmpi eq, %arg0, %c0_i32 : i32
    %1 = arith.extui %0 : i1 to i32
    %c0_i32_0 = arith.constant 0 : i32
    %2 = arith.cmpi ne, %1, %c0_i32_0 : i32
    scf.if %2 {
      %c0_69 = arith.constant 0 : index
      %c0_70 = arith.constant 0 : index
      %c0_71 = arith.constant 0 : index
      %186 = vector.load %arg3[%c0_69, %c0_70, %c0_71] : memref<2x1x1xf32, #tpu.memory_space<vmem>>, vector<2x1x1xf32>
      %c0_72 = arith.constant 0 : index
      %c0_73 = arith.constant 0 : index
      %c0_74 = arith.constant 0 : index
      %187 = vector.load %arg1[%c0_72, %c0_73, %c0_74] : memref<2x16x64xf32, #tpu.memory_space<vmem>>, vector<2x16x64xf32>
      %188 = vector.broadcast %186 : vector<2x1x1xf32> to vector<2x16x64xf32>
      %189 = arith.mulf %188, %187 : vector<2x16x64xf32>
      %c0_75 = arith.constant 0 : index
      %c0_76 = arith.constant 0 : index
      %c0_77 = arith.constant 0 : index
      %190 = vector.load %arg4[%c0_75, %c0_76, %c0_77] : memref<2x1x1xf32, #tpu.memory_space<vmem>>, vector<2x1x1xf32>
      %c0_78 = arith.constant 0 : index
      %c0_79 = arith.constant 0 : index
      %c0_80 = arith.constant 0 : index
      %191 = vector.load %arg2[%c0_78, %c0_79, %c0_80] : memref<2x16x64xf32, #tpu.memory_space<vmem>>, vector<2x16x64xf32>
      %192 = vector.broadcast %190 : vector<2x1x1xf32> to vector<2x16x64xf32>
      %193 = arith.mulf %192, %191 : vector<2x16x64xf32>
      %194 = arith.addf %189, %193 : vector<2x16x64xf32>
      %195 = vector.shape_cast %194 : vector<2x16x64xf32> to vector<32x64xf32>
      %196 = arith.truncf %195 : vector<32x64xf32> to vector<32x64xbf16>
      %c0_81 = arith.constant 0 : index
      %c0_82 = arith.constant 0 : index
      %197 = vector.load %arg5[%c0_81, %c0_82] : memref<64x256xbf16, #tpu.memory_space<vmem>>, vector<64x256xbf16>
      %cst_83 = arith.constant dense<0.000000e+00> : vector<32x256xf32>
      %198 = tpu.matmul %196, %197, %cst_83 {dimension_numbers = #tpu.dot_dimension_numbers<[1], [0], [0], [1], [0, 0, 1, 1], [], []>} : vector<32x64xbf16>, vector<64x256xbf16>, vector<32x256xf32> -> vector<32x256xf32>
      %199 = vector.shape_cast %198 : vector<32x256xf32> to vector<2x16x256xf32>
      %c0_84 = arith.constant 0 : index
      %c0_85 = arith.constant 0 : index
      %200 = vector.load %arg6[%c0_84, %c0_85] : memref<1x256xf32, #tpu.memory_space<vmem>>, vector<1x256xf32>
      %201 = vector.shape_cast %200 : vector<1x256xf32> to vector<1x1x256xf32>
      %202 = vector.broadcast %201 : vector<1x1x256xf32> to vector<2x16x256xf32>
      %203 = arith.addf %199, %202 : vector<2x16x256xf32>
      %c0_86 = arith.constant 0 : index
      %c0_87 = arith.constant 0 : index
      %204 = vector.load %arg7[%c0_86, %c0_87] : memref<16x256xf32, #tpu.memory_space<vmem>>, vector<16x256xf32>
      %205 = vector.shape_cast %204 : vector<16x256xf32> to vector<1x16x256xf32>
      %206 = vector.broadcast %205 : vector<1x16x256xf32> to vector<2x16x256xf32>
      %207 = arith.addf %203, %206 : vector<2x16x256xf32>
      %c0_88 = arith.constant 0 : index
      %c0_89 = arith.constant 0 : index
      %c0_90 = arith.constant 0 : index
      %208 = vector.load %arg29[%c0_88, %c0_89, %c0_90] : memref<2x16x256xf32, #tpu.memory_space<vmem>>, vector<2x16x256xf32>
      tpu.vector_store %arg29[%c0_88, %c0_89, %c0_90], %207 {strides = array<i32>} : memref<2x16x256xf32, #tpu.memory_space<vmem>>, vector<2x16x256xf32>,
      %c0_91 = arith.constant 0 : index
      %c0_92 = arith.constant 0 : index
      %209 = vector.load %arg8[%c0_91, %c0_92] : memref<2x128xf32, #tpu.memory_space<vmem>>, vector<2x128xf32>
      %210 = arith.truncf %209 : vector<2x128xf32> to vector<2x128xbf16>
      %c0_93 = arith.constant 0 : index
      %c0_94 = arith.constant 0 : index
      %211 = vector.load %arg9[%c0_93, %c0_94] : memref<128x256xbf16, #tpu.memory_space<vmem>>, vector<128x256xbf16>
      %cst_95 = arith.constant dense<0.000000e+00> : vector<2x256xf32>
      %212 = tpu.matmul %210, %211, %cst_95 {dimension_numbers = #tpu.dot_dimension_numbers<[1], [0], [0], [1], [0, 0, 1, 1], [], []>} : vector<2x128xbf16>, vector<128x256xbf16>, vector<2x256xf32> -> vector<2x256xf32>
      %c0_96 = arith.constant 0 : index
      %c0_97 = arith.constant 0 : index
      %213 = vector.load %arg10[%c0_96, %c0_97] : memref<1x256xf32, #tpu.memory_space<vmem>>, vector<1x256xf32>
      %214 = vector.broadcast %213 : vector<1x256xf32> to vector<2x256xf32>
      %215 = arith.addf %212, %214 : vector<2x256xf32>
      %216 = arith.negf %215 : vector<2x256xf32>
      %217 = math.exp %216 : vector<2x256xf32>
      %cst_98 = arith.constant 1.000000e+00 : f32
      %218 = vector.broadcast %cst_98 : f32 to vector<2x256xf32>
      %219 = arith.addf %218, %217 : vector<2x256xf32>
      %220 = arith.divf %218, %219 : vector<2x256xf32>
      %221 = arith.mulf %215, %220 : vector<2x256xf32>
      %222 = arith.truncf %221 : vector<2x256xf32> to vector<2x256xbf16>
      %c0_99 = arith.constant 0 : index
      %c0_100 = arith.constant 0 : index
      %223 = vector.load %arg11[%c0_99, %c0_100] : memref<256x256xbf16, #tpu.memory_space<vmem>>, vector<256x256xbf16>
      %cst_101 = arith.constant dense<0.000000e+00> : vector<2x256xf32>
      %224 = tpu.matmul %222, %223, %cst_101 {dimension_numbers = #tpu.dot_dimension_numbers<[1], [0], [0], [1], [0, 0, 1, 1], [], []>} : vector<2x256xbf16>, vector<256x256xbf16>, vector<2x256xf32> -> vector<2x256xf32>
      %c0_102 = arith.constant 0 : index
      %c0_103 = arith.constant 0 : index
      %225 = vector.load %arg12[%c0_102, %c0_103] : memref<1x256xf32, #tpu.memory_space<vmem>>, vector<1x256xf32>
      %226 = vector.broadcast %225 : vector<1x256xf32> to vector<2x256xf32>
      %227 = arith.addf %224, %226 : vector<2x256xf32>
      %c0_104 = arith.constant 0 : index
      %c0_105 = arith.constant 0 : index
      %228 = vector.load %arg13[%c0_104, %c0_105] : memref<2x256xf32, #tpu.memory_space<vmem>>, vector<2x256xf32>
      %229 = arith.addf %227, %228 : vector<2x256xf32>
      %230 = arith.negf %229 : vector<2x256xf32>
      %231 = math.exp %230 : vector<2x256xf32>
      %cst_106 = arith.constant 1.000000e+00 : f32
      %232 = vector.broadcast %cst_106 : f32 to vector<2x256xf32>
      %233 = arith.addf %232, %231 : vector<2x256xf32>
      %234 = arith.divf %232, %233 : vector<2x256xf32>
      %235 = arith.mulf %229, %234 : vector<2x256xf32>
      %236 = arith.truncf %235 : vector<2x256xf32> to vector<2x256xbf16>
      %c0_107 = arith.constant 0 : index
      %c0_108 = arith.constant 0 : index
      %237 = vector.load %arg30[%c0_107, %c0_108] : memref<2x256xbf16, #tpu.memory_space<vmem>>, vector<2x256xbf16>
      tpu.vector_store %arg30[%c0_107, %c0_108], %236 {strides = array<i32>} : memref<2x256xbf16, #tpu.memory_space<vmem>>, vector<2x256xbf16>,
    } else {
    }
    %c0 = arith.constant 0 : index
    %c0_1 = arith.constant 0 : index
    %c0_2 = arith.constant 0 : index
    %3 = vector.load %arg29[%c0, %c0_1, %c0_2] : memref<2x16x256xf32, #tpu.memory_space<vmem>>, vector<2x16x256xf32>
    %c0_3 = arith.constant 0 : index
    %c0_4 = arith.constant 0 : index
    %4 = vector.load %arg30[%c0_3, %c0_4] : memref<2x256xbf16, #tpu.memory_space<vmem>>, vector<2x256xbf16>
    %c0_5 = arith.constant 0 : index
    %c0_6 = arith.constant 0 : index
    %c0_7 = arith.constant 0 : index
    %5 = vector.load %arg14[%c0_5, %c0_6, %c0_7] : memref<1x256x1536xbf16, #tpu.memory_space<vmem>>, vector<1x256x1536xbf16>
    %6 = vector.shape_cast %5 : vector<1x256x1536xbf16> to vector<256x1536xbf16>
    %cst = arith.constant dense<0.000000e+00> : vector<2x1536xf32>
    %7 = tpu.matmul %4, %6, %cst {dimension_numbers = #tpu.dot_dimension_numbers<[1], [0], [0], [1], [0, 0, 1, 1], [], []>} : vector<2x256xbf16>, vector<256x1536xbf16>, vector<2x1536xf32> -> vector<2x1536xf32>
    %c0_8 = arith.constant 0 : index
    %c0_9 = arith.constant 0 : index
    %c0_10 = arith.constant 0 : index
    %8 = vector.load %arg15[%c0_8, %c0_9, %c0_10] : memref<1x1x1536xf32, #tpu.memory_space<vmem>>, vector<1x1x1536xf32>
    %9 = vector.shape_cast %8 : vector<1x1x1536xf32> to vector<1x1536xf32>
    %10 = vector.broadcast %9 : vector<1x1536xf32> to vector<2x1536xf32>
    %11 = arith.addf %7, %10 : vector<2x1536xf32>
    %12 = vector.extract_strided_slice %11 {offsets = [0, 0], sizes = [2, 256], strides = [1, 1]} : vector<2x1536xf32> to vector<2x256xf32>
    %13 = vector.shape_cast %12 : vector<2x256xf32> to vector<2x1x256xf32>
    %14 = vector.extract_strided_slice %11 {offsets = [0, 256], sizes = [2, 256], strides = [1, 1]} : vector<2x1536xf32> to vector<2x256xf32>
    %15 = vector.shape_cast %14 : vector<2x256xf32> to vector<2x1x256xf32>
    %16 = vector.extract_strided_slice %11 {offsets = [0, 512], sizes = [2, 256], strides = [1, 1]} : vector<2x1536xf32> to vector<2x256xf32>
    %17 = vector.shape_cast %16 : vector<2x256xf32> to vector<2x1x256xf32>
    %18 = vector.extract_strided_slice %11 {offsets = [0, 768], sizes = [2, 256], strides = [1, 1]} : vector<2x1536xf32> to vector<2x256xf32>
    %19 = vector.shape_cast %18 : vector<2x256xf32> to vector<2x1x256xf32>
    %20 = vector.extract_strided_slice %11 {offsets = [0, 1024], sizes = [2, 256], strides = [1, 1]} : vector<2x1536xf32> to vector<2x256xf32>
    %21 = vector.shape_cast %20 : vector<2x256xf32> to vector<2x1x256xf32>
    %22 = vector.extract_strided_slice %11 {offsets = [0, 1280], sizes = [2, 256], strides = [1, 1]} : vector<2x1536xf32> to vector<2x256xf32>
    %23 = vector.shape_cast %22 : vector<2x256xf32> to vector<2x1x256xf32>
    %cst_11 = arith.constant dense<0.000000e+00> : vector<2x16xf32>
    %24 = vector.multi_reduction <add>, %3, %cst_11 [2] : vector<2x16x256xf32> to vector<2x16xf32>
    %25 = vector.shape_cast %24 : vector<2x16xf32> to vector<2x16x1xf32>
    %cst_12 = arith.constant 2.560000e+02 : f32
    %26 = vector.broadcast %cst_12 : f32 to vector<2x16x1xf32>
    %27 = arith.divf %25, %26 : vector<2x16x1xf32>
    %28 = vector.broadcast %27 : vector<2x16x1xf32> to vector<2x16x256xf32>
    %29 = arith.subf %3, %28 : vector<2x16x256xf32>
    %30 = vector.broadcast %27 : vector<2x16x1xf32> to vector<2x16x256xf32>
    %31 = arith.subf %3, %30 : vector<2x16x256xf32>
    %32 = arith.mulf %29, %31 : vector<2x16x256xf32>
    %cst_13 = arith.constant dense<0.000000e+00> : vector<2x16xf32>
    %33 = vector.multi_reduction <add>, %32, %cst_13 [2] : vector<2x16x256xf32> to vector<2x16xf32>
    %34 = vector.shape_cast %33 : vector<2x16xf32> to vector<2x16x1xf32>
    %cst_14 = arith.constant 2.560000e+02 : f32
    %35 = vector.broadcast %cst_14 : f32 to vector<2x16x1xf32>
    %36 = arith.divf %34, %35 : vector<2x16x1xf32>
    %37 = vector.broadcast %27 : vector<2x16x1xf32> to vector<2x16x256xf32>
    %38 = arith.subf %3, %37 : vector<2x16x256xf32>
    %cst_15 = arith.constant 9.99999974E-6 : f32
    %39 = vector.broadcast %cst_15 : f32 to vector<2x16x1xf32>
    %40 = arith.addf %36, %39 : vector<2x16x1xf32>
    %41 = math.rsqrt %40 : vector<2x16x1xf32>
    %42 = vector.broadcast %41 : vector<2x16x1xf32> to vector<2x16x256xf32>
    %43 = arith.mulf %38, %42 : vector<2x16x256xf32>
    %cst_16 = arith.constant 1.000000e+00 : f32
    %44 = vector.broadcast %cst_16 : f32 to vector<2x1x256xf32>
    %45 = arith.addf %44, %15 : vector<2x1x256xf32>
    %46 = vector.broadcast %45 : vector<2x1x256xf32> to vector<2x16x256xf32>
    %47 = arith.mulf %43, %46 : vector<2x16x256xf32>
    %48 = vector.broadcast %13 : vector<2x1x256xf32> to vector<2x16x256xf32>
    %49 = arith.addf %47, %48 : vector<2x16x256xf32>
    %50 = vector.shape_cast %49 : vector<2x16x256xf32> to vector<32x256xf32>
    %51 = arith.truncf %50 : vector<32x256xf32> to vector<32x256xbf16>
    %c0_17 = arith.constant 0 : index
    %c0_18 = arith.constant 0 : index
    %c0_19 = arith.constant 0 : index
    %52 = vector.load %arg16[%c0_17, %c0_18, %c0_19] : memref<1x256x768xbf16, #tpu.memory_space<vmem>>, vector<1x256x768xbf16>
    %53 = vector.shape_cast %52 : vector<1x256x768xbf16> to vector<256x768xbf16>
    %cst_20 = arith.constant dense<0.000000e+00> : vector<32x768xf32>
    %54 = tpu.matmul %51, %53, %cst_20 {dimension_numbers = #tpu.dot_dimension_numbers<[1], [0], [0], [1], [0, 0, 1, 1], [], []>} : vector<32x256xbf16>, vector<256x768xbf16>, vector<32x768xf32> -> vector<32x768xf32>
    %c0_21 = arith.constant 0 : index
    %c0_22 = arith.constant 0 : index
    %c0_23 = arith.constant 0 : index
    %55 = vector.load %arg17[%c0_21, %c0_22, %c0_23] : memref<1x1x768xf32, #tpu.memory_space<vmem>>, vector<1x1x768xf32>
    %56 = vector.shape_cast %55 : vector<1x1x768xf32> to vector<1x768xf32>
    %57 = vector.broadcast %56 : vector<1x768xf32> to vector<32x768xf32>
    %58 = arith.addf %54, %57 : vector<32x768xf32>
    %59 = vector.extract_strided_slice %58 {offsets = [0, 0], sizes = [32, 128], strides = [1, 1]} : vector<32x768xf32> to vector<32x128xf32>
    %cst_24 = arith.constant 0.0883883461 : f32
    %60 = vector.broadcast %cst_24 : f32 to vector<32x128xf32>
    %61 = arith.mulf %59, %60 : vector<32x128xf32>
    %62 = vector.shape_cast %61 : vector<32x128xf32> to vector<2x16x128xf32>
    %63 = arith.truncf %62 : vector<2x16x128xf32> to vector<2x16x128xbf16>
    %64 = vector.extract_strided_slice %58 {offsets = [0, 256], sizes = [32, 128], strides = [1, 1]} : vector<32x768xf32> to vector<32x128xf32>
    %65 = vector.shape_cast %64 : vector<32x128xf32> to vector<2x16x128xf32>
    %66 = arith.truncf %65 : vector<2x16x128xf32> to vector<2x16x128xbf16>
    %67 = vector.extract_strided_slice %58 {offsets = [0, 512], sizes = [32, 128], strides = [1, 1]} : vector<32x768xf32> to vector<32x128xf32>
    %68 = vector.shape_cast %67 : vector<32x128xf32> to vector<2x16x128xf32>
    %69 = arith.truncf %68 : vector<2x16x128xf32> to vector<2x16x128xbf16>
    %cst_25 = arith.constant dense<0.000000e+00> : vector<2x16x16xf32>
    %70 = tpu.matmul %63, %66, %cst_25 {dimension_numbers = #tpu.dot_dimension_numbers<[2], [2], [1], [1], [0, 0, 0, 1, 1, 1], [0], [0]>} : vector<2x16x128xbf16>, vector<2x16x128xbf16>, vector<2x16x16xf32> -> vector<2x16x16xf32>
    %cst_26 = arith.constant dense<0xFF800000> : vector<2x16xf32>
    %71 = vector.multi_reduction <maximumf>, %70, %cst_26 [2] : vector<2x16x16xf32> to vector<2x16xf32>
    %72 = vector.shape_cast %71 : vector<2x16xf32> to vector<2x16x1xf32>
    %73 = vector.broadcast %72 : vector<2x16x1xf32> to vector<2x16x16xf32>
    %74 = arith.subf %70, %73 : vector<2x16x16xf32>
    %75 = math.exp %74 : vector<2x16x16xf32>
    %cst_27 = arith.constant dense<0.000000e+00> : vector<2x16xf32>
    %76 = vector.multi_reduction <add>, %75, %cst_27 [2] : vector<2x16x16xf32> to vector<2x16xf32>
    %77 = vector.shape_cast %76 : vector<2x16xf32> to vector<2x16x1xf32>
    %78 = tpu.reciprocal %77 {approx = true} : vector<2x16x1xf32> -> vector<2x16x1xf32>
    %79 = vector.broadcast %78 : vector<2x16x1xf32> to vector<2x16x16xf32>
    %80 = arith.mulf %75, %79 : vector<2x16x16xf32>
    %81 = arith.truncf %80 : vector<2x16x16xf32> to vector<2x16x16xbf16>
    %cst_28 = arith.constant dense<0.000000e+00> : vector<2x16x128xf32>
    %82 = tpu.matmul %81, %69, %cst_28 {dimension_numbers = #tpu.dot_dimension_numbers<[2], [1], [1], [2], [0, 0, 0, 1, 1, 2], [0], [0]>} : vector<2x16x16xbf16>, vector<2x16x128xbf16>, vector<2x16x128xf32> -> vector<2x16x128xf32>
    %83 = vector.shape_cast %82 : vector<2x16x128xf32> to vector<32x128xf32>
    %84 = vector.extract_strided_slice %58 {offsets = [0, 128], sizes = [32, 128], strides = [1, 1]} : vector<32x768xf32> to vector<32x128xf32>
    %cst_29 = arith.constant 0.0883883461 : f32
    %85 = vector.broadcast %cst_29 : f32 to vector<32x128xf32>
    %86 = arith.mulf %84, %85 : vector<32x128xf32>
    %87 = vector.shape_cast %86 : vector<32x128xf32> to vector<2x16x128xf32>
    %88 = arith.truncf %87 : vector<2x16x128xf32> to vector<2x16x128xbf16>
    %89 = vector.extract_strided_slice %58 {offsets = [0, 384], sizes = [32, 128], strides = [1, 1]} : vector<32x768xf32> to vector<32x128xf32>
    %90 = vector.shape_cast %89 : vector<32x128xf32> to vector<2x16x128xf32>
    %91 = arith.truncf %90 : vector<2x16x128xf32> to vector<2x16x128xbf16>
    %92 = vector.extract_strided_slice %58 {offsets = [0, 640], sizes = [32, 128], strides = [1, 1]} : vector<32x768xf32> to vector<32x128xf32>
    %93 = vector.shape_cast %92 : vector<32x128xf32> to vector<2x16x128xf32>
    %94 = arith.truncf %93 : vector<2x16x128xf32> to vector<2x16x128xbf16>
    %cst_30 = arith.constant dense<0.000000e+00> : vector<2x16x16xf32>
    %95 = tpu.matmul %88, %91, %cst_30 {dimension_numbers = #tpu.dot_dimension_numbers<[2], [2], [1], [1], [0, 0, 0, 1, 1, 1], [0], [0]>} : vector<2x16x128xbf16>, vector<2x16x128xbf16>, vector<2x16x16xf32> -> vector<2x16x16xf32>
    %cst_31 = arith.constant dense<0xFF800000> : vector<2x16xf32>
    %96 = vector.multi_reduction <maximumf>, %95, %cst_31 [2] : vector<2x16x16xf32> to vector<2x16xf32>
    %97 = vector.shape_cast %96 : vector<2x16xf32> to vector<2x16x1xf32>
    %98 = vector.broadcast %97 : vector<2x16x1xf32> to vector<2x16x16xf32>
    %99 = arith.subf %95, %98 : vector<2x16x16xf32>
    %100 = math.exp %99 : vector<2x16x16xf32>
    %cst_32 = arith.constant dense<0.000000e+00> : vector<2x16xf32>
    %101 = vector.multi_reduction <add>, %100, %cst_32 [2] : vector<2x16x16xf32> to vector<2x16xf32>
    %102 = vector.shape_cast %101 : vector<2x16xf32> to vector<2x16x1xf32>
    %103 = tpu.reciprocal %102 {approx = true} : vector<2x16x1xf32> -> vector<2x16x1xf32>
    %104 = vector.broadcast %103 : vector<2x16x1xf32> to vector<2x16x16xf32>
    %105 = arith.mulf %100, %104 : vector<2x16x16xf32>
    %106 = arith.truncf %105 : vector<2x16x16xf32> to vector<2x16x16xbf16>
    %cst_33 = arith.constant dense<0.000000e+00> : vector<2x16x128xf32>
    %107 = tpu.matmul %106, %94, %cst_33 {dimension_numbers = #tpu.dot_dimension_numbers<[2], [1], [1], [2], [0, 0, 0, 1, 1, 2], [0], [0]>} : vector<2x16x16xbf16>, vector<2x16x128xbf16>, vector<2x16x128xf32> -> vector<2x16x128xf32>
    %108 = vector.shape_cast %107 : vector<2x16x128xf32> to vector<32x128xf32>
    %109 = tpu.concatenate %83, %108 in 1 : vector<32x128xf32>, vector<32x128xf32> -> vector<32x256xf32>
    %110 = arith.truncf %109 : vector<32x256xf32> to vector<32x256xbf16>
    %c0_34 = arith.constant 0 : index
    %c0_35 = arith.constant 0 : index
    %c0_36 = arith.constant 0 : index
    %111 = vector.load %arg18[%c0_34, %c0_35, %c0_36] : memref<1x256x256xbf16, #tpu.memory_space<vmem>>, vector<1x256x256xbf16>
    %112 = vector.shape_cast %111 : vector<1x256x256xbf16> to vector<256x256xbf16>
    %cst_37 = arith.constant dense<0.000000e+00> : vector<32x256xf32>
    %113 = tpu.matmul %110, %112, %cst_37 {dimension_numbers = #tpu.dot_dimension_numbers<[1], [0], [0], [1], [0, 0, 1, 1], [], []>} : vector<32x256xbf16>, vector<256x256xbf16>, vector<32x256xf32> -> vector<32x256xf32>
    %c0_38 = arith.constant 0 : index
    %c0_39 = arith.constant 0 : index
    %c0_40 = arith.constant 0 : index
    %114 = vector.load %arg19[%c0_38, %c0_39, %c0_40] : memref<1x1x256xf32, #tpu.memory_space<vmem>>, vector<1x1x256xf32>
    %115 = vector.shape_cast %114 : vector<1x1x256xf32> to vector<1x256xf32>
    %116 = vector.broadcast %115 : vector<1x256xf32> to vector<32x256xf32>
    %117 = arith.addf %113, %116 : vector<32x256xf32>
    %118 = vector.shape_cast %117 : vector<32x256xf32> to vector<2x16x256xf32>
    %119 = vector.broadcast %17 : vector<2x1x256xf32> to vector<2x16x256xf32>
    %120 = arith.mulf %119, %118 : vector<2x16x256xf32>
    %121 = arith.addf %3, %120 : vector<2x16x256xf32>
    %cst_41 = arith.constant dense<0.000000e+00> : vector<2x16xf32>
    %122 = vector.multi_reduction <add>, %121, %cst_41 [2] : vector<2x16x256xf32> to vector<2x16xf32>
    %123 = vector.shape_cast %122 : vector<2x16xf32> to vector<2x16x1xf32>
    %cst_42 = arith.constant 2.560000e+02 : f32
    %124 = vector.broadcast %cst_42 : f32 to vector<2x16x1xf32>
    %125 = arith.divf %123, %124 : vector<2x16x1xf32>
    %126 = vector.broadcast %125 : vector<2x16x1xf32> to vector<2x16x256xf32>
    %127 = arith.subf %121, %126 : vector<2x16x256xf32>
    %128 = vector.broadcast %125 : vector<2x16x1xf32> to vector<2x16x256xf32>
    %129 = arith.subf %121, %128 : vector<2x16x256xf32>
    %130 = arith.mulf %127, %129 : vector<2x16x256xf32>
    %cst_43 = arith.constant dense<0.000000e+00> : vector<2x16xf32>
    %131 = vector.multi_reduction <add>, %130, %cst_43 [2] : vector<2x16x256xf32> to vector<2x16xf32>
    %132 = vector.shape_cast %131 : vector<2x16xf32> to vector<2x16x1xf32>
    %cst_44 = arith.constant 2.560000e+02 : f32
    %133 = vector.broadcast %cst_44 : f32 to vector<2x16x1xf32>
    %134 = arith.divf %132, %133 : vector<2x16x1xf32>
    %135 = vector.broadcast %125 : vector<2x16x1xf32> to vector<2x16x256xf32>
    %136 = arith.subf %121, %135 : vector<2x16x256xf32>
    %cst_45 = arith.constant 9.99999974E-6 : f32
    %137 = vector.broadcast %cst_45 : f32 to vector<2x16x1xf32>
    %138 = arith.addf %134, %137 : vector<2x16x1xf32>
    %139 = math.rsqrt %138 : vector<2x16x1xf32>
    %140 = vector.broadcast %139 : vector<2x16x1xf32> to vector<2x16x256xf32>
    %141 = arith.mulf %136, %140 : vector<2x16x256xf32>
    %cst_46 = arith.constant 1.000000e+00 : f32
    %142 = vector.broadcast %cst_46 : f32 to vector<2x1x256xf32>
    %143 = arith.addf %142, %21 : vector<2x1x256xf32>
    %144 = vector.broadcast %143 : vector<2x1x256xf32> to vector<2x16x256xf32>
    %145 = arith.mulf %141, %144 : vector<2x16x256xf32>
    %146 = vector.broadcast %19 : vector<2x1x256xf32> to vector<2x16x256xf32>
    %147 = arith.addf %145, %146 : vector<2x16x256xf32>
    %148 = vector.shape_cast %147 : vector<2x16x256xf32> to vector<32x256xf32>
    %149 = arith.truncf %148 : vector<32x256xf32> to vector<32x256xbf16>
    %c0_47 = arith.constant 0 : index
    %c0_48 = arith.constant 0 : index
    %c0_49 = arith.constant 0 : index
    %150 = vector.load %arg20[%c0_47, %c0_48, %c0_49] : memref<1x256x512xbf16, #tpu.memory_space<vmem>>, vector<1x256x512xbf16>
    %151 = vector.shape_cast %150 : vector<1x256x512xbf16> to vector<256x512xbf16>
    %cst_50 = arith.constant dense<0.000000e+00> : vector<32x512xf32>
    %152 = tpu.matmul %149, %151, %cst_50 {dimension_numbers = #tpu.dot_dimension_numbers<[1], [0], [0], [1], [0, 0, 1, 1], [], []>} : vector<32x256xbf16>, vector<256x512xbf16>, vector<32x512xf32> -> vector<32x512xf32>
    %c0_51 = arith.constant 0 : index
    %c0_52 = arith.constant 0 : index
    %c0_53 = arith.constant 0 : index
    %153 = vector.load %arg21[%c0_51, %c0_52, %c0_53] : memref<1x1x512xf32, #tpu.memory_space<vmem>>, vector<1x1x512xf32>
    %154 = vector.shape_cast %153 : vector<1x1x512xf32> to vector<1x512xf32>
    %155 = vector.broadcast %154 : vector<1x512xf32> to vector<32x512xf32>
    %156 = arith.addf %152, %155 : vector<32x512xf32>
    %157 = arith.mulf %156, %156 : vector<32x512xf32>
    %158 = arith.mulf %156, %157 : vector<32x512xf32>
    %cst_54 = arith.constant 4.471500e-02 : f32
    %159 = vector.broadcast %cst_54 : f32 to vector<32x512xf32>
    %160 = arith.mulf %159, %158 : vector<32x512xf32>
    %161 = arith.addf %156, %160 : vector<32x512xf32>
    %cst_55 = arith.constant 0.797884583 : f32
    %162 = vector.broadcast %cst_55 : f32 to vector<32x512xf32>
    %163 = arith.mulf %162, %161 : vector<32x512xf32>
    %164 = math.tanh %163 : vector<32x512xf32>
    %cst_56 = arith.constant 1.000000e+00 : f32
    %165 = vector.broadcast %cst_56 : f32 to vector<32x512xf32>
    %166 = arith.addf %165, %164 : vector<32x512xf32>
    %cst_57 = arith.constant 5.000000e-01 : f32
    %167 = vector.broadcast %cst_57 : f32 to vector<32x512xf32>
    %168 = arith.mulf %167, %166 : vector<32x512xf32>
    %169 = arith.mulf %156, %168 : vector<32x512xf32>
    %170 = arith.truncf %169 : vector<32x512xf32> to vector<32x512xbf16>
    %c0_58 = arith.constant 0 : index
    %c0_59 = arith.constant 0 : index
    %c0_60 = arith.constant 0 : index
    %171 = vector.load %arg22[%c0_58, %c0_59, %c0_60] : memref<1x512x256xbf16, #tpu.memory_space<vmem>>, vector<1x512x256xbf16>
    %172 = vector.shape_cast %171 : vector<1x512x256xbf16> to vector<512x256xbf16>
    %cst_61 = arith.constant dense<0.000000e+00> : vector<32x256xf32>
    %173 = tpu.matmul %170, %172, %cst_61 {dimension_numbers = #tpu.dot_dimension_numbers<[1], [0], [0], [1], [0, 0, 1, 1], [], []>} : vector<32x512xbf16>, vector<512x256xbf16>, vector<32x256xf32> -> vector<32x256xf32>
    %c0_62 = arith.constant 0 : index
    %c0_63 = arith.constant 0 : index
    %c0_64 = arith.constant 0 : index
    %174 = vector.load %arg23[%c0_62, %c0_63, %c0_64] : memref<1x1x256xf32, #tpu.memory_space<vmem>>, vector<1x1x256xf32>
    %175 = vector.shape_cast %174 : vector<1x1x256xf32> to vector<1x256xf32>
    %176 = vector.broadcast %175 : vector<1x256xf32> to vector<32x256xf32>
    %177 = arith.addf %173, %176 : vector<32x256xf32>
    %178 = vector.shape_cast %177 : vector<32x256xf32> to vector<2x16x256xf32>
    %179 = vector.broadcast %23 : vector<2x1x256xf32> to vector<2x16x256xf32>
    %180 = arith.mulf %179, %178 : vector<2x16x256xf32>
    %181 = arith.addf %121, %180 : vector<2x16x256xf32>
    %c0_65 = arith.constant 0 : index
    %c0_66 = arith.constant 0 : index
    %c0_67 = arith.constant 0 : index
    %182 = vector.load %arg29[%c0_65, %c0_66, %c0_67] : memref<2x16x256xf32, #tpu.memory_space<vmem>>, vector<2x16x256xf32>
    tpu.vector_store %arg29[%c0_65, %c0_66, %c0_67], %181 {strides = array<i32>} : memref<2x16x256xf32, #tpu.memory_space<vmem>>, vector<2x16x256xf32>,
    %c1_i32 = arith.constant 1 : i32
    %183 = arith.cmpi eq, %arg0, %c1_i32 : i32
    %184 = arith.extui %183 : i1 to i32
    %c0_i32_68 = arith.constant 0 : i32
    %185 = arith.cmpi ne, %184, %c0_i32_68 : i32
    scf.if %185 {
      %c0_69 = arith.constant 0 : index
      %c0_70 = arith.constant 0 : index
      %186 = vector.load %arg24[%c0_69, %c0_70] : memref<256x512xbf16, #tpu.memory_space<vmem>>, vector<256x512xbf16>
      %cst_71 = arith.constant dense<0.000000e+00> : vector<2x512xf32>
      %187 = tpu.matmul %4, %186, %cst_71 {dimension_numbers = #tpu.dot_dimension_numbers<[1], [0], [0], [1], [0, 0, 1, 1], [], []>} : vector<2x256xbf16>, vector<256x512xbf16>, vector<2x512xf32> -> vector<2x512xf32>
      %c0_72 = arith.constant 0 : index
      %c0_73 = arith.constant 0 : index
      %188 = vector.load %arg25[%c0_72, %c0_73] : memref<1x512xf32, #tpu.memory_space<vmem>>, vector<1x512xf32>
      %189 = vector.broadcast %188 : vector<1x512xf32> to vector<2x512xf32>
      %190 = arith.addf %187, %189 : vector<2x512xf32>
      %191 = vector.extract_strided_slice %190 {offsets = [0, 0], sizes = [2, 256], strides = [1, 1]} : vector<2x512xf32> to vector<2x256xf32>
      %192 = vector.shape_cast %191 : vector<2x256xf32> to vector<2x1x256xf32>
      %193 = vector.extract_strided_slice %190 {offsets = [0, 256], sizes = [2, 256], strides = [1, 1]} : vector<2x512xf32> to vector<2x256xf32>
      %194 = vector.shape_cast %193 : vector<2x256xf32> to vector<2x1x256xf32>
      %cst_74 = arith.constant dense<0.000000e+00> : vector<2x16xf32>
      %195 = vector.multi_reduction <add>, %181, %cst_74 [2] : vector<2x16x256xf32> to vector<2x16xf32>
      %196 = vector.shape_cast %195 : vector<2x16xf32> to vector<2x16x1xf32>
      %cst_75 = arith.constant 2.560000e+02 : f32
      %197 = vector.broadcast %cst_75 : f32 to vector<2x16x1xf32>
      %198 = arith.divf %196, %197 : vector<2x16x1xf32>
      %199 = vector.broadcast %198 : vector<2x16x1xf32> to vector<2x16x256xf32>
      %200 = arith.subf %181, %199 : vector<2x16x256xf32>
      %201 = vector.broadcast %198 : vector<2x16x1xf32> to vector<2x16x256xf32>
      %202 = arith.subf %181, %201 : vector<2x16x256xf32>
      %203 = arith.mulf %200, %202 : vector<2x16x256xf32>
      %cst_76 = arith.constant dense<0.000000e+00> : vector<2x16xf32>
      %204 = vector.multi_reduction <add>, %203, %cst_76 [2] : vector<2x16x256xf32> to vector<2x16xf32>
      %205 = vector.shape_cast %204 : vector<2x16xf32> to vector<2x16x1xf32>
      %cst_77 = arith.constant 2.560000e+02 : f32
      %206 = vector.broadcast %cst_77 : f32 to vector<2x16x1xf32>
      %207 = arith.divf %205, %206 : vector<2x16x1xf32>
      %208 = vector.broadcast %198 : vector<2x16x1xf32> to vector<2x16x256xf32>
      %209 = arith.subf %181, %208 : vector<2x16x256xf32>
      %cst_78 = arith.constant 9.99999974E-6 : f32
      %210 = vector.broadcast %cst_78 : f32 to vector<2x16x1xf32>
      %211 = arith.addf %207, %210 : vector<2x16x1xf32>
      %212 = math.rsqrt %211 : vector<2x16x1xf32>
      %213 = vector.broadcast %212 : vector<2x16x1xf32> to vector<2x16x256xf32>
      %214 = arith.mulf %209, %213 : vector<2x16x256xf32>
      %cst_79 = arith.constant 1.000000e+00 : f32
      %215 = vector.broadcast %cst_79 : f32 to vector<2x1x256xf32>
      %216 = arith.addf %215, %194 : vector<2x1x256xf32>
      %217 = vector.broadcast %216 : vector<2x1x256xf32> to vector<2x16x256xf32>
      %218 = arith.mulf %214, %217 : vector<2x16x256xf32>
      %219 = vector.broadcast %192 : vector<2x1x256xf32> to vector<2x16x256xf32>
      %220 = arith.addf %218, %219 : vector<2x16x256xf32>
      %221 = vector.shape_cast %220 : vector<2x16x256xf32> to vector<32x256xf32>
      %222 = arith.truncf %221 : vector<32x256xf32> to vector<32x256xbf16>
      %c0_80 = arith.constant 0 : index
      %c0_81 = arith.constant 0 : index
      %223 = vector.load %arg26[%c0_80, %c0_81] : memref<256x128xbf16, #tpu.memory_space<vmem>>, vector<256x128xbf16>
      %cst_82 = arith.constant dense<0.000000e+00> : vector<32x128xf32>
      %224 = tpu.matmul %222, %223, %cst_82 {dimension_numbers = #tpu.dot_dimension_numbers<[1], [0], [0], [1], [0, 0, 1, 1], [], []>} : vector<32x256xbf16>, vector<256x128xbf16>, vector<32x128xf32> -> vector<32x128xf32>
      %c0_83 = arith.constant 0 : index
      %c0_84 = arith.constant 0 : index
      %225 = vector.load %arg27[%c0_83, %c0_84] : memref<1x128xf32, #tpu.memory_space<vmem>>, vector<1x128xf32>
      %226 = vector.broadcast %225 : vector<1x128xf32> to vector<32x128xf32>
      %227 = arith.addf %224, %226 : vector<32x128xf32>
      %228 = vector.shape_cast %227 : vector<32x128xf32> to vector<2x16x128xf32>
      %c0_85 = arith.constant 0 : index
      %c0_86 = arith.constant 0 : index
      %c0_87 = arith.constant 0 : index
      %229 = vector.load %arg28[%c0_85, %c0_86, %c0_87] : memref<2x16x128xf32, #tpu.memory_space<vmem>>, vector<2x16x128xf32>
      tpu.vector_store %arg28[%c0_85, %c0_86, %c0_87], %228 {strides = array<i32>} : memref<2x16x128xf32, #tpu.memory_space<vmem>>, vector<2x16x128xf32>,
    } else {
    }
    return
  }
  func.func @transform_0(%arg0: i32) -> (i32, i32, i32) {
    %c0_i32 = arith.constant 0 : i32
    %c0_i32_0 = arith.constant 0 : i32
    %c0_i32_1 = arith.constant 0 : i32
    %c0_i32_2 = arith.constant 0 : i32
    return %c0_i32, %c0_i32_0, %c0_i32_1 : i32, i32, i32
  }
  func.func @transform_1(%arg0: i32) -> (i32, i32, i32) {
    %c0_i32 = arith.constant 0 : i32
    %c0_i32_0 = arith.constant 0 : i32
    %c0_i32_1 = arith.constant 0 : i32
    %c0_i32_2 = arith.constant 0 : i32
    return %c0_i32, %c0_i32_0, %c0_i32_1 : i32, i32, i32
  }
  func.func @transform_2(%arg0: i32) -> (i32, i32, i32) {
    %c0_i32 = arith.constant 0 : i32
    %c0_i32_0 = arith.constant 0 : i32
    %c0_i32_1 = arith.constant 0 : i32
    %c0_i32_2 = arith.constant 0 : i32
    return %c0_i32, %c0_i32_0, %c0_i32_1 : i32, i32, i32
  }
  func.func @transform_3(%arg0: i32) -> (i32, i32, i32) {
    %c0_i32 = arith.constant 0 : i32
    %c0_i32_0 = arith.constant 0 : i32
    %c0_i32_1 = arith.constant 0 : i32
    %c0_i32_2 = arith.constant 0 : i32
    return %c0_i32, %c0_i32_0, %c0_i32_1 : i32, i32, i32
  }
  func.func @transform_4(%arg0: i32) -> (i32, i32) {
    %c0_i32 = arith.constant 0 : i32
    %c0_i32_0 = arith.constant 0 : i32
    %c0_i32_1 = arith.constant 0 : i32
    return %c0_i32, %c0_i32_0 : i32, i32
  }
  func.func @transform_5(%arg0: i32) -> (i32, i32) {
    %c0_i32 = arith.constant 0 : i32
    %c0_i32_0 = arith.constant 0 : i32
    %c0_i32_1 = arith.constant 0 : i32
    return %c0_i32, %c0_i32_0 : i32, i32
  }
  func.func @transform_6(%arg0: i32) -> (i32, i32) {
    %c0_i32 = arith.constant 0 : i32
    %c0_i32_0 = arith.constant 0 : i32
    %c0_i32_1 = arith.constant 0 : i32
    return %c0_i32, %c0_i32_0 : i32, i32
  }
  func.func @transform_7(%arg0: i32) -> (i32, i32) {
    %c0_i32 = arith.constant 0 : i32
    %c0_i32_0 = arith.constant 0 : i32
    %c0_i32_1 = arith.constant 0 : i32
    return %c0_i32, %c0_i32_0 : i32, i32
  }
  func.func @transform_8(%arg0: i32) -> (i32, i32) {
    %c0_i32 = arith.constant 0 : i32
    %c0_i32_0 = arith.constant 0 : i32
    %c0_i32_1 = arith.constant 0 : i32
    return %c0_i32, %c0_i32_0 : i32, i32
  }
  func.func @transform_9(%arg0: i32) -> (i32, i32) {
    %c0_i32 = arith.constant 0 : i32
    %c0_i32_0 = arith.constant 0 : i32
    %c0_i32_1 = arith.constant 0 : i32
    return %c0_i32, %c0_i32_0 : i32, i32
  }
  func.func @transform_10(%arg0: i32) -> (i32, i32) {
    %c0_i32 = arith.constant 0 : i32
    %c0_i32_0 = arith.constant 0 : i32
    %c0_i32_1 = arith.constant 0 : i32
    return %c0_i32, %c0_i32_0 : i32, i32
  }
  func.func @transform_11(%arg0: i32) -> (i32, i32) {
    %c0_i32 = arith.constant 0 : i32
    %c0_i32_0 = arith.constant 0 : i32
    %c0_i32_1 = arith.constant 0 : i32
    return %c0_i32, %c0_i32_0 : i32, i32
  }
  func.func @transform_12(%arg0: i32) -> (i32, i32) {
    %c0_i32 = arith.constant 0 : i32
    %c0_i32_0 = arith.constant 0 : i32
    %c0_i32_1 = arith.constant 0 : i32
    return %c0_i32, %c0_i32_0 : i32, i32
  }
  func.func @transform_13(%arg0: i32) -> (i32, i32, i32) {
    %c0_i32 = arith.constant 0 : i32
    %c0_i32_0 = arith.constant 0 : i32
    %c0_i32_1 = arith.constant 0 : i32
    return %arg0, %c0_i32, %c0_i32_0 : i32, i32, i32
  }
  func.func @transform_14(%arg0: i32) -> (i32, i32, i32) {
    %c0_i32 = arith.constant 0 : i32
    %c0_i32_0 = arith.constant 0 : i32
    %c0_i32_1 = arith.constant 0 : i32
    return %arg0, %c0_i32, %c0_i32_0 : i32, i32, i32
  }
  func.func @transform_15(%arg0: i32) -> (i32, i32, i32) {
    %c0_i32 = arith.constant 0 : i32
    %c0_i32_0 = arith.constant 0 : i32
    %c0_i32_1 = arith.constant 0 : i32
    return %arg0, %c0_i32, %c0_i32_0 : i32, i32, i32
  }
  func.func @transform_16(%arg0: i32) -> (i32, i32, i32) {
    %c0_i32 = arith.constant 0 : i32
    %c0_i32_0 = arith.constant 0 : i32
    %c0_i32_1 = arith.constant 0 : i32
    return %arg0, %c0_i32, %c0_i32_0 : i32, i32, i32
  }
  func.func @transform_17(%arg0: i32) -> (i32, i32, i32) {
    %c0_i32 = arith.constant 0 : i32
    %c0_i32_0 = arith.constant 0 : i32
    %c0_i32_1 = arith.constant 0 : i32
    return %arg0, %c0_i32, %c0_i32_0 : i32, i32, i32
  }
  func.func @transform_18(%arg0: i32) -> (i32, i32, i32) {
    %c0_i32 = arith.constant 0 : i32
    %c0_i32_0 = arith.constant 0 : i32
    %c0_i32_1 = arith.constant 0 : i32
    return %arg0, %c0_i32, %c0_i32_0 : i32, i32, i32
  }
  func.func @transform_19(%arg0: i32) -> (i32, i32, i32) {
    %c0_i32 = arith.constant 0 : i32
    %c0_i32_0 = arith.constant 0 : i32
    %c0_i32_1 = arith.constant 0 : i32
    return %arg0, %c0_i32, %c0_i32_0 : i32, i32, i32
  }
  func.func @transform_20(%arg0: i32) -> (i32, i32, i32) {
    %c0_i32 = arith.constant 0 : i32
    %c0_i32_0 = arith.constant 0 : i32
    %c0_i32_1 = arith.constant 0 : i32
    return %arg0, %c0_i32, %c0_i32_0 : i32, i32, i32
  }
  func.func @transform_21(%arg0: i32) -> (i32, i32, i32) {
    %c0_i32 = arith.constant 0 : i32
    %c0_i32_0 = arith.constant 0 : i32
    %c0_i32_1 = arith.constant 0 : i32
    return %arg0, %c0_i32, %c0_i32_0 : i32, i32, i32
  }
  func.func @transform_22(%arg0: i32) -> (i32, i32, i32) {
    %c0_i32 = arith.constant 0 : i32
    %c0_i32_0 = arith.constant 0 : i32
    %c0_i32_1 = arith.constant 0 : i32
    return %arg0, %c0_i32, %c0_i32_0 : i32, i32, i32
  }
  func.func @transform_23(%arg0: i32) -> (i32, i32) {
    %c0_i32 = arith.constant 0 : i32
    %c0_i32_0 = arith.constant 0 : i32
    %c0_i32_1 = arith.constant 0 : i32
    return %c0_i32, %c0_i32_0 : i32, i32
  }
  func.func @transform_24(%arg0: i32) -> (i32, i32) {
    %c0_i32 = arith.constant 0 : i32
    %c0_i32_0 = arith.constant 0 : i32
    %c0_i32_1 = arith.constant 0 : i32
    return %c0_i32, %c0_i32_0 : i32, i32
  }
  func.func @transform_25(%arg0: i32) -> (i32, i32) {
    %c0_i32 = arith.constant 0 : i32
    %c0_i32_0 = arith.constant 0 : i32
    %c0_i32_1 = arith.constant 0 : i32
    return %c0_i32, %c0_i32_0 : i32, i32
  }
  func.func @transform_26(%arg0: i32) -> (i32, i32) {
    %c0_i32 = arith.constant 0 : i32
    %c0_i32_0 = arith.constant 0 : i32
    %c0_i32_1 = arith.constant 0 : i32
    return %c0_i32, %c0_i32_0 : i32, i32
  }
  func.func @transform_27(%arg0: i32) -> (i32, i32, i32) {
    %c0_i32 = arith.constant 0 : i32
    %c0_i32_0 = arith.constant 0 : i32
    %c0_i32_1 = arith.constant 0 : i32
    %c0_i32_2 = arith.constant 0 : i32
    return %c0_i32, %c0_i32_0, %c0_i32_1 : i32, i32, i32
  }
}

</mosaic_0001>

<bundles_post_ra>
// kernel: _lambda_.1
= control target key start
LH: loop header
LB: loop body
LE: loop exit
PB: predicated region body
PF: predicated region fallthrough
CT: control target
= control target key end

     0   :  { %s11720_s0 = inlined_call_operand.vmem [shape: f32[2,16,64], index: 0, kind: input, shape index: {}]   ;;  %s11721_s1 = inlined_call_operand.vmem [shape: f32[2,16,64], index: 1, kind: input, shape index: {}]   ;;  %s11722_s2 = inlined_call_operand.vmem [shape: f32[2,1,1], index: 2, kind: input, shape index: {}]   ;;  %s11723_s3 = inlined_call_operand.vmem [shape: f32[2,1,1], index: 3, kind: input, shape index: {}]   ;;  %s11724_s4 = inlined_call_operand.vmem [shape: bf16[64,256], index: 4, kind: input, shape index: {}]   ;;  %s11725_s5 = inlined_call_operand.vmem [shape: f32[1,256], index: 5, kind: input, shape index: {}]   ;;  %s11726_s6 = inlined_call_operand.vmem [shape: f32[16,256], index: 6, kind: input, shape index: {}]   ;;  %s11727_s7 = inlined_call_operand.vmem [shape: f32[2,128], index: 7, kind: input, shape index: {}]   ;;  %s11728_s8 = inlined_call_operand.vmem [shape: bf16[128,256], index: 8, kind: input, shape index: {}]   ;;  %s11729_s9 = inlined_call_operand.hbm [shape: f32[1,256], index: 9, kind: input, shape index: {}]   ;;  %s11730_s10 = inlined_call_operand.vmem [shape: bf16[256,256], index: 10, kind: input, shape index: {}]   ;;  %s11731_s11 = inlined_call_operand.hbm [shape: f32[1,256], index: 11, kind: input, shape index: {}]   ;;  %s11732_s12 = inlined_call_operand.vmem [shape: f32[2,256], index: 12, kind: input, shape index: {}]   ;;  %s11733_s13 = inlined_call_operand.vmem [shape: bf16[2,256,1536], index: 13, kind: input, shape index: {}]   ;;  %s11734_s14 = inlined_call_operand.hbm [shape: f32[2,1,1536], index: 14, kind: input, shape index: {}]   ;;  %s11735_s15 = inlined_call_operand.vmem [shape: bf16[2,256,768], index: 15, kind: input, shape index: {}]   ;;  %s11736_s16 = inlined_call_operand.vmem [shape: f32[2,1,768], index: 16, kind: input, shape index: {}]   ;;  %s11737_s17 = inlined_call_operand.vmem [shape: bf16[2,256,256], index: 17, kind: input, shape index: {}]   ;;  %s11738_s18 = inlined_call_operand.vmem [shape: f32[2,1,256], index: 18, kind: input, shape index: {}]   ;;  %s11739_s19 = inlined_call_operand.vmem [shape: bf16[2,256,512], index: 19, kind: input, shape index: {}]   ;;  %s11740_s20 = inlined_call_operand.hbm [shape: f32[2,1,512], index: 20, kind: input, shape index: {}]   ;;  %s11741_s21 = inlined_call_operand.hbm [shape: bf16[2,512,256], index: 21, kind: input, shape index: {}]   ;;  %s11742_s22 = inlined_call_operand.hbm [shape: f32[2,1,256], index: 22, kind: input, shape index: {}]   ;;  %s11743_s23 = inlined_call_operand.hbm [shape: bf16[256,512], index: 23, kind: input, shape index: {}]   ;;  %s11744_s24 = inlined_call_operand.hbm [shape: f32[1,512], index: 24, kind: input, shape index: {}]   ;;  %s11745_s25 = inlined_call_operand.hbm [shape: bf16[256,128], index: 25, kind: input, shape index: {}]   ;;  %s11746_s26 = inlined_call_operand.hbm [shape: f32[1,128], index: 26, kind: input, shape index: {}]   ;;  %s11747_s27 = inlined_call_operand.vmem [shape: f32[2,16,128], index: 27, kind: output, shape index: {}]  }
   0x1   :  { %11779 = sst [smem:[#allocation28_spill]] %s11720_s0 }
   0x2   :  { %11780 = sst [smem:[#allocation29_spill]] %s11721_s1 }
   0x3   :  { %11781 = sst [smem:[#allocation30_spill]] %s11722_s2 }
   0x4   :  { %11782 = sst [smem:[#allocation31_spill]] %s11723_s3 }
   0x5   :  { %11783 = sst [smem:[#allocation32_spill]] %s11724_s4 }
   0x6   :  { %11784 = sst [smem:[#allocation33_spill]] %s11725_s5 }
   0x7   :  { %11785 = sst [smem:[#allocation34_spill]] %s11726_s6 }
   0x8   :  { %11786 = sst [smem:[#allocation35_spill]] %s11727_s7 }
   0x9   :  { %11787 = sst [smem:[#allocation36_spill]] %s11728_s8 }
   0xa   :  { %11788 = sst [smem:[#allocation37_spill]] %s11729_s9 }
   0xb   :  { %11789 = sst [smem:[#allocation38_spill]] %s11730_s10 }
   0xc   :  { %11790 = sst [smem:[#allocation39_spill]] %s11731_s11 }
   0xd   :  { %11791 = sst [smem:[#allocation40_spill]] %s11732_s12 }
   0xe   :  { %11792 = sst [smem:[#allocation41_spill]] %s11733_s13 }
   0xf   :  { %11793 = sst [smem:[#allocation42_spill]] %s11734_s14 }
  0x10   :  { %11794 = sst [smem:[#allocation43_spill]] %s11735_s15 }
  0x11   :  { %11795 = sst [smem:[#allocation44_spill]] %s11736_s16 }
  0x12   :  { %11796 = sst [smem:[#allocation45_spill]] %s11737_s17 }
  0x13   :  { %11797 = sst [smem:[#allocation46_spill]] %s11738_s18 }
  0x14   :  { %11798 = sst [smem:[#allocation47_spill]] %s11739_s19 }
  0x15   :  { %11799 = sst [smem:[#allocation48_spill]] %s11740_s20 }
  0x16   :  { %11800 = sst [smem:[#allocation49_spill]] %s11741_s21 }
  0x17   :  { %11801 = sst [smem:[#allocation50_spill]] %s11742_s22 }
  0x18   :  { %11802 = sst [smem:[#allocation51_spill]] %s11743_s23 }
  0x19   :  { %11803 = sst [smem:[#allocation52_spill]] %s11744_s24 }
  0x1a   :  { %11804 = sst [smem:[#allocation53_spill]] %s11747_s27 }
  0x1b   :  { %32 = vsyncpa [#allocation5], 0 }
  0x1c   :  { %33 = vsyncpa [#allocation7], 0 }
  0x1d   :  { %34 = vsyncpa [#allocation14], 0 }
  0x1e   :  { %35 = vsyncpa [#allocation17], 0  ;;  %s9917_s7 = smov 0   ;;  %s9919_s4 = smov 0  }
  0x1f   :  { %s9921_s8 = smov 0   ;;  %s9923_s30 = smov 0  }
  0x20 LB: > { %11805 = sst [smem:[#allocation24_spill]] %s9750_s8  ;;  %s9756_s9 = smov [#allocation4]   ;;  %s9754_s30 = sphi %s9923_s30, %s11868_s30   ;;  %s9750_s8 = sphi %s9921_s8, %s11870_s8   ;;  %s9746_s4 = sphi %s9919_s4, %s11872_s4   ;;  %s9742_s7 = sphi %s9917_s7, %s11871_s7  }
  0x21   : > { %s724_s5 = sshll.u32 %s9756_s9, 4  ;;  %s9938_s28 = sadd.s32 4294967295, %s9754_s30   ;;  %s725_s5 = int_to_ptr.vmem [resolvable:$true] %s724_s5 }
  0x22   : > { %p7519_p0 = scmp.ge.s32.totalorder %s9754_s30, 1  ;;  %p11759_p1 = scmp.eq.s32.totalorder %s9938_s28, 0 }
  0x23   : > { %p684_p2 = scmp.lt.s32.totalorder %s9754_s30, 3  ;;  %s9957_s29 = sadd.s32 1, %s9754_s30  }
  0x24   : > { %11808 = sst [smem:[#allocation25_spill]] %s9957_s29  ;;  %s347_s1 = sadd.s32 1, %s9750_s8 }
  0x25   : > { %p9944_p4 = pnand %p7519_p0, %p684_p2  ;;  %s344_s6 = ssub.s32 %s9754_s30, %s9957_s29 }
  0x26   : > { %s11809_s3 = sld [smem:[#allocation37_spill]] }
  0x27   : > { %s11806_s0 = scalar_select %p9944_p4, 1, 0 }
  0x28   : > { %p8328_p5 = pneg %p9944_p4 }
  0x2a   : > { %p9952_p6 = pnand %p8328_p5, %p11759_p1 }
  0x2c   : > { %s11807_s10 = scalar_select %p9952_p6, 1, 0 }
  0x2d   : > { %s9412_s9 = scalar_lea.hbm %s11809_s3, 32  ;;  %p9970_p8 = pneg %p9952_p6 }
  0x2e   : > { %p9413_p7 = scmp.ne.s32.totalorder %s11809_s3, %s9412_s9  ;;  %p9419_p11 = scmp.lt.u32.totalorder %s9412_s9, %s11809_s3 }
  0x2f   : > { %s11810_s19 = scalar_select %p9970_p8, 1, 0 }
  0x30   : > { %p9415_p9 = pnand %p9970_p8, %p9413_p7 }
  0x32   : > { %p9416_p10 = pneg %p9415_p9 }
  0x34   : > { %p9421_p12 = pnand %p9419_p11, %p9416_p10 }
  0x36   : > { %9424 = shalt.err (!%p9421_p12)
}
  0x37   : > { %s9425_s11 = scalar_lea.vmem %s725_s5, 32  ;;  %p9433_p5 = scmp.lt.s32.totalorder %s725_s5, %s725_s5 }
  0x38   : > { %p9426_p13 = scmp.ne.s32.totalorder %s725_s5, %s9425_s11  ;;  %p9434_p3 = scmp.lt.s32.totalorder %s9425_s11, %s9425_s11 }
  0x3a   : > { %p9428_p0 = pnand %p9426_p13, %p9970_p8  ;;  %p9435_p1 = por %p9434_p3, %p9433_p5 }
  0x3c   : > { %p9429_p2 = pneg %p9428_p0 }
  0x3e   : > { %p9436_p4 = pnand %p9435_p1, %p9429_p2 }
  0x40   : > { %9439 = shalt.err (!%p9436_p4)
}
  0x41   : > { %8331 = dma.hbm_to_vmem [thread:$0]  (!%p9952_p6), %s11809_s3, 32, %s725_s5, [#allocation5]  }
  0x42   : > { %p345_p3 = scmp.eq.s32.totalorder %s344_s6, 0  ;;  %p354_p1 = scmp.ne.s32.totalorder %s9750_s8, %s9746_s4 }
  0x43   : > { %p355_p4 = scmp.eq.s32.totalorder %s9754_s30, 0  ;;  %p360_p7 = scmp.ne.s32.totalorder %s9746_s4, %s9742_s7 }
  0x44   : > { %s9992_s16 = scalar_select %p345_p3, %s9750_s8, %s347_s1  }
  0x45   : > { %p356_p9 = por %p355_p4, %p354_p1  ;;  %p11812_p10 = scmp.eq.s32.totalorder %s9938_s28, 0 }
  0x46   : > { %11811 = sst [smem:[#allocation26_spill]] %s9992_s16  ;;  %p8366_p12 = scmp.lt.s32.totalorder %s9754_s30, 2 }
  0x47   : > { %p9996_p11 = por %p11812_p10, %p360_p7  ;;  %s808_s2 = sand.u32 1, %s9754_s30  }
  0x48   : > { %s10003_s9 = sand.u32 1, %s9750_s8   ;;  %p10006_p13 = pnand %p8366_p12, %p356_p9 }
  0x49   : > { %s11813_s18 = scalar_select %p9996_p11, 1, 0 }
  0x4a   : > { %s8290_s11 = smul.u32 12, %s10003_s9  ;;  %s11816_s14 = sld [smem:[#allocation42_spill]] }
  0x4b   : > { %11814 = sst [smem:[#allocation27_spill]] %s11813_s18  ;;  %s8291_s7 = smul.u32 192, %s9754_s30 }
  0x4c   : > { %s11815_s5 = scalar_select %p10006_p13, 1, 0 }
  0x4d   : > { %s812_s3 = scalar_lea.vmem [#allocation8], %s8290_s11  ;;  %s10019_s8 = scalar_lea.sflag [#allocation5], %s808_s2 }
  0x4e   : > { %s820_s16 = sshll.u32 %s812_s3, 4  ;;  %p10025_p2 = pneg %p10006_p13  ;;  %s10017_s16 = int_to_ptr.vmem [resolvable:$true] %s820_s16 }
  0x50   : > { %s10015_s27 = scalar_lea.hbm %s11816_s14, %s8291_s7  ;;  %s9445_s11 = scalar_lea.hbm %s11816_s14, 384 }
  0x51   : > { %s9440_s29 = scalar_lea.hbm %s10015_s27, 192  ;;  %p9446_p1 = scmp.lt.u32.totalorder %s10015_s27, %s11816_s14 }
  0x52   : > { %p9441_p0 = scmp.ne.s32.totalorder %s10015_s27, %s9440_s29  ;;  %p9447_p4 = scmp.lt.u32.totalorder %s9445_s11, %s9440_s29 }
  0x53   : > { %s11817_s1 = scalar_select %p10025_p2, 1, 0 }
  0x54   : > { %p9443_p5 = pnand %p10025_p2, %p9441_p0  ;;  %p9448_p7 = por %p9447_p4, %p9446_p1 }
  0x55   : > { %p9449_p9 = scmp.lt.u32.totalorder %s9440_s29, %s10015_s27 }
  0x56   : > { %p9444_p3 = pneg %p9443_p5 }
  0x57   : > { %p9450_p10 = por %p9449_p9, %p9448_p7 }
  0x59   : > { %p9451_p12 = pnand %p9450_p10, %p9444_p3 }
  0x5b   : > { %9454 = shalt.err (!%p9451_p12)
}
  0x5c   : > { %s9455_s2 = scalar_lea.vmem %s10017_s16, 192  ;;  %s9757_s7 = smov [#allocation8]  }
  0x5d   : > { %p9456_p0 = scmp.ne.s32.totalorder %s10017_s16, %s9455_s2  ;;  %s9460_s6 = sshll.u32 %s9757_s7, 4  ;;  %s9461_s6 = int_to_ptr.vmem [resolvable:$false] %s9460_s6 }
  0x5e   : > { %s9462_s3 = scalar_lea.vmem %s9461_s6, 384  ;;  %p9463_p6 = scmp.lt.s32.totalorder %s10017_s16, %s9461_s6 }
  0x5f   : > { %p9458_p5 = pnand %p9456_p0, %p10025_p2  ;;  %p9464_p8 = scmp.lt.s32.totalorder %s9462_s3, %s9455_s2 }
  0x61   : > { %p9459_p11 = pneg %p9458_p5  ;;  %p9465_p1 = por %p9464_p8, %p9463_p6 }
  0x63   : > { %p9466_p4 = pnand %p9465_p1, %p9459_p11 }
  0x65   : > { %9469 = shalt.err (!%p9466_p4)
}
  0x66   : > { %8350 = dma.hbm_to_vmem [thread:$0]  (!%p10006_p13), %s10015_s27, 192, %s10017_s16, %s10019_s8  }
  0x67   : > { %s8161_s29 = sshll.u32 %s9754_s30, 6  ;;  %s11818_s11 = sshll.u32 %s10003_s9, 2 }
  0x68   : > { %s869_s12 = scalar_lea.vmem [#allocation9], %s11818_s11  ;;  %s11819_s20 = sld [smem:[#allocation48_spill]] }
  0x69   : > { %s877_s7 = sshll.u32 %s869_s12, 4  ;;  %s878_s7 = int_to_ptr.vmem [resolvable:$true] %s877_s7 }
  0x6e   : > { %s875_s2 = scalar_lea.hbm %s11819_s20, %s8161_s29  ;;  %s9475_s17 = scalar_lea.hbm %s11819_s20, 128 }
  0x6f   : > { %s9470_s6 = scalar_lea.hbm %s875_s2, 64  ;;  %p9476_p3 = scmp.lt.u32.totalorder %s875_s2, %s11819_s20 }
  0x70   : > { %p9471_p6 = scmp.ne.s32.totalorder %s875_s2, %s9470_s6  ;;  %p9477_p7 = scmp.lt.u32.totalorder %s9475_s17, %s9470_s6 }
  0x71   : > { %p9479_p10 = scmp.lt.u32.totalorder %s9470_s6, %s875_s2 }
  0x72   : > { %p9473_p8 = pnand %p9471_p6, %p10025_p2  ;;  %p9478_p9 = por %p9477_p7, %p9476_p3 }
  0x74   : > { %p9474_p11 = pneg %p9473_p8  ;;  %p9480_p12 = por %p9479_p10, %p9478_p9 }
  0x76   : > { %p9481_p0 = pnand %p9480_p12, %p9474_p11 }
  0x78   : > { %9484 = shalt.err (!%p9481_p0)
}
  0x79   : > { %s9485_s14 = scalar_lea.vmem %s878_s7, 64  ;;  %s9758_s15 = smov [#allocation9]  }
  0x7a   : > { %p9486_p5 = scmp.ne.s32.totalorder %s878_s7, %s9485_s14  ;;  %s9490_s27 = sshll.u32 %s9758_s15, 4  ;;  %s9491_s27 = int_to_ptr.vmem [resolvable:$false] %s9490_s27 }
  0x7b   : > { %s9492_s13 = scalar_lea.vmem %s9491_s27, 128  ;;  %p9493_p6 = scmp.lt.s32.totalorder %s878_s7, %s9491_s27 }
  0x7c   : > { %p9488_p1 = pnand %p9486_p5, %p10025_p2  ;;  %p9494_p8 = scmp.lt.s32.totalorder %s9492_s13, %s9485_s14 }
  0x7e   : > { %p9489_p4 = pneg %p9488_p1  ;;  %p9495_p13 = por %p9494_p8, %p9493_p6 }
  0x80   : > { %p9496_p3 = pnand %p9495_p13, %p9489_p4 }
  0x82   : > { %9499 = shalt.err (!%p9496_p3)
}
  0x83   : > { %p11820_p7 = scmp.ne.s32.totalorder %s11815_s5, 0  ;;  %s9759_s17 = smov [#allocation6]  }
  0x84   : > { %s738_s18 = sshll.u32 %s9759_s17, 4  ;;  %s9760_s29 = smov [#allocation13]   ;;  %s739_s18 = int_to_ptr.vmem [resolvable:$true] %s738_s18 }
  0x85   : > { %8353 = dma.hbm_to_vmem [thread:$0]  (!%p11820_p7), %s875_s2, 64, %s878_s7, %s10019_s8  }
  0x86   : > { %s765_s11 = sshll.u32 %s9760_s29, 4  ;;  %s11821_s3 = sld [smem:[#allocation39_spill]]  ;;  %s10068_s11 = int_to_ptr.vmem [resolvable:$true] %s765_s11 }
  0x87   : > { %p11822_p11 = scmp.ne.s32.totalorder %s11810_s19, 0 }
  0x8c   : > { %s9500_s16 = scalar_lea.hbm %s11821_s3, 32 }
  0x8d   : > { %p9501_p13 = scmp.ne.s32.totalorder %s11821_s3, %s9500_s16  ;;  %p9507_p12 = scmp.lt.u32.totalorder %s9500_s16, %s11821_s3 }
  0x8f   : > { %p9503_p9 = pnand %p9501_p13, %p11822_p11 }
  0x91   : > { %p9504_p10 = pneg %p9503_p9 }
  0x93   : > { %p9509_p0 = pnand %p9507_p12, %p9504_p10 }
  0x95   : > { %9512 = shalt.err (!%p9509_p0)
}
  0x96   : > { %s9513_s2 = scalar_lea.vmem %s739_s18, 32  ;;  %p9521_p6 = scmp.lt.s32.totalorder %s739_s18, %s739_s18 }
  0x97   : > { %p9514_p5 = scmp.ne.s32.totalorder %s739_s18, %s9513_s2  ;;  %p9522_p8 = scmp.lt.s32.totalorder %s9513_s2, %s9513_s2 }
  0x99   : > { %p9516_p1 = pnand %p9514_p5, %p11822_p11  ;;  %p9523_p3 = por %p9522_p8, %p9521_p6 }
  0x9b   : > { %p9517_p4 = pneg %p9516_p1 }
  0x9d   : > { %p9524_p7 = pnand %p9523_p3, %p9517_p4 }
  0x9f   : > { %9527 = shalt.err (!%p9524_p7)
}
  0xa0   : > { %p11823_p13 = scmp.ne.s32.totalorder %s11807_s10, 0  ;;  %s11824_s24 = sld [smem:[#allocation52_spill]] }
  0xa2   : > { %8334 = dma.hbm_to_vmem [thread:$0]  (!%p11823_p13), %s11821_s3, 32, %s739_s18, [#allocation7]  }
  0xa6   : > { %s9528_s6 = scalar_lea.hbm %s11824_s24, 64 }
  0xa7   : > { %p9529_p9 = scmp.ne.s32.totalorder %s11824_s24, %s9528_s6  ;;  %p9535_p7 = scmp.lt.u32.totalorder %s9528_s6, %s11824_s24 }
  0xa9   : > { %p9531_p10 = pnand %p9529_p9, %p11822_p11 }
  0xab   : > { %p9532_p12 = pneg %p9531_p10 }
  0xad   : > { %p9537_p0 = pnand %p9535_p7, %p9532_p12 }
  0xaf   : > { %9540 = shalt.err (!%p9537_p0)
}
  0xb0   : > { %s9541_s18 = scalar_lea.vmem %s10068_s11, 64  ;;  %p9549_p6 = scmp.lt.s32.totalorder %s10068_s11, %s10068_s11 }
  0xb1   : > { %p9542_p5 = scmp.ne.s32.totalorder %s10068_s11, %s9541_s18  ;;  %p9550_p8 = scmp.lt.s32.totalorder %s9541_s18, %s9541_s18 }
  0xb3   : > { %p9544_p1 = pnand %p9542_p5, %p11822_p11  ;;  %p9551_p3 = por %p9550_p8, %p9549_p6 }
  0xb5   : > { %p9545_p4 = pneg %p9544_p1 }
  0xb7   : > { %p9552_p9 = pnand %p9551_p3, %p9545_p4 }
  0xb9   : > { %9555 = shalt.err (!%p9552_p9)
}
  0xba   : > { %8340 = dma.hbm_to_vmem [thread:$0]  (!%p11823_p13), %s11824_s24, 64, %s10068_s11, [#allocation14]  }
  0xbb   : > { %s7531_s13 = sshll.u32 %s10003_s9, 9  ;;  %s8162_s17 = sshll.u32 %s9754_s30, 13 }
  0xbc   : > { %s11825_s21 = sld [smem:[#allocation49_spill]]  ;;  %s888_s16 = scalar_lea.vmem [#allocation10], %s7531_s13 }
  0xbd   : > { %s895_s14 = sshll.u32 %s888_s16, 4  ;;  %s10118_s14 = int_to_ptr.vmem [resolvable:$true] %s895_s14 }
  0xc2   : > { %s10116_s6 = scalar_lea.hbm %s11825_s21, %s8162_s17  ;;  %s9561_s18 = scalar_lea.hbm %s11825_s21, 16384 }
  0xc3   : > { %s9556_s15 = scalar_lea.hbm %s10116_s6, 8192  ;;  %p9562_p0 = scmp.lt.u32.totalorder %s10116_s6, %s11825_s21 }
  0xc4   : > { %p9557_p10 = scmp.ne.s32.totalorder %s10116_s6, %s9556_s15  ;;  %p9563_p5 = scmp.lt.u32.totalorder %s9561_s18, %s9556_s15 }
  0xc5   : > { %p9565_p4 = scmp.lt.u32.totalorder %s9556_s15, %s10116_s6 }
  0xc6   : > { %p9559_p12 = pnand %p9557_p10, %p10025_p2  ;;  %p9564_p1 = por %p9563_p5, %p9562_p0 }
  0xc8   : > { %p9560_p7 = pneg %p9559_p12  ;;  %p9566_p6 = por %p9565_p4, %p9564_p1 }
  0xca   : > { %p9567_p8 = pnand %p9566_p6, %p9560_p7 }
  0xcc   : > { %9570 = shalt.err (!%p9567_p8)
}
  0xcd   : > { %s9571_s13 = scalar_lea.vmem %s10118_s14, 8192  ;;  %s9761_s17 = smov [#allocation10]  }
  0xce   : > { %p9572_p3 = scmp.ne.s32.totalorder %s10118_s14, %s9571_s13  ;;  %s9576_s29 = sshll.u32 %s9761_s17, 4  ;;  %s9577_s29 = int_to_ptr.vmem [resolvable:$false] %s9576_s29 }
  0xcf   : > { %s9578_s12 = scalar_lea.vmem %s9577_s29, 16384  ;;  %p9579_p12 = scmp.lt.s32.totalorder %s10118_s14, %s9577_s29 }
  0xd0   : > { %p9574_p9 = pnand %p9572_p3, %p10025_p2  ;;  %p9580_p13 = scmp.lt.s32.totalorder %s9578_s12, %s9571_s13 }
  0xd2   : > { %p9575_p10 = pneg %p9574_p9  ;;  %p9581_p0 = por %p9580_p13, %p9579_p12 }
  0xd4   : > { %p9582_p5 = pnand %p9581_p0, %p9575_p10 }
  0xd6   : > { %9585 = shalt.err (!%p9582_p5)
}
  0xd7   : > { %s9762_s16 = smov 128   ;;  %s9763_s15 = smov 8  }
  0xd8   : > { %p11826_p7 = scmp.ne.s32.totalorder %s11815_s5, 0  ;;  %s9764_s11 = smov [#allocation12]  }
  0xd9   : > { %s751_s27 = sshll.u32 %s9764_s11, 4  ;;  %s11827_s23 = sld [smem:[#allocation51_spill]]  ;;  %s752_s27 = int_to_ptr.vmem [resolvable:$true] %s751_s27 }
  0xda   : > { %8356 = dma.hbm_to_vmem [thread:$0]  (!%p11826_p7), %s10116_s6, 8192, %s10118_s14, %s10019_s8, %s9762_s16, %s9762_s16, %s9763_s15  }
  0xdf   : > { %s9586_s2 = scalar_lea.hbm %s11827_s23, 8192 }
  0xe0   : > { %p9587_p13 = scmp.ne.s32.totalorder %s11827_s23, %s9586_s2  ;;  %p9593_p6 = scmp.lt.u32.totalorder %s9586_s2, %s11827_s23 }
  0xe2   : > { %p9589_p1 = pnand %p9587_p13, %p11822_p11 }
  0xe4   : > { %p9590_p4 = pneg %p9589_p1 }
  0xe6   : > { %p9595_p8 = pnand %p9593_p6, %p9590_p4 }
  0xe8   : > { %9598 = shalt.err (!%p9595_p8)
}
  0xe9   : > { %s9599_s6 = scalar_lea.vmem %s752_s27, 8192  ;;  %p9607_p12 = scmp.lt.s32.totalorder %s752_s27, %s752_s27 }
  0xea   : > { %p9600_p3 = scmp.ne.s32.totalorder %s752_s27, %s9599_s6  ;;  %p9608_p0 = scmp.lt.s32.totalorder %s9599_s6, %s9599_s6 }
  0xec   : > { %p9602_p9 = pnand %p9600_p3, %p11822_p11  ;;  %p9609_p5 = por %p9608_p0, %p9607_p12 }
  0xee   : > { %p9603_p10 = pneg %p9602_p9 }
  0xf0   : > { %p9610_p7 = pnand %p9609_p5, %p9603_p10 }
  0xf2   : > { %9613 = shalt.err (!%p9610_p7)
}
  0xf3   : > { %s9765_s14 = smov 256   ;;  %s9766_s16 = smov 16  }
  0xf4   : > { %p11828_p13 = scmp.ne.s32.totalorder %s11807_s10, 0  ;;  %s9767_s18 = smov [#allocation15]  }
  0xf5   : > { %s775_s7 = sshll.u32 %s9767_s18, 4  ;;  %s9614_s17 = scalar_lea.hbm %s11745_s25, 2048  ;;  %s776_s7 = int_to_ptr.vmem [resolvable:$true] %s775_s7 }
  0xf6   : > { %8337 = dma.hbm_to_vmem [thread:$0]  (!%p11828_p13), %s11827_s23, 8192, %s752_s27, [#allocation7], %s9765_s14, %s9765_s14, %s9766_s16  }
  0xf7   : > { %p9615_p7 = scmp.ne.s32.totalorder %s11745_s25, %s9614_s17  ;;  %p9621_p6 = scmp.lt.u32.totalorder %s9614_s17, %s11745_s25 }
  0xf9   : > { %p9617_p1 = pnand %p9615_p7, %p11822_p11 }
  0xfb   : > { %p9618_p4 = pneg %p9617_p1 }
  0xfd   : > { %p9623_p8 = pnand %p9621_p6, %p9618_p4 }
  0xff   : > { %9626 = shalt.err (!%p9623_p8)
}
 0x100   : > { %s9627_s27 = scalar_lea.vmem %s776_s7, 2048  ;;  %p9635_p12 = scmp.lt.s32.totalorder %s776_s7, %s776_s7 }
 0x101   : > { %p9628_p3 = scmp.ne.s32.totalorder %s776_s7, %s9627_s27  ;;  %p9636_p0 = scmp.lt.s32.totalorder %s9627_s27, %s9627_s27 }
 0x103   : > { %p9630_p9 = pnand %p9628_p3, %p11822_p11  ;;  %p9637_p5 = por %p9636_p0, %p9635_p12 }
 0x105   : > { %p9631_p10 = pneg %p9630_p9 }
 0x107   : > { %p9638_p2 = pnand %p9637_p5, %p9631_p10 }
 0x109   : > { %9641 = shalt.err (!%p9638_p2)
}
 0x10a   : > { %s9768_s14 = smov 64   ;;  %s9769_s3 = smov 4  }
 0x10b   : > { %8343 = dma.hbm_to_vmem [thread:$0]  (!%p11828_p13), %s11745_s25, 2048, %s776_s7, [#allocation14], %s9768_s14, %s9768_s14, %s9769_s3  }
 0x10c   : > { %s7534_s11 = sshll.u32 %s10003_s9, 1  ;;  %s9770_s18 = smov [#allocation16]  }
 0x10d   : > { %s789_s2 = sshll.u32 %s9770_s18, 4  ;;  %s8163_s13 = sshll.u32 %s9754_s30, 5  ;;  %s790_s2 = int_to_ptr.vmem [resolvable:$true] %s789_s2 }
 0x10e   : > { %s9642_s12 = scalar_lea.hbm %s11746_s26, 16 }
 0x10f   : > { %p9643_p2 = scmp.ne.s32.totalorder %s11746_s26, %s9642_s12  ;;  %p9649_p4 = scmp.lt.u32.totalorder %s9642_s12, %s11746_s26 }
 0x111   : > { %p9645_p7 = pnand %p9643_p2, %p11822_p11 }
 0x113   : > { %p9646_p1 = pneg %p9645_p7 }
 0x115   : > { %p9651_p6 = pnand %p9649_p4, %p9646_p1 }
 0x117   : > { %9654 = shalt.err (!%p9651_p6)
}
 0x118   : > { %s9655_s9 = scalar_lea.vmem %s790_s2, 16  ;;  %s9662_s30 = scalar_lea.vmem %s790_s2, 32 }
 0x119   : > { %p9656_p8 = scmp.ne.s32.totalorder %s790_s2, %s9655_s9  ;;  %p9663_p10 = scmp.lt.s32.totalorder %s790_s2, %s790_s2 }
 0x11a   : > { %p9664_p12 = scmp.lt.s32.totalorder %s9662_s30, %s9655_s9 }
 0x11b   : > { %p9658_p3 = pnand %p9656_p8, %p11822_p11 }
 0x11c   : > { %p9665_p0 = por %p9664_p12, %p9663_p10 }
 0x11d   : > { %p9659_p9 = pneg %p9658_p3 }
 0x11f   : > { %p9666_p5 = pnand %p9665_p0, %p9659_p9 }
 0x121   : > { %9669 = shalt.err (!%p9666_p5)
}
 0x122   : > { %8346 = dma.hbm_to_vmem [thread:$0]  (!%p11828_p13), %s11746_s26, 16, %s790_s2, [#allocation17]  }
 0x123   : > { %s11829_s22 = sld [smem:[#allocation50_spill]]  ;;  %s909_s19 = scalar_lea.vmem [#allocation11], %s7534_s11 }
 0x124   : > { %s917_s16 = sshll.u32 %s909_s19, 4  ;;  %p11830_p2 = scmp.ne.s32.totalorder %s11817_s1, 0  ;;  %s918_s16 = int_to_ptr.vmem [resolvable:$true] %s917_s16 }
 0x129   : > { %s10201_s3 = scalar_lea.hbm %s11829_s22, %s8163_s13  ;;  %s9675_s2 = scalar_lea.hbm %s11829_s22, 64 }
 0x12a   : > { %s9670_s15 = scalar_lea.hbm %s10201_s3, 32  ;;  %p9676_p13 = scmp.lt.u32.totalorder %s10201_s3, %s11829_s22 }
 0x12b   : > { %p9671_p11 = scmp.ne.s32.totalorder %s10201_s3, %s9670_s15  ;;  %p9677_p4 = scmp.lt.u32.totalorder %s9675_s2, %s9670_s15 }
 0x12c   : > { %p9679_p8 = scmp.lt.u32.totalorder %s9670_s15, %s10201_s3 }
 0x12d   : > { %p9673_p7 = pnand %p9671_p11, %p11830_p2  ;;  %p9678_p6 = por %p9677_p4, %p9676_p13 }
 0x12f   : > { %p9674_p1 = pneg %p9673_p7  ;;  %p9680_p3 = por %p9679_p8, %p9678_p6 }
 0x131   : > { %p9681_p9 = pnand %p9680_p3, %p9674_p1 }
 0x133   : > { %9684 = shalt.err (!%p9681_p9)
}
 0x134   : > { %s9685_s11 = scalar_lea.vmem %s918_s16, 32  ;;  %s9771_s13 = smov [#allocation11]  }
 0x135   : > { %p9686_p10 = scmp.ne.s32.totalorder %s918_s16, %s9685_s11  ;;  %s9690_s12 = sshll.u32 %s9771_s13, 4  ;;  %s9691_s12 = int_to_ptr.vmem [resolvable:$false] %s9690_s12 }
 0x136   : > { %s9692_s6 = scalar_lea.vmem %s9691_s12, 64  ;;  %p9693_p5 = scmp.lt.s32.totalorder %s918_s16, %s9691_s12 }
 0x137   : > { %p9688_p12 = pnand %p9686_p10, %p11830_p2  ;;  %p9694_p11 = scmp.lt.s32.totalorder %s9692_s6, %s9685_s11 }
 0x139   : > { %p9689_p0 = pneg %p9688_p12  ;;  %p9695_p7 = por %p9694_p11, %p9693_p5 }
 0x13b   : > { %p9696_p4 = pnand %p9695_p7, %p9689_p0 }
 0x13d   : > { %9699 = shalt.err (!%p9696_p4)
}
 0x13e   : > { %p11831_p13 = scmp.ne.s32.totalorder %s11815_s5, 0  ;;  %p11832_p1 = scmp.ne.s32.totalorder %s11806_s0, 0 }
 0x13f   : > { %p11833_p2 = scmp.eq.s32.totalorder (!%p11832_p1), %s9938_s28, 0 }
 0x140   : > { %8359 = dma.hbm_to_vmem [thread:$0]  (!%p11831_p13), %s10201_s3, 32, %s918_s16, %s10019_s8  }
 0x141   : > { %926 = sbr.rel (%p11832_p1) target bundleno = 4540 (0x11bc), region = 128 }
 0x148   : > { %9717 = dma.done.wait (%p11833_p2), [#allocation5], 32   ;;  %p11834_p6 = pmov %p11833_p2 }
 0x149   : > { %p11835_p8 = pmov %p11833_p2 }
 0x14a   : > { %9719 = vsyncadd (%p11834_p6), [#allocation5], 4294967264 }
 0x14b   : > { %9721 = dma.done.wait (%p11835_p8), [#allocation7], 32   ;;  %p11836_p3 = pmov %p11833_p2 }
 0x14c   : > { %s11837_s5 = sld [smem:[#allocation27_spill]]  ;;  %s936_s1 = sand.u32 1, %s9938_s28  }
 0x14d   : > { %9723 = vsyncadd (%p11836_p3), [#allocation7], 4294967264  ;;  %s938_s8 = sand.u32 1, %s9746_s4   ;;  %s937_s0 = scalar_lea.sflag [#allocation5], %s936_s1 }
 0x14e   : > { %s8292_s27 = smul.u32 12, %s938_s8 }
 0x150   : > { %s10233_s9 = scalar_lea.vmem [#allocation8], %s8292_s27 }
 0x152   : > { %p11838_p9 = scmp.ne.s32.totalorder %s11837_s5, 0 }
 0x154   : > { %9725 = dma.done.wait (%p11838_p9), %s937_s0, 8480  }
 0x155   : > { %9727 = vsyncadd (%p11838_p9), %s937_s0, 4294958816  ;;  %s7540_s30 = sshll.u32 %s938_s8, 2  ;;  %s7541_s7 = sshll.u32 %s938_s8, 9 }
 0x156   : > { %s7542_s14 = sshll.u32 %s938_s8, 1  ;;  %s10239_s20 = scalar_lea.vmem [#allocation9], %s7540_s30 }
 0x157   : > { %s10241_s21 = scalar_lea.vmem [#allocation10], %s7541_s7  ;;  %s10243_s3 = scalar_lea.vmem [#allocation11], %s7542_s14 }
 0x158   : > { %p11839_p10 = pmov %p11833_p2 }
 0x159   : > { %p11840_p12 = pmov %p11833_p2 }
 0x15a   : > { %9729 = dma.done.wait (%p11839_p10), [#allocation7], 8192  }
 0x15b   : > { %9731 = vsyncadd (%p11840_p12), [#allocation7], 4294959104  ;;  %p11841_p0 = pmov %p11833_p2 }
 0x15d   : > { %9733 = dma.done.wait (%p11841_p0), [#allocation14], 2112   ;;  %p11842_p5 = pmov %p11841_p0 }
 0x15e   : > { %p11843_p11 = pmov %p11841_p0 }
 0x15f   : > { %9735 = vsyncadd (%p11842_p5), [#allocation14], 4294965184 }
 0x160   : > { %9737 = dma.done.wait (%p11843_p11), [#allocation17], 16   ;;  %p11844_p7 = pmov %p11841_p0 }
 0x161   : > { %p1092_p4 = scmp.lt.s32.totalorder %s9938_s28, 1  ;;  %s11845_s17 = sld [smem:[#allocation45_spill]] }
 0x162   : > { %9739 = vsyncadd (%p11844_p7), [#allocation17], 4294967280  ;;  %s11846_s12 = sld [smem:[#allocation41_spill]]  ;;  %s11847_s27 = sld [smem:[#allocation43_spill]] }
 0x163   : > { %s1093_s19 = scalar_select %p1092_p4, %s9938_s28, 1 }
 0x164   : > { %s11848_s22 = sld [smem:[#allocation44_spill]]  ;;  %s11849_s2 = sld [smem:[#allocation46_spill]] }
 0x165   : > { %s8293_s16 = smul.u32 1536, %s1093_s19  ;;  %s8164_s15 = sshll.u32 %s1093_s19, 8 }
 0x166   : > { %s8294_s10 = smul.u32 768, %s1093_s19  ;;  %s7551_s30 = sshll.u32 %s1093_s19, 1 }
 0x167   : > { %s10262_s29 = scalar_lea.vmem %s11845_s17, %s8164_s15  ;;  %s8295_s5 = smul.u32 6, %s1093_s19 }
 0x168   : > { %s10267_s6 = scalar_lea.vmem %s11846_s12, %s8293_s16  ;;  %s10272_s0 = scalar_lea.vmem %s11847_s27, %s8294_s10 }
 0x169   : > { %s8165_s11 = sshll.u32 %s1093_s19, 9  ;;  %s11850_s12 = sld [smem:[#allocation47_spill]] }
 0x16a   : > { %s10277_s23 = scalar_lea.vmem %s11848_s22, %s8295_s5  ;;  %s10282_s17 = scalar_lea.vmem %s11849_s2, %s7551_s30 }
 0x16b   : > { %p11851_p13 = scmp.ne.s32.totalorder %s9938_s28, 0 }
 0x16c   : > { %s11852_s8 = sld [smem:[#allocation30_spill]] (!%p11851_p13)  ;;  %v9772_v1 = vmov (!%p11851_p13), 0   ;;  %s11854_s30 = sld [smem:[#allocation31_spill]] (!%p11851_p13)  ;;  %vm1235_vm0 = vcmask (!%p11851_p13), 523264  }
 0x16d   : > { %1124 = sbr.rel (%p11851_p13) target bundleno = 1037 (0x40d), region = 172  ;;  %8422 = vset.pattern.permute.xlu0 (!%p11851_p13), %v9772_v1  ;;  %8423 = vset.pattern.permute.xlu1 (!%p11851_p13), %v9772_v1  ;;  %s11856_s2 = sld [smem:[#allocation32_spill]] (!%p11851_p13) }
 0x16e   : > { %1274 = vmatprep.mubr.bf16.mxu1 (!%p11851_p13), %v9772_v1  ;;  %s11857_s10 = sld [smem:[#allocation36_spill]] (!%p11851_p13)  ;;  %s11859_s18 = sld [smem:[#allocation29_spill]] (!%p11851_p13) }
 0x16f   : > { %s10287_s24 = scalar_lea.vmem %s11850_s12, %s8165_s11  ;;  %s11858_s22 = sld [smem:[#allocation28_spill]] (!%p11851_p13) }
 0x170   : > { %s11860_s1 = sld [smem:[#allocation35_spill]] (!%p11851_p13)  ;;  %s11863_s5 = sld [smem:[#allocation33_spill]] (!%p11851_p13) }
 0x171   : > { %s11864_s7 = sld [smem:[#allocation34_spill]] (!%p11851_p13)  ;;  %s11866_s19 = sld [smem:[#allocation40_spill]] (!%p11851_p13) }
 0x172   : > { %s11853_s27 = smov (!%p11851_p13), %s11852_s8  ;;  %v7555_v0 = vld [vmem:[%s11852_s8] ss:$0 sm:$0xff] (!%p11851_p13)  ;;  %s11855_s14 = smov (!%p11851_p13), %s11854_s30 }
 0x173   : > { %v7557_v2 = vld [vmem:[%s11854_s30] ss:$0 sm:$0xff] (!%p11851_p13)  ;;  %v7556_v3 = vld [vmem:[%s11853_s27 + $0x1] ss:$0 sm:$0xff] (!%p11851_p13)  ;;  %1142 = vperm.xlu0 (!%p11851_p13), %8422, %v7555_v0   ;;  %v8424_v4 = vld [vmem:[%s11856_s2 + $0x4] ss:$8 sps:$4 sm:$0xff] (!%p11851_p13)  }
 0x174   : > { %1146 = vperm.xlu1 %8423, %v7556_v3   ;;  %v8426_v5 = vld [vmem:[%s11856_s2] ss:$8 sps:$4 sm:$0xff]   ;;  %v8427_v7 = vld [vmem:[%s11856_s2 + $0x14] ss:$8 sps:$4 sm:$0xff]   ;;  %1242 = vmatprep.subr.bf16.mxu1 %v8424_v4  ;;  %v8429_v8 = vld [vmem:[%s11856_s2 + $0x10] ss:$8 sps:$4 sm:$0xff]  }
 0x175   : > { %v7558_v6 = vld [vmem:[%s11855_s14 + $0x1] ss:$0 sm:$0xff]  ;;  %1243 = vmatpush1.bf16.msra.mxu1 %v8426_v5  ;;  %v8430_v9 = vld [vmem:[%s11856_s2 + $0x24] ss:$8 sps:$4 sm:$0xff]   ;;  %v8433_v11 = vld [vmem:[%s11856_s2 + $0x34] ss:$8 sps:$4 sm:$0xff]  }
 0x176   : > { %1244 = vmatprep.subr.bf16.mxu1 %v8427_v7  ;;  %v8432_v10 = vld [vmem:[%s11856_s2 + $0x20] ss:$8 sps:$4 sm:$0xff]   ;;  %v8435_v12 = vld [vmem:[%s11856_s2 + $0x30] ss:$8 sps:$4 sm:$0xff]   ;;  %v8438_v13 = vld [vmem:[%s11857_s10 + $0x4] ss:$8 sps:$4 sm:$0xff]  }
 0x177   : > { %1170 = vperm.xlu0 %8422, %v7557_v2   ;;  %v1127_v16 = vld [vmem:[%s11858_s22] sm:$0xff]  ;;  %v1128_v17 = vld [vmem:[%s11858_s22 + $0x8] sm:$0xff]  ;;  %v1129_v20 = vld [vmem:[%s11858_s22 + $0x10] sm:$0xff]  ;;  %s11861_s30 = sld [smem:[#allocation38_spill]]  ;;  %s11865_s15 = smov %s11864_s7 }
 0x178   : > { %1174 = vperm.xlu1 %8423, %v7558_v6   ;;  %v1155_v18 = vld [vmem:[%s11859_s18] sm:$0xff]  ;;  %v1156_v19 = vld [vmem:[%s11859_s18 + $0x8] sm:$0xff]  ;;  %v1130_v21 = vld [vmem:[%s11858_s22 + $0x18] sm:$0xff] }
 0x179   : > { %1245 = vmatpush1.bf16.msra.mxu1 %v8429_v8  ;;  %v1157_v23 = vld [vmem:[%s11859_s18 + $0x10] sm:$0xff]  ;;  %v1158_v24 = vld [vmem:[%s11859_s18 + $0x18] sm:$0xff]  ;;  %v8436_v36 = vld [vmem:[%s11857_s10] ss:$8 sps:$4 sm:$0xff]  }
 0x17a   : > { %1246 = vmatprep.subr.bf16.mxu1 %v8430_v9  ;;  %v8441_v38 = vld [vmem:[%s11857_s10 + $0x14] ss:$8 sps:$4 sm:$0xff]   ;;  %v8439_v41 = vld [vmem:[%s11857_s10 + $0x10] ss:$8 sps:$4 sm:$0xff]   ;;  %v8444_v42 = vld [vmem:[%s11857_s10 + $0x24] ss:$8 sps:$4 sm:$0xff]  }
 0x17b   : > { %v8442_v44 = vld [vmem:[%s11857_s10 + $0x20] ss:$8 sps:$4 sm:$0xff]   ;;  %v8447_v45 = vld [vmem:[%s11857_s10 + $0x34] ss:$8 sps:$4 sm:$0xff]   ;;  %v8445_v46 = vld [vmem:[%s11857_s10 + $0x30] ss:$8 sps:$4 sm:$0xff]  }
 0x17c   : > { %v8450_v47 = vld [vmem:[%s11857_s10 + $0x44] ss:$8 sps:$4 sm:$0xff]   ;;  %v8448_v48 = vld [vmem:[%s11857_s10 + $0x40] ss:$8 sps:$4 sm:$0xff]   ;;  %v8453_v49 = vld [vmem:[%s11857_s10 + $0x54] ss:$8 sps:$4 sm:$0xff]  }
 0x17d   : > { %1247 = vmatpush1.bf16.msra.mxu1 %v8432_v10  ;;  %v8451_v50 = vld [vmem:[%s11857_s10 + $0x50] ss:$8 sps:$4 sm:$0xff]   ;;  %v8456_v51 = vld [vmem:[%s11857_s10 + $0x64] ss:$8 sps:$4 sm:$0xff]   ;;  %v8454_v52 = vld [vmem:[%s11857_s10 + $0x60] ss:$8 sps:$4 sm:$0xff]   ;;  %s11862_s2 = smov %s11861_s30 }
 0x17e   : > { %1248 = vmatprep.subr.bf16.mxu1 %v8433_v11  ;;  %v8459_v53 = vld [vmem:[%s11857_s10 + $0x74] ss:$8 sps:$4 sm:$0xff]   ;;  %v8457_v54 = vld [vmem:[%s11857_s10 + $0x70] ss:$8 sps:$4 sm:$0xff]   ;;  %v1335_v55 = vld [vmem:[%s11860_s1] sm:$0x3] }
 0x17f   : > { %v1336_v56 = vpack.c.bf16 %v1335_v55, %v1335_v55  ;;  %v8460_v57 = vld [vmem:[%s11861_s30 + $0x4] ss:$8 sps:$4 sm:$0xff]   ;;  %v8462_v58 = vld [vmem:[%s11862_s2] ss:$8 sps:$4 sm:$0xff]   ;;  %v8463_v59 = vld [vmem:[%s11862_s2 + $0x14] ss:$8 sps:$4 sm:$0xff]  }
 0x180   : > { %1706 = vmatprep.subr.bf16.mxu0 %v8460_v57  ;;  %v8465_v60 = vld [vmem:[%s11862_s2 + $0x10] ss:$8 sps:$4 sm:$0xff]   ;;  %v8466_v61 = vld [vmem:[%s11862_s2 + $0x24] ss:$8 sps:$4 sm:$0xff]   ;;  %v8468_v62 = vld [vmem:[%s11862_s2 + $0x20] ss:$8 sps:$4 sm:$0xff]  }
 0x181   : > { %1249 = vmatpush1.bf16.msra.mxu1 %v8435_v12  ;;  %1707 = vmatpush1.bf16.msra.mxu0 %v8462_v58  ;;  %v8469_v63 = vld [vmem:[%s11862_s2 + $0x34] ss:$8 sps:$4 sm:$0xff]   ;;  %v8471_v0 = vld [vmem:[%s11862_s2 + $0x30] ss:$8 sps:$4 sm:$0xff]   ;;  %v8474_v2 = vld [vmem:[%s11862_s2 + $0x40] ss:$8 sps:$4 sm:$0xff]  }
 0x182   : > { %1445 = vmatprep.subr.bf16.mxu1 %v8438_v13  ;;  %1708 = vmatprep.subr.bf16.mxu0 %v8463_v59  ;;  %v8475_v3 = vld [vmem:[%s11862_s2 + $0x54] ss:$8 sps:$4 sm:$0xff]   ;;  %v8477_v4 = vld [vmem:[%s11862_s2 + $0x50] ss:$8 sps:$4 sm:$0xff]   ;;  %v8478_v5 = vld [vmem:[%s11862_s2 + $0x64] ss:$8 sps:$4 sm:$0xff]  }
 0x183   : > { %v8480_v6 = vld [vmem:[%s11862_s2 + $0x60] ss:$8 sps:$4 sm:$0xff]   ;;  %v8481_v7 = vld [vmem:[%s11862_s2 + $0x74] ss:$8 sps:$4 sm:$0xff]   ;;  %v8483_v8 = vld [vmem:[%s11862_s2 + $0x70] ss:$8 sps:$4 sm:$0xff]  }
 0x184   : > { %v8484_v9 = vld [vmem:[%s11862_s2 + $0x84] ss:$8 sps:$4 sm:$0xff]   ;;  %v8486_v10 = vld [vmem:[%s11862_s2 + $0x80] ss:$8 sps:$4 sm:$0xff]   ;;  %v8487_v11 = vld [vmem:[%s11862_s2 + $0x94] ss:$8 sps:$4 sm:$0xff]  }
 0x185   : > { %1709 = vmatpush1.bf16.msra.mxu0 %v8465_v60  ;;  %v8489_v12 = vld [vmem:[%s11862_s2 + $0x90] ss:$8 sps:$4 sm:$0xff]   ;;  %v8490_v13 = vld [vmem:[%s11862_s2 + $0xa4] ss:$8 sps:$4 sm:$0xff]   ;;  %v1353_v60 = vld [vmem:[#allocation4] sm:$0x3] }
 0x186   : > { %1710 = vmatprep.subr.bf16.mxu0 %v8466_v61 }
 0x189   : > { %1711 = vmatpush1.bf16.msra.mxu0 %v8468_v62 }
 0x18a   : > { %1712 = vmatprep.subr.bf16.mxu0 %v8469_v63 }
 0x18d   : > { %1713 = vmatpush1.bf16.msra.mxu0 %v8471_v0 }
 0x1f2   : > { %v1143_v14 = vpop.permute.xlu0 %1142 }
 0x1f3   : > { %v1147_v15 = vpop.permute.xlu1 %1146  ;;  %v1149_v26 = vmul.f32 %v1143_v14, %v1127_v16  ;;  %v1150_v27 = vmul.f32 %v1143_v14, %v1128_v17  ;;  %v8492_v14 = vld [vmem:[%s11862_s2 + $0xa0] ss:$8 sps:$4 sm:$0xff]   ;;  %v8495_v16 = vld [vmem:[%s11862_s2 + $0xb0] ss:$8 sps:$4 sm:$0xff]   ;;  %v8496_v17 = vld [vmem:[%s11862_s2 + $0xc4] ss:$8 sps:$4 sm:$0xff]  }
 0x1f4   : > { %v1151_v30 = vmul.f32 %v1147_v15, %v1129_v20  ;;  %v1152_v31 = vmul.f32 %v1147_v15, %v1130_v21  ;;  %v8493_v15 = vld [vmem:[%s11862_s2 + $0xb4] ss:$8 sps:$4 sm:$0xff]   ;;  %v8501_v20 = vld [vmem:[%s11862_s2 + $0xd0] ss:$8 sps:$4 sm:$0xff]   ;;  %v8502_v21 = vld [vmem:[%s11862_s2 + $0xe4] ss:$8 sps:$4 sm:$0xff]  }
 0x1f6   : > { %v1171_v22 = vpop.permute.xlu0 %1170 }
 0x1f7   : > { %v1175_v25 = vpop.permute.xlu1 %1174  ;;  %v1177_v28 = vmul.f32 %v1171_v22, %v1155_v18  ;;  %v1178_v29 = vmul.f32 %v1171_v22, %v1156_v19  ;;  %v8498_v18 = vld [vmem:[%s11862_s2 + $0xc0] ss:$8 sps:$4 sm:$0xff]   ;;  %v8499_v19 = vld [vmem:[%s11862_s2 + $0xd4] ss:$8 sps:$4 sm:$0xff]  }
 0x1f8   : > { %v1179_v34 = vmul.f32 %v1175_v25, %v1157_v23  ;;  %v1180_v35 = vmul.f32 %v1175_v25, %v1158_v24  ;;  %v8504_v22 = vld [vmem:[%s11862_s2 + $0xe0] ss:$8 sps:$4 sm:$0xff]   ;;  %v8505_v23 = vld [vmem:[%s11862_s2 + $0xf4] ss:$8 sps:$4 sm:$0xff]   ;;  %v8507_v24 = vld [vmem:[%s11862_s2 + $0xf0] ss:$8 sps:$4 sm:$0xff]   ;;  %v1297_v25 = vlaneseq }
 0x1f9   : > { %v1181_v32 = vadd.f32 %v1177_v28, %v1149_v26  ;;  %v1182_v33 = vadd.f32 %v1178_v29, %v1150_v27  ;;  %v1295_v28 = vld [vmem:[%s11863_s5] sm:$0x3] }
 0x1fa   : > { %v1183_v39 = vadd.f32 %v1179_v34, %v1151_v30  ;;  %v1184_v40 = vadd.f32 %v1180_v35, %v1152_v31  ;;  %v10505_v26 = vshrl.u32 %v1297_v25, 7 }
 0x1fb   : > { %v1185_v37 = vpack.c.bf16 %v1182_v33, %v1181_v32  ;;  %v1315_v33 = vld [vmem:[%s11864_s7] sm:$0xff] }
 0x1fc   : > { %v1186_v43 = vpack.c.bf16 %v1184_v40, %v1183_v39  ;;  %v10508_v27 = vsub.s32 0, %v10505_v26  ;;  %v10514_v29 = vsub.s32 1, %v10505_v26  ;;  %v1317_v39 = vld [vmem:[%s11865_s15 + $0x10] sm:$0xff] }
 0x1fd   : > { %7567 = vmatmul.mubr.msk.bf16.vlgmr.msra.gmra.mrb[0].mxu1 %vm1235_vm0, %v1185_v37 }
 0x1fe   : > { %1446 = vmatpush1.bf16.msra.mxu1 %v8436_v36  ;;  %1284 = vmatprep.mubr.bf16.mxu1 %v9772_v1  ;;  %v1300_v30 = vrot.slane %v1295_v28, %v10508_v27  ;;  %v1304_v31 = vrot.slane %v1295_v28, %v10514_v29  ;;  %v1316_v36 = vld [vmem:[%s11865_s15 + $0x8] sm:$0xff]  ;;  %v1358_v61 = vrot.slane %v1353_v60, %v10508_v27 }
 0x1ff   : > { %1447 = vmatprep.subr.bf16.mxu1 %v8441_v38  ;;  %v1362_v62 = vrot.slane %v1353_v60, %v10514_v29 }
 0x202   : > { %1448 = vmatpush1.bf16.msra.mxu1 %v8439_v41 }
 0x203   : > { %1449 = vmatprep.subr.bf16.mxu1 %v8444_v42 }
 0x205   : > { %7568 = vmatmul.mubr.msk.bf16.gmra.mrb[4].mxu1 %vm1235_vm0, %v1186_v43  ;;  %v1318_v43 = vld [vmem:[%s11865_s15 + $0x18] sm:$0xff] }
 0x206   : > { %1450 = vmatpush1.bf16.msra.mxu1 %v8442_v44  ;;  %1477 = vmatprep.mubr.bf16.mxu1 %v9772_v1  ;;  %v8472_v1 = vld [vmem:[%s11862_s2 + $0x44] ss:$8 sps:$4 sm:$0xff]  }
 0x207   : > { %1451 = vmatprep.subr.bf16.mxu1 %v8447_v45  ;;  %1714 = vmatprep.subr.bf16.mxu0 %v8472_v1 }
 0x208   : > { %1715 = vmatpush1.bf16.msra.mxu0 %v8474_v2 }
 0x209   : > { %1716 = vmatprep.subr.bf16.mxu0 %v8475_v3 }
 0x20a   : > { %1452 = vmatpush1.bf16.msra.mxu1 %v8445_v46 }
 0x20b   : > { %1453 = vmatprep.subr.bf16.mxu1 %v8450_v47 }
 0x20c   : > { %1717 = vmatpush1.bf16.msra.mxu0 %v8477_v4 }
 0x20d   : > { %1718 = vmatprep.subr.bf16.mxu0 %v8478_v5 }
 0x20e   : > { %1454 = vmatpush1.bf16.msra.mxu1 %v8448_v48 }
 0x20f   : > { %1455 = vmatprep.subr.bf16.mxu1 %v8453_v49 }
 0x210   : > { %1719 = vmatpush1.bf16.msra.mxu0 %v8480_v6 }
 0x211   : > { %1720 = vmatprep.subr.bf16.mxu0 %v8481_v7 }
 0x212   : > { %1456 = vmatpush1.bf16.msra.mxu1 %v8451_v50 }
 0x213   : > { %1457 = vmatprep.subr.bf16.mxu1 %v8456_v51 }
 0x214   : > { %1721 = vmatpush1.bf16.msra.mxu0 %v8483_v8 }
 0x215   : > { %1722 = vmatprep.subr.bf16.mxu0 %v8484_v9 }
 0x216   : > { %1458 = vmatpush1.bf16.msra.mxu1 %v8454_v52 }
 0x217   : > { %1459 = vmatprep.subr.bf16.mxu1 %v8459_v53 }
 0x218   : > { %1723 = vmatpush1.bf16.msra.mxu0 %v8486_v10 }
 0x219   : > { %1724 = vmatprep.subr.bf16.mxu0 %v8487_v11 }
 0x21a   : > { %1460 = vmatpush1.bf16.msra.mxu1 %v8457_v54 }
 0x21c   : > { %1725 = vmatpush1.bf16.msra.mxu0 %v8489_v12 }
 0x21d   : > { %1478 = vmatmul.mubr.bf16.vlgmr.msra.gmra.mrb[8].mxu1 %v1336_v56  ;;  %1726 = vmatprep.subr.bf16.mxu0 %v8490_v13 }
 0x220   : > { %1727 = vmatpush1.bf16.msra.mxu0 %v8492_v14 }
 0x221   : > { %1728 = vmatprep.subr.bf16.mxu0 %v8493_v15 }
 0x224   : > { %1729 = vmatpush1.bf16.msra.mxu0 %v8495_v16 }
 0x225   : > { %1730 = vmatprep.subr.bf16.mxu0 %v8496_v17  ;;  %v1534_v17 = vld [vmem:[#allocation6] sm:$0x3] }
 0x228   : > { %1731 = vmatpush1.bf16.msra.mxu0 %v8498_v18  ;;  %v1539_v18 = vrot.slane %v1534_v17, %v10508_v27 }
 0x229   : > { %1732 = vmatprep.subr.bf16.mxu0 %v8499_v19  ;;  %v7619_v19 = vld.sshfl [vmem:[%s11866_s19] sm:$0x33 pattern:$0x76325410] }
 0x22c   : > { %1733 = vmatpush1.bf16.msra.mxu0 %v8501_v20  ;;  %v1543_v20 = vrot.slane %v1534_v17, %v10514_v29  ;;  %v9773_v29 = vmov 1966171168  }
 0x22d   : > { %1734 = vmatprep.subr.bf16.mxu0 %v8502_v21 }
 0x230   : > { %1735 = vmatpush1.bf16.msra.mxu0 %v8504_v22  ;;  %v1756_v22 = vcombine.high %v7619_v19, %v7619_v19 }
 0x231   : > { %1736 = vmatprep.subr.bf16.mxu0 %v8505_v23 }
 0x234   : > { %1737 = vmatpush1.bf16.msra.mxu0 %v8507_v24 }
 0x2d0   : > { %v1276_v32 = vpop.f32.mrb[0].mxu1 }
 0x2d1   : > { %v1307_v34 = vadd.f32 %v1300_v30, %v1276_v32  ;;  %v1278_v35 = vpop.f32.mrb[1].mxu1 }
 0x2d2   : > { %v1308_v37 = vadd.f32 %v1304_v31, %v1278_v35  ;;  %v1280_v38 = vpop.f32.mrb[2].mxu1 }
 0x2d3   : > { %v1319_v40 = vadd.f32 %v1315_v33, %v1307_v34  ;;  %v1309_v41 = vadd.f32 %v1300_v30, %v1280_v38  ;;  %v1282_v42 = vpop.f32.mrb[3].mxu1  ;;  %v1781_v38 = vunpack.c.l.s4 %v9773_v29 }
 0x2d4   : > { %v1320_v44 = vadd.f32 %v1316_v36, %v1308_v37  ;;  %v1310_v45 = vadd.f32 %v1304_v31, %v1282_v42 }
 0x2d5   : > { %1327 = vst [vmem:[#allocation2] sm:$0xff] %v1319_v40  ;;  %v1321_v46 = vadd.f32 %v1317_v39, %v1309_v41 }
 0x2d6   : > { %1328 = vst [vmem:[#allocation2 + $0x8] sm:$0xff] %v1320_v44  ;;  %v1322_v47 = vadd.f32 %v1318_v43, %v1310_v45 }
 0x2d7   : > { %1329 = vst [vmem:[#allocation2 + $0x10] sm:$0xff] %v1321_v46 }
 0x2d8   : > { %1330 = vst [vmem:[#allocation2 + $0x18] sm:$0xff] %v1322_v47  ;;  %v1286_v48 = vpop.f32.mrb[4].mxu1 }
 0x2d9   : > { %v1311_v49 = vadd.f32 %v1300_v30, %v1286_v48  ;;  %v1288_v50 = vpop.f32.mrb[5].mxu1 }
 0x2da   : > { %v1312_v51 = vadd.f32 %v1304_v31, %v1288_v50  ;;  %v1290_v52 = vpop.f32.mrb[6].mxu1 }
 0x2db   : > { %v1323_v53 = vadd.f32 %v1315_v33, %v1311_v49  ;;  %v1313_v54 = vadd.f32 %v1300_v30, %v1290_v52  ;;  %v1292_v55 = vpop.f32.mrb[7].mxu1 }
 0x2dc   : > { %v1324_v56 = vadd.f32 %v1316_v36, %v1312_v51  ;;  %v1314_v57 = vadd.f32 %v1304_v31, %v1292_v55 }
 0x2dd   : > { %1331 = vst [vmem:[#allocation2 + $0x20] sm:$0xff] %v1323_v53  ;;  %v1325_v58 = vadd.f32 %v1317_v39, %v1313_v54  ;;  %v1782_v39 = vunpack.c.0.s8 %v1781_v38 }
 0x2de   : > { %1332 = vst [vmem:[#allocation2 + $0x28] sm:$0xff] %v1324_v56  ;;  %v1326_v59 = vadd.f32 %v1318_v43, %v1314_v57 }
 0x2df   : > { %1333 = vst [vmem:[#allocation2 + $0x30] sm:$0xff] %v1325_v58  ;;  %v1785_v44 = vsub.s32 %v1782_v39, %v10505_v26 }
 0x2e0   : > { %1334 = vst [vmem:[#allocation2 + $0x38] sm:$0xff] %v1326_v59 }
 0x2f0   : > { %v1479_v63 = vpop.f32.mrb[8].mxu1 }
 0x2f1   : > { %v1480_v0 = vadd.f32 %v1479_v63, %v1358_v61  ;;  %v1481_v1 = vpop.f32.mrb[9].mxu1 }
 0x2f2   : > { %v1482_v2 = vadd.f32 %v1481_v1, %v1362_v62  ;;  %v1483_v3 = vpop.f32.mrb[10].mxu1 }
 0x2f3   : > { %v7585_v4 = vmul.f32 -1.442695, %v1480_v0  ;;  %v1484_v5 = vpop.f32.mrb[11].mxu1 }
 0x2f4   : > { %v7586_v6 = vmul.f32 -1.442695, %v1482_v2 }
 0x2f5   : > { %8508 = vpow2.f32 %v7585_v4 }
 0x2f6   : > { %8510 = vpow2.f32 %v7586_v6 }
 0x2ff   : > { %v8509_v7 = vpop.eup %8508 }
 0x300   : > { %v8511_v8 = vpop.eup %8510  ;;  %v1492_v9 = vadd.f32 1.0, %v8509_v7 }
 0x301   : > { %v1493_v10 = vadd.f32 1.0, %v8511_v8 }
 0x302   : > { %8512 = vrcp.f32 %v1492_v9 }
 0x303   : > { %8514 = vrcp.f32 %v1493_v10 }
 0x30c   : > { %v8513_v11 = vpop.eup %8512 }
 0x30d   : > { %v8515_v12 = vpop.eup %8514  ;;  %v1498_v13 = vmul.f32 %v8513_v11, %v1480_v0 }
 0x30e   : > { %v1499_v14 = vmul.f32 %v8515_v12, %v1482_v2 }
 0x30f   : > { %v1500_v16 = vpack.c.bf16 %v1498_v13, %v1498_v13 }
 0x310   : > { %v1501_v15 = vpack.c.bf16 %v1499_v14, %v1499_v14 }
 0x312   : > { %1738 = vmatprep.mubr.bf16.mxu0 %v1501_v15 }
 0x313   : > { %1739 = vmatmul.mubr.bf16.vlgmr.msra.gmra.mrb[0].mxu0 %v1500_v16 }
 0x3e6   : > { %v1740_v21 = vpop.f32.mrb[0].mxu0 }
 0x3e7   : > { %v1741_v23 = vadd.f32 %v1740_v21, %v1539_v18  ;;  %v1742_v24 = vpop.f32.mrb[1].mxu0 }
 0x3e8   : > { %v1743_v25 = vadd.f32 %v1742_v24, %v1543_v20  ;;  %v1744_v28 = vpop.f32.mrb[2].mxu0 }
 0x3e9   : > { %v1759_v30 = vadd.f32 %v7619_v19, %v1741_v23  ;;  %v1745_v31 = vpop.f32.mrb[3].mxu0 }
 0x3ea   : > { %v1760_v32 = vadd.f32 %v1756_v22, %v1743_v25 }
 0x3eb   : > { %v7620_v33 = vmul.f32 -1.442695, %v1759_v30 }
 0x3ec   : > { %v7621_v34 = vmul.f32 -1.442695, %v1760_v32 }
 0x3ed   : > { %8516 = vpow2.f32 %v7620_v33 }
 0x3ee   : > { %8518 = vpow2.f32 %v7621_v34 }
 0x3f7   : > { %v8517_v27 = vpop.eup %8516 }
 0x3f8   : > { %v8519_v35 = vpop.eup %8518  ;;  %v1767_v36 = vadd.f32 1.0, %v8517_v27 }
 0x3f9   : > { %v1768_v37 = vadd.f32 1.0, %v8519_v35 }
 0x3fa   : > { %8520 = vrcp.f32 %v1767_v36 }
 0x3fb   : > { %8522 = vrcp.f32 %v1768_v37 }
 0x404   : > { %v8521_v40 = vpop.eup %8520 }
 0x405   : > { %v8523_v41 = vpop.eup %8522  ;;  %v1773_v42 = vmul.f32 %v8521_v40, %v1759_v30 }
 0x406   : > { %v1774_v43 = vmul.f32 %v8523_v41, %v1760_v32 }
 0x408   : > { %v7622_v45 = vpack.c.bf16 %v1774_v43, %v1773_v42 }
 0x40a   : > { %v1786_v46 = vrot.slane %v7622_v45, %v1785_v44 }
 0x40c   : > { %7623 = vst.sshfl [vmem:[#allocation3] sm:$0x5 pattern:$0x73625140] %v1786_v46 }
 0x40d PF: > { %v8524_v47 = vld [vmem:[%s10267_s6 + $0x4] ss:$48 sps:$4 sm:$0xff]   ;;  %v1797_v49 = vld [vmem:[#allocation2 + $0x8] sm:$0xff]  ;;  %v8526_v50 = vld [vmem:[%s10267_s6] ss:$48 sps:$4 sm:$0xff]   ;;  %v2001_v4 = vlaneseq  ;;  %vm9776_vm1 = vmmov 0  }
 0x40e   : > { %v1796_v48 = vld [vmem:[#allocation2] sm:$0xff]  ;;  %3046 = vmatprep.subr.bf16.mxu0 %v8524_v47  ;;  %v1801_v26 = vld [vmem:[#allocation2 + $0x28] sm:$0xff]  ;;  %v1798_v54 = vld [vmem:[#allocation2 + $0x10] sm:$0xff]  ;;  %v9774_v5 = vmov 1966171168   ;;  %vm4434_vm2 = vcmask 130048  }
 0x40f   : > { %v3446_v51 = vadd.f32 %v1797_v49, %v1796_v48  ;;  %v8527_v52 = vld [vmem:[%s10267_s6 + $0x64] ss:$48 sps:$4 sm:$0xff]   ;;  %3047 = vmatpush1.bf16.msra.mxu0 %v8526_v50  ;;  %v1799_v56 = vld [vmem:[#allocation2 + $0x18] sm:$0xff]  ;;  %v8529_v57 = vld [vmem:[%s10267_s6 + $0x60] ss:$48 sps:$4 sm:$0xff]   ;;  %v2071_v6 = vunpack.c.l.s4 %v9774_v5  ;;  %v10550_v9 = vshrl.u32 %v2001_v4, 7 }
 0x410   : > { %v1800_v53 = vld [vmem:[#allocation2 + $0x20] sm:$0xff]  ;;  %3048 = vmatprep.subr.bf16.mxu0 %v8527_v52  ;;  %v3449_v58 = vadd.f32 %v1799_v56, %v1798_v54  ;;  %v1802_v60 = vld [vmem:[#allocation2 + $0x30] sm:$0xff]  ;;  %v1803_v61 = vld [vmem:[#allocation2 + $0x38] sm:$0xff]  ;;  %p8077_p1 = scmp.ne.s32.totalorder %s9938_s28, 1 }
 0x411   : > { %3447 = vadd.xlane.f32.xlu0 %v3446_v51  ;;  %v3452_v55 = vadd.f32 %v1801_v26, %v1800_v53  ;;  %v8530_v59 = vld [vmem:[%s10267_s6 + $0xc4] ss:$48 sps:$4 sm:$0xff]   ;;  %v3455_v62 = vadd.f32 %v1803_v61, %v1802_v60  ;;  %v8532_v63 = vld [vmem:[%s10267_s6 + $0xc0] ss:$48 sps:$4 sm:$0xff]   ;;  %v2072_v10 = vunpack.c.0.s8 %v2071_v6  ;;  %v8620_v31 = vld [vmem:[%s10267_s6 + $0x1c] ss:$48 sps:$4 sm:$0xff]  }
 0x412   : > { %v8533_v0 = vld [vmem:[%s10267_s6 + $0x124] ss:$48 sps:$4 sm:$0xff]   ;;  %v8535_v1 = vld [vmem:[%s10267_s6 + $0x120] ss:$48 sps:$4 sm:$0xff]   ;;  %3169 = vmatprep.subr.bf16.mxu1 %v8620_v31  ;;  %v8625_v34 = vld [vmem:[%s10267_s6 + $0x18] ss:$48 sps:$4 sm:$0xff]  }
 0x413   : > { %3453 = vadd.xlane.f32.xlu1 %v3452_v55  ;;  %3049 = vmatpush1.bf16.msra.mxu0 %v8529_v57  ;;  %v8536_v2 = vld [vmem:[%s10267_s6 + $0x184] ss:$48 sps:$4 sm:$0xff]   ;;  %v8538_v3 = vld [vmem:[%s10267_s6 + $0x180] ss:$48 sps:$4 sm:$0xff]   ;;  %v10556_v14 = vsub.s32 %v2072_v10, %v10550_v9  ;;  %v8626_v27 = vld [vmem:[%s10267_s6 + $0x7c] ss:$48 sps:$4 sm:$0xff]  }
 0x414   : > { %3050 = vmatprep.subr.bf16.mxu0 %v8530_v59  ;;  %v8539_v7 = vld [vmem:[%s10267_s6 + $0x1e4] ss:$48 sps:$4 sm:$0xff]   ;;  %v8541_v8 = vld [vmem:[%s10267_s6 + $0x1e0] ss:$48 sps:$4 sm:$0xff]   ;;  %3170 = vmatpush1.bf16.msra.mxu1 %v8625_v34  ;;  %v8631_v36 = vld [vmem:[%s10267_s6 + $0x78] ss:$48 sps:$4 sm:$0xff]  }
 0x415   : > { %3450 = vadd.xlane.f32.xlu0 %v3449_v58  ;;  %v8542_v11 = vld [vmem:[%s10267_s6 + $0x244] ss:$48 sps:$4 sm:$0xff]   ;;  %v8544_v12 = vld [vmem:[%s10267_s6 + $0x240] ss:$48 sps:$4 sm:$0xff]   ;;  %3171 = vmatprep.subr.bf16.mxu1 %v8626_v27  ;;  %v8632_v37 = vld [vmem:[%s10267_s6 + $0xdc] ss:$48 sps:$4 sm:$0xff]  }
 0x416   : > { %v8545_v13 = vld [vmem:[%s10267_s6 + $0x2a4] ss:$48 sps:$4 sm:$0xff]   ;;  %v7624_v15 = vld.sshfl [vmem:[#allocation3] sm:$0x11 pattern:$0x75316420] }
 0x417   : > { %3456 = vadd.xlane.f32.xlu1 %v3455_v62  ;;  %3051 = vmatpush1.bf16.msra.mxu0 %v8532_v63  ;;  %v2069_v16 = vcombine.high %v7624_v15, %v7624_v15  ;;  %v8547_v17 = vld [vmem:[%s10267_s6 + $0x2a0] ss:$48 sps:$4 sm:$0xff]   ;;  %v8548_v19 = vld [vmem:[%s10267_s6 + $0x304] ss:$48 sps:$4 sm:$0xff]   ;;  %v8637_v38 = vld [vmem:[%s10267_s6 + $0xd8] ss:$48 sps:$4 sm:$0xff]   ;;  %v10591_v46 = vrot.slane %v7624_v15, %v10556_v14 }
 0x418   : > { %3052 = vmatprep.subr.bf16.mxu0 %v8533_v0  ;;  %v8550_v20 = vld [vmem:[%s10267_s6 + $0x300] ss:$48 sps:$4 sm:$0xff]   ;;  %v8551_v21 = vld [vmem:[%s10267_s6 + $0x364] ss:$48 sps:$4 sm:$0xff]   ;;  %3172 = vmatpush1.bf16.msra.mxu1 %v8631_v36  ;;  %v8638_v40 = vld [vmem:[%s10267_s6 + $0x13c] ss:$48 sps:$4 sm:$0xff]  }
 0x419   : > { %v10560_v18 = vrot.slane %v2069_v16, %v10556_v14  ;;  %v8553_v22 = vld [vmem:[%s10267_s6 + $0x360] ss:$48 sps:$4 sm:$0xff]   ;;  %v8554_v23 = vld [vmem:[%s10267_s6 + $0x3c4] ss:$48 sps:$4 sm:$0xff]   ;;  %3173 = vmatprep.subr.bf16.mxu1 %v8632_v37  ;;  %v8643_v43 = vld [vmem:[%s10267_s6 + $0x138] ss:$48 sps:$4 sm:$0xff]  }
 0x41a   : > { %v8556_v24 = vld [vmem:[%s10267_s6 + $0x3c0] ss:$48 sps:$4 sm:$0xff]   ;;  %v8557_v25 = vld [vmem:[%s10267_s6 + $0x424] ss:$48 sps:$4 sm:$0xff]   ;;  %v8644_v44 = vld [vmem:[%s10267_s6 + $0x19c] ss:$48 sps:$4 sm:$0xff]  }
 0x41b   : > { %3053 = vmatpush1.bf16.msra.mxu0 %v8535_v1  ;;  %3078 = vmatprep.mubr.bf16.mxu0 %v10560_v18  ;;  %v8559_v28 = vld [vmem:[%s10267_s6 + $0x420] ss:$48 sps:$4 sm:$0xff]   ;;  %v8560_v30 = vld [vmem:[%s10267_s6 + $0x484] ss:$48 sps:$4 sm:$0xff]   ;;  %v8574_v45 = vld [vmem:[%s10267_s6 + $0xc] ss:$48 sps:$4 sm:$0xff]  }
 0x41c   : > { %3054 = vmatprep.subr.bf16.mxu0 %v8536_v2  ;;  %3201 = vmatprep.mubr.bf16.mxu1 %v10560_v18  ;;  %v8562_v32 = vld [vmem:[%s10267_s6 + $0x480] ss:$48 sps:$4 sm:$0xff]   ;;  %v8563_v33 = vld [vmem:[%s10267_s6 + $0x4e4] ss:$48 sps:$4 sm:$0xff]   ;;  %v8649_v47 = vld [vmem:[%s10267_s6 + $0x198] ss:$48 sps:$4 sm:$0xff]  }
 0x41d   : > { %v8565_v35 = vld [vmem:[%s10267_s6 + $0x4e0] ss:$48 sps:$4 sm:$0xff]   ;;  %v8566_v29 = vld [vmem:[%s10267_s6 + $0x544] ss:$48 sps:$4 sm:$0xff]   ;;  %3174 = vmatpush1.bf16.msra.mxu1 %v8637_v38  ;;  %v8572_v48 = vld [vmem:[%s10267_s6 + $0x8] ss:$48 sps:$4 sm:$0xff]  }
 0x41e   : > { %v8568_v39 = vld [vmem:[%s10267_s6 + $0x540] ss:$48 sps:$4 sm:$0xff]   ;;  %v8569_v41 = vld [vmem:[%s10267_s6 + $0x5a4] ss:$48 sps:$4 sm:$0xff]   ;;  %3175 = vmatprep.subr.bf16.mxu1 %v8638_v40  ;;  %v8577_v49 = vld [vmem:[%s10267_s6 + $0x6c] ss:$48 sps:$4 sm:$0xff]  }
 0x41f   : > { %3055 = vmatpush1.bf16.msra.mxu0 %v8538_v3  ;;  %v8571_v42 = vld [vmem:[%s10267_s6 + $0x5a0] ss:$48 sps:$4 sm:$0xff]   ;;  %v8650_v50 = vld [vmem:[%s10267_s6 + $0x1fc] ss:$48 sps:$4 sm:$0xff]   ;;  %v8575_v51 = vld [vmem:[%s10267_s6 + $0x68] ss:$48 sps:$4 sm:$0xff]  }
 0x420   : > { %3056 = vmatprep.subr.bf16.mxu0 %v8539_v7  ;;  %v8655_v52 = vld [vmem:[%s10267_s6 + $0x1f8] ss:$48 sps:$4 sm:$0xff]   ;;  %v8656_v53 = vld [vmem:[%s10267_s6 + $0x25c] ss:$48 sps:$4 sm:$0xff]   ;;  %s11867_s28 = sld [smem:[#allocation53_spill]] (!%p8077_p1) }
 0x421   : > { %3176 = vmatpush1.bf16.msra.mxu1 %v8643_v43  ;;  %v8580_v26 = vld [vmem:[%s10267_s6 + $0xcc] ss:$48 sps:$4 sm:$0xff]   ;;  %v8661_v54 = vld [vmem:[%s10267_s6 + $0x258] ss:$48 sps:$4 sm:$0xff]  }
 0x422   : > { %3177 = vmatprep.subr.bf16.mxu1 %v8644_v44  ;;  %v8578_v55 = vld [vmem:[%s10267_s6 + $0xc8] ss:$48 sps:$4 sm:$0xff]   ;;  %v8662_v56 = vld [vmem:[%s10267_s6 + $0x2bc] ss:$48 sps:$4 sm:$0xff]  }
 0x423   : > { %3057 = vmatpush1.bf16.msra.mxu0 %v8541_v8  ;;  %v8583_v57 = vld [vmem:[%s10267_s6 + $0x12c] ss:$48 sps:$4 sm:$0xff]   ;;  %v8581_v58 = vld [vmem:[%s10267_s6 + $0x128] ss:$48 sps:$4 sm:$0xff]  }
 0x424   : > { %3058 = vmatprep.subr.bf16.mxu0 %v8542_v11  ;;  %v8667_v59 = vld [vmem:[%s10267_s6 + $0x2b8] ss:$48 sps:$4 sm:$0xff]   ;;  %v8668_v60 = vld [vmem:[%s10267_s6 + $0x31c] ss:$48 sps:$4 sm:$0xff]  }
 0x425   : > { %3178 = vmatpush1.bf16.msra.mxu1 %v8649_v47  ;;  %v8586_v61 = vld [vmem:[%s10267_s6 + $0x18c] ss:$48 sps:$4 sm:$0xff]   ;;  %v8673_v62 = vld [vmem:[%s10267_s6 + $0x318] ss:$48 sps:$4 sm:$0xff]  }
 0x426   : > { %3179 = vmatprep.subr.bf16.mxu1 %v8650_v50  ;;  %v8584_v63 = vld [vmem:[%s10267_s6 + $0x188] ss:$48 sps:$4 sm:$0xff]   ;;  %v8674_v0 = vld [vmem:[%s10267_s6 + $0x37c] ss:$48 sps:$4 sm:$0xff]   ;;  %v8624_v50 = vld [vmem:[%s10267_s6 + $0x14] ss:$48 sps:$4 sm:$0xff]  }
 0x427   : > { %3059 = vmatpush1.bf16.msra.mxu0 %v8544_v12  ;;  %v8589_v1 = vld [vmem:[%s10267_s6 + $0x1ec] ss:$48 sps:$4 sm:$0xff]   ;;  %v8587_v2 = vld [vmem:[%s10267_s6 + $0x1e8] ss:$48 sps:$4 sm:$0xff]  }
 0x428   : > { %3060 = vmatprep.subr.bf16.mxu0 %v8545_v13  ;;  %v8679_v3 = vld [vmem:[%s10267_s6 + $0x378] ss:$48 sps:$4 sm:$0xff]   ;;  %v8680_v4 = vld [vmem:[%s10267_s6 + $0x3dc] ss:$48 sps:$4 sm:$0xff]  }
 0x429   : > { %3180 = vmatpush1.bf16.msra.mxu1 %v8655_v52  ;;  %v8592_v5 = vld [vmem:[%s10267_s6 + $0x24c] ss:$48 sps:$4 sm:$0xff]   ;;  %v8685_v6 = vld [vmem:[%s10267_s6 + $0x3d8] ss:$48 sps:$4 sm:$0xff]   ;;  %v8622_v52 = vld [vmem:[%s10267_s6 + $0x10] ss:$48 sps:$4 sm:$0xff]  }
 0x42a   : > { %3181 = vmatprep.subr.bf16.mxu1 %v8656_v53  ;;  %v8590_v7 = vld [vmem:[%s10267_s6 + $0x248] ss:$48 sps:$4 sm:$0xff]   ;;  %v8686_v8 = vld [vmem:[%s10267_s6 + $0x43c] ss:$48 sps:$4 sm:$0xff]   ;;  %v8630_v53 = vld [vmem:[%s10267_s6 + $0x74] ss:$48 sps:$4 sm:$0xff]  }
 0x42b   : > { %3061 = vmatpush1.bf16.msra.mxu0 %v8547_v17  ;;  %v8595_v10 = vld [vmem:[%s10267_s6 + $0x2ac] ss:$48 sps:$4 sm:$0xff]   ;;  %v8593_v11 = vld [vmem:[%s10267_s6 + $0x2a8] ss:$48 sps:$4 sm:$0xff]  }
 0x42c   : > { %3062 = vmatprep.subr.bf16.mxu0 %v8548_v19  ;;  %v8691_v12 = vld [vmem:[%s10267_s6 + $0x438] ss:$48 sps:$4 sm:$0xff]   ;;  %v8692_v13 = vld [vmem:[%s10267_s6 + $0x49c] ss:$48 sps:$4 sm:$0xff]  }
 0x42d   : > { %3182 = vmatpush1.bf16.msra.mxu1 %v8661_v54  ;;  %v8598_v15 = vld [vmem:[%s10267_s6 + $0x30c] ss:$48 sps:$4 sm:$0xff]   ;;  %v8596_v16 = vld [vmem:[%s10267_s6 + $0x308] ss:$48 sps:$4 sm:$0xff]  }
 0x42e   : > { %3183 = vmatprep.subr.bf16.mxu1 %v8662_v56  ;;  %v8697_v17 = vld [vmem:[%s10267_s6 + $0x498] ss:$48 sps:$4 sm:$0xff]   ;;  %v8698_v19 = vld [vmem:[%s10267_s6 + $0x4fc] ss:$48 sps:$4 sm:$0xff]  }
 0x42f   : > { %3063 = vmatpush1.bf16.msra.mxu0 %v8550_v20  ;;  %v8601_v20 = vld [vmem:[%s10267_s6 + $0x36c] ss:$48 sps:$4 sm:$0xff]   ;;  %v8716_v36 = vld [vmem:[%s10267_s6 + $0x28] ss:$48 sps:$4 sm:$0xff]  }
 0x430   : > { %3064 = vmatprep.subr.bf16.mxu0 %v8551_v21  ;;  %v8599_v21 = vld [vmem:[%s10267_s6 + $0x368] ss:$48 sps:$4 sm:$0xff]   ;;  %v8607_v31 = vld [vmem:[%s10267_s6 + $0x42c] ss:$48 sps:$4 sm:$0xff]  }
 0x431   : > { %3184 = vmatpush1.bf16.msra.mxu1 %v8667_v59  ;;  %v8718_v34 = vld [vmem:[%s10267_s6 + $0x2c] ss:$48 sps:$4 sm:$0xff]   ;;  %v8611_v38 = vld [vmem:[%s10267_s6 + $0x4e8] ss:$48 sps:$4 sm:$0xff]   ;;  %v8634_v59 = vld [vmem:[%s10267_s6 + $0xd0] ss:$48 sps:$4 sm:$0xff]  }
 0x432   : > { %3185 = vmatprep.subr.bf16.mxu1 %v8668_v60  ;;  %v8610_v27 = vld [vmem:[%s10267_s6 + $0x48c] ss:$48 sps:$4 sm:$0xff]   ;;  %v8728_v44 = vld [vmem:[%s10267_s6 + $0xe8] ss:$48 sps:$4 sm:$0xff]  }
 0x433   : > { %3065 = vmatpush1.bf16.msra.mxu0 %v8553_v22  ;;  %v8703_v22 = vld [vmem:[%s10267_s6 + $0x4f8] ss:$48 sps:$4 sm:$0xff]   ;;  %v8724_v37 = vld [vmem:[%s10267_s6 + $0x8c] ss:$48 sps:$4 sm:$0xff]  }
 0x434   : > { %3066 = vmatprep.subr.bf16.mxu0 %v8554_v23  ;;  %v8704_v23 = vld [vmem:[%s10267_s6 + $0x55c] ss:$48 sps:$4 sm:$0xff]   ;;  %v8734_v47 = vld [vmem:[%s10267_s6 + $0x148] ss:$48 sps:$4 sm:$0xff]  }
 0x435   : > { %3186 = vmatpush1.bf16.msra.mxu1 %v8673_v62  ;;  %v8730_v40 = vld [vmem:[%s10267_s6 + $0xec] ss:$48 sps:$4 sm:$0xff]   ;;  %v8746_v54 = vld [vmem:[%s10267_s6 + $0x208] ss:$48 sps:$4 sm:$0xff]  }
 0x436   : > { %3187 = vmatprep.subr.bf16.mxu1 %v8674_v0  ;;  %v8619_v43 = vld [vmem:[%s10267_s6 + $0x5ac] ss:$48 sps:$4 sm:$0xff]   ;;  %v8758_v62 = vld [vmem:[%s10267_s6 + $0x2c8] ss:$48 sps:$4 sm:$0xff]  }
 0x437   : > { %3067 = vmatpush1.bf16.msra.mxu0 %v8556_v24  ;;  %v8604_v24 = vld [vmem:[%s10267_s6 + $0x3cc] ss:$48 sps:$4 sm:$0xff]  }
 0x438   : > { %3068 = vmatprep.subr.bf16.mxu0 %v8557_v25  ;;  %v8602_v25 = vld [vmem:[%s10267_s6 + $0x3c8] ss:$48 sps:$4 sm:$0xff]   ;;  %v8754_v56 = vld [vmem:[%s10267_s6 + $0x26c] ss:$48 sps:$4 sm:$0xff]  }
 0x439   : > { %3188 = vmatpush1.bf16.msra.mxu1 %v8679_v3  ;;  %v8760_v60 = vld [vmem:[%s10267_s6 + $0x2cc] ss:$48 sps:$4 sm:$0xff]   ;;  %v8646_v3 = vld [vmem:[%s10267_s6 + $0x190] ss:$48 sps:$4 sm:$0xff]  }
 0x43a   : > { %3189 = vmatprep.subr.bf16.mxu1 %v8680_v4  ;;  %v8766_v0 = vld [vmem:[%s10267_s6 + $0x32c] ss:$48 sps:$4 sm:$0xff]  }
 0x43b   : > { %3069 = vmatpush1.bf16.msra.mxu0 %v8559_v28  ;;  %v8709_v28 = vld [vmem:[%s10267_s6 + $0x558] ss:$48 sps:$4 sm:$0xff]   ;;  %v8772_v4 = vld [vmem:[%s10267_s6 + $0x38c] ss:$48 sps:$4 sm:$0xff]  }
 0x43c   : > { %3070 = vmatprep.subr.bf16.mxu0 %v8560_v30  ;;  %v8710_v30 = vld [vmem:[%s10267_s6 + $0x5bc] ss:$48 sps:$4 sm:$0xff]  }
 0x43d   : > { %3190 = vmatpush1.bf16.msra.mxu1 %v8685_v6  ;;  %v8770_v6 = vld [vmem:[%s10267_s6 + $0x388] ss:$48 sps:$4 sm:$0xff]  }
 0x43e   : > { %3191 = vmatprep.subr.bf16.mxu1 %v8686_v8  ;;  %v8652_v8 = vld [vmem:[%s10267_s6 + $0x1f0] ss:$48 sps:$4 sm:$0xff]  }
 0x43f   : > { %3071 = vmatpush1.bf16.msra.mxu0 %v8562_v32  ;;  %v8605_v32 = vld [vmem:[%s10267_s6 + $0x428] ss:$48 sps:$4 sm:$0xff]  }
 0x440   : > { %3072 = vmatprep.subr.bf16.mxu0 %v8563_v33  ;;  %v8715_v33 = vld [vmem:[%s10267_s6 + $0x5b8] ss:$48 sps:$4 sm:$0xff]  }
 0x441   : > { %3192 = vmatpush1.bf16.msra.mxu1 %v8691_v12  ;;  %v8660_v12 = vld [vmem:[%s10267_s6 + $0x254] ss:$48 sps:$4 sm:$0xff]  }
 0x442   : > { %3193 = vmatprep.subr.bf16.mxu1 %v8692_v13 }
 0x443   : > { %3073 = vmatpush1.bf16.msra.mxu0 %v8565_v35  ;;  %v8608_v35 = vld [vmem:[%s10267_s6 + $0x488] ss:$48 sps:$4 sm:$0xff]  }
 0x444   : > { %3074 = vmatprep.subr.bf16.mxu0 %v8566_v29  ;;  %v8613_v29 = vld [vmem:[%s10267_s6 + $0x4ec] ss:$48 sps:$4 sm:$0xff]  }
 0x445   : > { %3194 = vmatpush1.bf16.msra.mxu1 %v8697_v17  ;;  %v9277_v17 = vld [vmem:[#allocation2 + $0x8] sm:$0xff] }
 0x446   : > { %3195 = vmatprep.subr.bf16.mxu1 %v8698_v19 }
 0x447   : > { %3075 = vmatpush1.bf16.msra.mxu0 %v8568_v39  ;;  %v8722_v39 = vld [vmem:[%s10267_s6 + $0x88] ss:$48 sps:$4 sm:$0xff]  }
 0x448   : > { %3076 = vmatprep.subr.bf16.mxu0 %v8569_v41  ;;  %v8616_v41 = vld [vmem:[%s10267_s6 + $0x54c] ss:$48 sps:$4 sm:$0xff]  }
 0x449   : > { %3196 = vmatpush1.bf16.msra.mxu1 %v8703_v22  ;;  %v8658_v22 = vld [vmem:[%s10267_s6 + $0x250] ss:$48 sps:$4 sm:$0xff]  }
 0x44a   : > { %3197 = vmatprep.subr.bf16.mxu1 %v8704_v23  ;;  %v9278_v23 = vld [vmem:[#allocation2 + $0x20] sm:$0xff] }
 0x44b   : > { %3077 = vmatpush1.bf16.msra.mxu0 %v8571_v42  ;;  %v8614_v42 = vld [vmem:[%s10267_s6 + $0x548] ss:$48 sps:$4 sm:$0xff]  }
 0x44c   : > { %3087 = vmatprep.subr.bf16.mxu0 %v8574_v45  ;;  %v8736_v45 = vld [vmem:[%s10267_s6 + $0x14c] ss:$48 sps:$4 sm:$0xff]  }
 0x44d   : > { %3198 = vmatpush1.bf16.msra.mxu1 %v8709_v28 }
 0x44e   : > { %3079 = vmatmul.mubr.bf16.vlgmr.msra.gmra.mrb[0].mxu0 %v10591_v46  ;;  %3199 = vmatprep.subr.bf16.mxu1 %v8710_v30 }
 0x44f   : > { %3088 = vmatpush1.bf16.msra.mxu0 %v8572_v48  ;;  %3119 = vmatprep.mubr.bf16.mxu0 %v10560_v18  ;;  %v8617_v48 = vld [vmem:[%s10267_s6 + $0x5a8] ss:$48 sps:$4 sm:$0xff]  }
 0x450   : > { %3089 = vmatprep.subr.bf16.mxu0 %v8577_v49  ;;  %v8742_v49 = vld [vmem:[%s10267_s6 + $0x1ac] ss:$48 sps:$4 sm:$0xff]  }
 0x451   : > { %3200 = vmatpush1.bf16.msra.mxu1 %v8715_v33  ;;  %v8776_v33 = vld [vmem:[%s10267_s6 + $0x3e8] ss:$48 sps:$4 sm:$0xff]  }
 0x452   : > { %3251 = vmatprep.subr.bf16.mxu1 %v8718_v34 }
 0x453   : > { %3090 = vmatpush1.bf16.msra.mxu0 %v8575_v51  ;;  %v8740_v51 = vld [vmem:[%s10267_s6 + $0x1a8] ss:$48 sps:$4 sm:$0xff]  }
 0x454   : > { %3091 = vmatprep.subr.bf16.mxu0 %v8580_v26  ;;  %3202 = vmatmul.mubr.bf16.vlgmr.msra.gmra.mrb[0].mxu1 %v10591_v46  ;;  %v8748_v26 = vld [vmem:[%s10267_s6 + $0x20c] ss:$48 sps:$4 sm:$0xff]  }
 0x455   : > { %3252 = vmatpush1.bf16.msra.mxu1 %v8716_v36  ;;  %3283 = vmatprep.mubr.bf16.mxu1 %v10560_v18 }
 0x456   : > { %3253 = vmatprep.subr.bf16.mxu1 %v8724_v37  ;;  %v9281_v37 = vld [vmem:[#allocation2 + $0x18] sm:$0xff] }
 0x457   : > { %3092 = vmatpush1.bf16.msra.mxu0 %v8578_v55  ;;  %v8628_v55 = vld [vmem:[%s10267_s6 + $0x70] ss:$48 sps:$4 sm:$0xff]  }
 0x458   : > { %3093 = vmatprep.subr.bf16.mxu0 %v8583_v57  ;;  %v8636_v57 = vld [vmem:[%s10267_s6 + $0xd4] ss:$48 sps:$4 sm:$0xff]  }
 0x459   : > { %3254 = vmatpush1.bf16.msra.mxu1 %v8722_v39 }
 0x45a   : > { %3255 = vmatprep.subr.bf16.mxu1 %v8730_v40  ;;  %v8784_v40 = vld [vmem:[%s10267_s6 + $0x44c] ss:$48 sps:$4 sm:$0xff]  }
 0x45b   : > { %3094 = vmatpush1.bf16.msra.mxu0 %v8581_v58  ;;  %v8752_v58 = vld [vmem:[%s10267_s6 + $0x268] ss:$48 sps:$4 sm:$0xff]  }
 0x45c   : > { %3095 = vmatprep.subr.bf16.mxu0 %v8586_v61  ;;  %v8642_v61 = vld [vmem:[%s10267_s6 + $0x134] ss:$48 sps:$4 sm:$0xff]  }
 0x45d   : > { %3256 = vmatpush1.bf16.msra.mxu1 %v8728_v44  ;;  %v9282_v44 = vld [vmem:[#allocation2 + $0x30] sm:$0xff] }
 0x45e   : > { %3257 = vmatprep.subr.bf16.mxu1 %v8736_v45 }
 0x45f   : > { %3096 = vmatpush1.bf16.msra.mxu0 %v8584_v63  ;;  %v8640_v63 = vld [vmem:[%s10267_s6 + $0x130] ss:$48 sps:$4 sm:$0xff]  }
 0x460   : > { %3097 = vmatprep.subr.bf16.mxu0 %v8589_v1  ;;  %v8648_v1 = vld [vmem:[%s10267_s6 + $0x194] ss:$48 sps:$4 sm:$0xff]  }
 0x461   : > { %3258 = vmatpush1.bf16.msra.mxu1 %v8734_v47  ;;  %v9283_v47 = vld [vmem:[#allocation2 + $0x38] sm:$0xff] }
 0x462   : > { %3259 = vmatprep.subr.bf16.mxu1 %v8742_v49 }
 0x463   : > { %3098 = vmatpush1.bf16.msra.mxu0 %v8587_v2  ;;  %v8764_v2 = vld [vmem:[%s10267_s6 + $0x328] ss:$48 sps:$4 sm:$0xff]  }
 0x464   : > { %3099 = vmatprep.subr.bf16.mxu0 %v8592_v5  ;;  %v8654_v5 = vld [vmem:[%s10267_s6 + $0x1f4] ss:$48 sps:$4 sm:$0xff]  }
 0x465   : > { %3260 = vmatpush1.bf16.msra.mxu1 %v8740_v51  ;;  %v8672_v51 = vld [vmem:[%s10267_s6 + $0x314] ss:$48 sps:$4 sm:$0xff]  }
 0x466   : > { %3261 = vmatprep.subr.bf16.mxu1 %v8748_v26 }
 0x467   : > { %3100 = vmatpush1.bf16.msra.mxu0 %v8590_v7 }
 0x468   : > { %3101 = vmatprep.subr.bf16.mxu0 %v8595_v10  ;;  %v8778_v10 = vld [vmem:[%s10267_s6 + $0x3ec] ss:$48 sps:$4 sm:$0xff]  }
 0x469   : > { %3262 = vmatpush1.bf16.msra.mxu1 %v8746_v54 }
 0x46a   : > { %3263 = vmatprep.subr.bf16.mxu1 %v8754_v56  ;;  %v8790_v56 = vld [vmem:[%s10267_s6 + $0x4ac] ss:$48 sps:$4 sm:$0xff]  }
 0x46b   : > { %3102 = vmatpush1.bf16.msra.mxu0 %v8593_v11 }
 0x46c   : > { %3103 = vmatprep.subr.bf16.mxu0 %v8598_v15  ;;  %v9276_v15 = vld [vmem:[#allocation2] sm:$0xff] }
 0x46d   : > { %3264 = vmatpush1.bf16.msra.mxu1 %v8752_v58  ;;  %v8788_v58 = vld [vmem:[%s10267_s6 + $0x4a8] ss:$48 sps:$4 sm:$0xff]  }
 0x46e   : > { %3265 = vmatprep.subr.bf16.mxu1 %v8760_v60  ;;  %v8796_v60 = vld [vmem:[%s10267_s6 + $0x50c] ss:$48 sps:$4 sm:$0xff]  }
 0x46f   : > { %3104 = vmatpush1.bf16.msra.mxu0 %v8596_v16 }
 0x470   : > { %3105 = vmatprep.subr.bf16.mxu0 %v8601_v20 }
 0x471   : > { %3266 = vmatpush1.bf16.msra.mxu1 %v8758_v62  ;;  %v8676_v62 = vld [vmem:[%s10267_s6 + $0x370] ss:$48 sps:$4 sm:$0xff]  }
 0x472   : > { %3267 = vmatprep.subr.bf16.mxu1 %v8766_v0  ;;  %v8802_v0 = vld [vmem:[%s10267_s6 + $0x56c] ss:$48 sps:$4 sm:$0xff]  }
 0x473   : > { %3106 = vmatpush1.bf16.msra.mxu0 %v8599_v21 }
 0x474   : > { %3107 = vmatprep.subr.bf16.mxu0 %v8604_v24 }
 0x475   : > { %3268 = vmatpush1.bf16.msra.mxu1 %v8764_v2  ;;  %v8800_v2 = vld [vmem:[%s10267_s6 + $0x568] ss:$48 sps:$4 sm:$0xff]  }
 0x476   : > { %3269 = vmatprep.subr.bf16.mxu1 %v8772_v4  ;;  %v8808_v4 = vld [vmem:[%s10267_s6 + $0x5cc] ss:$48 sps:$4 sm:$0xff]  }
 0x477   : > { %3108 = vmatpush1.bf16.msra.mxu0 %v8602_v25  ;;  %v9279_v25 = vld [vmem:[#allocation2 + $0x28] sm:$0xff] }
 0x478   : > { %3109 = vmatprep.subr.bf16.mxu0 %v8607_v31 }
 0x479   : > { %3270 = vmatpush1.bf16.msra.mxu1 %v8770_v6  ;;  %v8688_v6 = vld [vmem:[%s10267_s6 + $0x430] ss:$48 sps:$4 sm:$0xff]  }
 0x47a   : > { %3271 = vmatprep.subr.bf16.mxu1 %v8778_v10  ;;  %v8817_v10 = vld [vmem:[%s10272_s0 + $0xc] ss:$24 sps:$4 sm:$0xff]  }
 0x47b   : > { %3110 = vmatpush1.bf16.msra.mxu0 %v8605_v32  ;;  %v8666_v32 = vld [vmem:[%s10267_s6 + $0x2b4] ss:$48 sps:$4 sm:$0xff]  }
 0x47c   : > { %3111 = vmatprep.subr.bf16.mxu0 %v8610_v27 }
 0x47d   : > { %3272 = vmatpush1.bf16.msra.mxu1 %v8776_v33  ;;  %v8712_v33 = vld [vmem:[%s10267_s6 + $0x5b0] ss:$48 sps:$4 sm:$0xff]  }
 0x47e   : > { %3273 = vmatprep.subr.bf16.mxu1 %v8784_v40  ;;  %v8725_v40 = vld [vmem:[%s10267_s6 + $0x80] ss:$48 sps:$4 sm:$0xff]  }
 0x47f   : > { %3112 = vmatpush1.bf16.msra.mxu0 %v8608_v35  ;;  %v9280_v35 = vld [vmem:[#allocation2 + $0x10] sm:$0xff] }
 0x480   : > { %3113 = vmatprep.subr.bf16.mxu0 %v8613_v29 }
 0x483   : > { %3114 = vmatpush1.bf16.msra.mxu0 %v8611_v38 }
 0x484   : > { %3115 = vmatprep.subr.bf16.mxu0 %v8616_v41 }
 0x487   : > { %3116 = vmatpush1.bf16.msra.mxu0 %v8614_v42 }
 0x488   : > { %3117 = vmatprep.subr.bf16.mxu0 %v8619_v43  ;;  %v8664_v43 = vld [vmem:[%s10267_s6 + $0x2b0] ss:$48 sps:$4 sm:$0xff]  }
 0x48b   : > { %3118 = vmatpush1.bf16.msra.mxu0 %v8617_v48 }
 0x48c   : > { %3128 = vmatprep.subr.bf16.mxu0 %v8624_v50 }
 0x48e   : > { %3120 = vmatmul.mubr.bf16.vlgmr.msra.gmra.mrb[4].mxu0 %v10591_v46 }
 0x48f   : > { %3129 = vmatpush1.bf16.msra.mxu0 %v8622_v52  ;;  %3160 = vmatprep.mubr.bf16.mxu0 %v10560_v18  ;;  %v8782_v52 = vld [vmem:[%s10267_s6 + $0x448] ss:$48 sps:$4 sm:$0xff]  }
 0x490   : > { %3130 = vmatprep.subr.bf16.mxu0 %v8630_v53  ;;  %3274 = vmatpush1.bf16.msra.mxu1 %v8782_v52  ;;  %v8737_v52 = vld [vmem:[%s10267_s6 + $0x140] ss:$48 sps:$4 sm:$0xff]  }
 0x491   : > { %3275 = vmatprep.subr.bf16.mxu1 %v8790_v56  ;;  %v8871_v56 = vld [vmem:[%s10272_s0 + $0x1bc] ss:$24 sps:$4 sm:$0xff]  }
 0x493   : > { %3131 = vmatpush1.bf16.msra.mxu0 %v8628_v55 }
 0x494   : > { %3132 = vmatprep.subr.bf16.mxu0 %v8636_v57  ;;  %3276 = vmatpush1.bf16.msra.mxu1 %v8788_v58  ;;  %v8869_v58 = vld [vmem:[%s10272_s0 + $0x1b8] ss:$24 sps:$4 sm:$0xff]  }
 0x495   : > { %3277 = vmatprep.subr.bf16.mxu1 %v8796_v60  ;;  %v8877_v60 = vld [vmem:[%s10272_s0 + $0x1ec] ss:$24 sps:$4 sm:$0xff]  }
 0x497   : > { %3133 = vmatpush1.bf16.msra.mxu0 %v8634_v59  ;;  %v8670_v59 = vld [vmem:[%s10267_s6 + $0x310] ss:$48 sps:$4 sm:$0xff]  }
 0x498   : > { %3134 = vmatprep.subr.bf16.mxu0 %v8642_v61  ;;  %v8678_v61 = vld [vmem:[%s10267_s6 + $0x374] ss:$48 sps:$4 sm:$0xff]  }
 0x49b   : > { %3135 = vmatpush1.bf16.msra.mxu0 %v8640_v63  ;;  %v8794_v63 = vld [vmem:[%s10267_s6 + $0x508] ss:$48 sps:$4 sm:$0xff]  }
 0x49c   : > { %3136 = vmatprep.subr.bf16.mxu0 %v8648_v1  ;;  %v8684_v1 = vld [vmem:[%s10267_s6 + $0x3d4] ss:$48 sps:$4 sm:$0xff]   ;;  %3278 = vmatpush1.bf16.msra.mxu1 %v8794_v63 }
 0x49d   : > { %3279 = vmatprep.subr.bf16.mxu1 %v8802_v0  ;;  %v8763_v63 = vld [vmem:[%s10267_s6 + $0x2c4] ss:$48 sps:$4 sm:$0xff]   ;;  %v8875_v0 = vld [vmem:[%s10272_s0 + $0x1e8] ss:$24 sps:$4 sm:$0xff]  }
 0x49e   : > { %v3448_v7 = vpop.xlane.xlu0 %3447 }
 0x49f   : > { %v3459_v11 = vmul.f32 0.00390625, %v3448_v7  ;;  %3137 = vmatpush1.bf16.msra.mxu0 %v8646_v3  ;;  %v8682_v3 = vld [vmem:[%s10267_s6 + $0x3d0] ss:$48 sps:$4 sm:$0xff]   ;;  %v8696_v7 = vld [vmem:[%s10267_s6 + $0x494] ss:$48 sps:$4 sm:$0xff]  }
 0x4a0   : > { %v3454_v13 = vpop.xlane.xlu1 %3453  ;;  %3138 = vmatprep.subr.bf16.mxu0 %v8654_v5  ;;  %v8690_v5 = vld [vmem:[%s10267_s6 + $0x434] ss:$48 sps:$4 sm:$0xff]   ;;  %3280 = vmatpush1.bf16.msra.mxu1 %v8800_v2  ;;  %v8761_v2 = vld [vmem:[%s10267_s6 + $0x2c0] ss:$48 sps:$4 sm:$0xff]  }
 0x4a1   : > { %v10687_v16 = vsub.f32 %v9276_v15, %v3459_v11  ;;  %v10689_v19 = vsub.f32 %v9277_v17, %v3459_v11  ;;  %v3461_v20 = vmul.f32 0.00390625, %v3454_v13  ;;  %3281 = vmatprep.subr.bf16.mxu1 %v8808_v4  ;;  %v8694_v11 = vld [vmem:[%s10267_s6 + $0x490] ss:$48 sps:$4 sm:$0xff]   ;;  %v8823_v15 = vld [vmem:[%s10272_s0 + $0x3c] ss:$24 sps:$4 sm:$0xff]  }
 0x4a2   : > { %v3451_v21 = vpop.xlane.xlu0 %3450  ;;  %v8815_v13 = vld [vmem:[%s10272_s0 + $0x8] ss:$24 sps:$4 sm:$0xff]   ;;  %v8881_v4 = vld [vmem:[%s10272_s0 + $0x218] ss:$24 sps:$4 sm:$0xff]  }
 0x4a3   : > { %v10692_v24 = vsub.f32 %v9278_v23, %v3461_v20  ;;  %v10694_v28 = vsub.f32 %v9279_v25, %v3461_v20  ;;  %v3460_v30 = vmul.f32 0.00390625, %v3451_v21  ;;  %v3471_v31 = vmul.f32 %v10687_v16, %v10687_v16  ;;  %3139 = vmatpush1.bf16.msra.mxu0 %v8652_v8  ;;  %v8806_v8 = vld [vmem:[%s10267_s6 + $0x5c8] ss:$48 sps:$4 sm:$0xff]   ;;  %v8700_v17 = vld [vmem:[%s10267_s6 + $0x4f0] ss:$48 sps:$4 sm:$0xff]  }
 0x4a4   : > { %v3457_v34 = vpop.xlane.xlu1 %3456  ;;  %v3472_v27 = vmul.f32 %v10689_v19, %v10689_v19  ;;  %3140 = vmatprep.subr.bf16.mxu0 %v8660_v12  ;;  %v8702_v12 = vld [vmem:[%s10267_s6 + $0x4f4] ss:$48 sps:$4 sm:$0xff]   ;;  %3282 = vmatpush1.bf16.msra.mxu1 %v8806_v8  ;;  %v8821_v21 = vld [vmem:[%s10272_s0 + $0x38] ss:$24 sps:$4 sm:$0xff]   ;;  %v8887_v8 = vld [vmem:[%s10272_s0 + $0x248] ss:$24 sps:$4 sm:$0xff]  }
 0x4a5   : > { %v10702_v36 = vsub.f32 %v9280_v35, %v3460_v30  ;;  %v10704_v29 = vsub.f32 %v9281_v37, %v3460_v30  ;;  %v3462_v38 = vmul.f32 0.00390625, %v3457_v34  ;;  %v3475_v39 = vmul.f32 %v10692_v24, %v10692_v24  ;;  %4236 = vmatprep.subr.bf16.mxu1 %v8817_v10  ;;  %v8708_v20 = vld [vmem:[%s10267_s6 + $0x554] ss:$48 sps:$4 sm:$0xff]   ;;  %v8706_v23 = vld [vmem:[%s10267_s6 + $0x550] ss:$48 sps:$4 sm:$0xff]  }
 0x4a6   : > { %v3479_v41 = vadd.f32 %v3472_v27, %v3471_v31  ;;  %v3476_v42 = vmul.f32 %v10694_v28, %v10694_v28  ;;  %v8714_v25 = vld [vmem:[%s10267_s6 + $0x5b4] ss:$48 sps:$4 sm:$0xff]   ;;  %v8827_v30 = vld [vmem:[%s10272_s0 + $0x68] ss:$24 sps:$4 sm:$0xff]  }
 0x4a7   : > { %v10712_v45 = vsub.f32 %v9282_v44, %v3462_v38  ;;  %v10714_v48 = vsub.f32 %v9283_v47, %v3462_v38  ;;  %v3473_v49 = vmul.f32 %v10702_v36, %v10702_v36  ;;  %v3474_v50 = vmul.f32 %v10704_v29, %v10704_v29  ;;  %3141 = vmatpush1.bf16.msra.mxu0 %v8658_v22  ;;  %v8829_v22 = vld [vmem:[%s10272_s0 + $0x6c] ss:$24 sps:$4 sm:$0xff]   ;;  %v8835_v31 = vld [vmem:[%s10272_s0 + $0x9c] ss:$24 sps:$4 sm:$0xff]   ;;  %v8839_v35 = vld [vmem:[%s10272_s0 + $0xc8] ss:$24 sps:$4 sm:$0xff]  }
 0x4a8   : > { %3480 = vadd.xlane.f32.xlu0 %v3479_v41  ;;  %v3485_v53 = vadd.f32 %v3476_v42, %v3475_v39  ;;  %3142 = vmatprep.subr.bf16.mxu0 %v8666_v32  ;;  %v8833_v32 = vld [vmem:[%s10272_s0 + $0x98] ss:$24 sps:$4 sm:$0xff]   ;;  %v8841_v34 = vld [vmem:[%s10272_s0 + $0xcc] ss:$24 sps:$4 sm:$0xff]   ;;  %v8847_v39 = vld [vmem:[%s10272_s0 + $0xfc] ss:$24 sps:$4 sm:$0xff]  }
 0x4a9   : > { %v3482_v26 = vadd.f32 %v3474_v50, %v3473_v49  ;;  %v3477_v54 = vmul.f32 %v10712_v45, %v10712_v45  ;;  %v3478_v55 = vmul.f32 %v10714_v48, %v10714_v48  ;;  %3284 = vmatmul.mubr.bf16.vlgmr.msra.gmra.mrb[4].mxu1 %v10591_v46  ;;  %v8721_v27 = vld [vmem:[%s10267_s6 + $0x24] ss:$48 sps:$4 sm:$0xff]   ;;  %v8719_v37 = vld [vmem:[%s10267_s6 + $0x20] ss:$48 sps:$4 sm:$0xff]  }
 0x4aa   : > { %4237 = vmatpush1.bf16.msra.mxu1 %v8815_v13  ;;  %v8727_v38 = vld [vmem:[%s10267_s6 + $0x84] ss:$48 sps:$4 sm:$0xff]   ;;  %v8845_v42 = vld [vmem:[%s10272_s0 + $0xf8] ss:$24 sps:$4 sm:$0xff]   ;;  %v8851_v44 = vld [vmem:[%s10272_s0 + $0x128] ss:$24 sps:$4 sm:$0xff]  }
 0x4ab   : > { %3483 = vadd.xlane.f32.xlu1 %v3482_v26  ;;  %v3488_v57 = vadd.f32 %v3478_v55, %v3477_v54  ;;  %3143 = vmatpush1.bf16.msra.mxu0 %v8664_v43  ;;  %v8733_v41 = vld [vmem:[%s10267_s6 + $0xe4] ss:$48 sps:$4 sm:$0xff]   ;;  %v8731_v47 = vld [vmem:[%s10267_s6 + $0xe0] ss:$48 sps:$4 sm:$0xff]  }
 0x4ac   : > { %3486 = vadd.xlane.f32.xlu0 %v3485_v53  ;;  %3144 = vmatprep.subr.bf16.mxu0 %v8672_v51  ;;  %v8853_v43 = vld [vmem:[%s10272_s0 + $0x12c] ss:$24 sps:$4 sm:$0xff]   ;;  %v8859_v49 = vld [vmem:[%s10272_s0 + $0x15c] ss:$24 sps:$4 sm:$0xff]   ;;  %v8857_v51 = vld [vmem:[%s10272_s0 + $0x158] ss:$24 sps:$4 sm:$0xff]  }
 0x4ad   : > { %4238 = vmatprep.subr.bf16.mxu1 %v8823_v15  ;;  %v8739_v50 = vld [vmem:[%s10267_s6 + $0x144] ss:$48 sps:$4 sm:$0xff]   ;;  %v8863_v54 = vld [vmem:[%s10272_s0 + $0x188] ss:$24 sps:$4 sm:$0xff]  }
 0x4ae   : > { %4239 = vmatpush1.bf16.msra.mxu1 %v8821_v21  ;;  %v8865_v53 = vld [vmem:[%s10272_s0 + $0x18c] ss:$24 sps:$4 sm:$0xff]   ;;  %v8743_v55 = vld [vmem:[%s10267_s6 + $0x1a0] ss:$48 sps:$4 sm:$0xff]   ;;  %v8895_v10 = vld [vmem:[%s10272_s0 + $0x27c] ss:$24 sps:$4 sm:$0xff]  }
 0x4af   : > { %3489 = vadd.xlane.f32.xlu1 %v3488_v57  ;;  %3145 = vmatpush1.bf16.msra.mxu0 %v8670_v59  ;;  %v8745_v26 = vld [vmem:[%s10267_s6 + $0x1a4] ss:$48 sps:$4 sm:$0xff]   ;;  %v8749_v59 = vld [vmem:[%s10267_s6 + $0x200] ss:$48 sps:$4 sm:$0xff]  }
 0x4b0   : > { %3146 = vmatprep.subr.bf16.mxu0 %v8678_v61  ;;  %4240 = vmatprep.subr.bf16.mxu1 %v8829_v22  ;;  %v8751_v57 = vld [vmem:[%s10267_s6 + $0x204] ss:$48 sps:$4 sm:$0xff]  }
 0x4b1   : > { %v8757_v61 = vld [vmem:[%s10267_s6 + $0x264] ss:$48 sps:$4 sm:$0xff]  }
 0x4b2   : > { %4241 = vmatpush1.bf16.msra.mxu1 %v8827_v30  ;;  %v8901_v13 = vld [vmem:[%s10272_s0 + $0x2ac] ss:$24 sps:$4 sm:$0xff]   ;;  %v8907_v21 = vld [vmem:[%s10272_s0 + $0x2dc] ss:$24 sps:$4 sm:$0xff]  }
 0x4b3   : > { %3147 = vmatpush1.bf16.msra.mxu0 %v8676_v62  ;;  %4242 = vmatprep.subr.bf16.mxu1 %v8835_v31  ;;  %v8755_v62 = vld [vmem:[%s10267_s6 + $0x260] ss:$48 sps:$4 sm:$0xff]   ;;  %v8781_v15 = vld [vmem:[%s10267_s6 + $0x3e4] ss:$48 sps:$4 sm:$0xff]  }
 0x4b4   : > { %3148 = vmatprep.subr.bf16.mxu0 %v8684_v1  ;;  %v8883_v1 = vld [vmem:[%s10272_s0 + $0x21c] ss:$24 sps:$4 sm:$0xff]   ;;  %v8791_v31 = vld [vmem:[%s10267_s6 + $0x4a0] ss:$48 sps:$4 sm:$0xff]  }
 0x4b5   : > { %v8787_v22 = vld [vmem:[%s10267_s6 + $0x444] ss:$48 sps:$4 sm:$0xff]  }
 0x4b6   : > { %4243 = vmatpush1.bf16.msra.mxu1 %v8833_v32  ;;  %v8793_v30 = vld [vmem:[%s10267_s6 + $0x4a4] ss:$48 sps:$4 sm:$0xff]  }
 0x4b7   : > { %3149 = vmatpush1.bf16.msra.mxu0 %v8682_v3  ;;  %4244 = vmatprep.subr.bf16.mxu1 %v8841_v34  ;;  %v8769_v3 = vld [vmem:[%s10267_s6 + $0x324] ss:$48 sps:$4 sm:$0xff]  }
 0x4b8   : > { %3150 = vmatprep.subr.bf16.mxu0 %v8690_v5  ;;  %v8889_v5 = vld [vmem:[%s10272_s0 + $0x24c] ss:$24 sps:$4 sm:$0xff]  }
 0x4b9   : > { %v8799_v32 = vld [vmem:[%s10267_s6 + $0x504] ss:$48 sps:$4 sm:$0xff]  }
 0x4ba   : > { %4245 = vmatpush1.bf16.msra.mxu1 %v8839_v35  ;;  %v8805_v34 = vld [vmem:[%s10267_s6 + $0x564] ss:$48 sps:$4 sm:$0xff]  }
 0x4bb   : > { %3151 = vmatpush1.bf16.msra.mxu0 %v8688_v6  ;;  %4246 = vmatprep.subr.bf16.mxu1 %v8847_v39  ;;  %v8767_v6 = vld [vmem:[%s10267_s6 + $0x320] ss:$48 sps:$4 sm:$0xff]   ;;  %v8811_v35 = vld [vmem:[%s10267_s6 + $0x5c4] ss:$48 sps:$4 sm:$0xff]  }
 0x4bc   : > { %3152 = vmatprep.subr.bf16.mxu0 %v8696_v7  ;;  %v8775_v7 = vld [vmem:[%s10267_s6 + $0x384] ss:$48 sps:$4 sm:$0xff]   ;;  %v8812_v39 = vld [vmem:[%s10272_s0] ss:$24 sps:$4 sm:$0xff]  }
 0x4be   : > { %4247 = vmatpush1.bf16.msra.mxu1 %v8845_v42  ;;  %v8826_v42 = vld [vmem:[%s10272_s0 + $0x64] ss:$24 sps:$4 sm:$0xff]  }
 0x4bf   : > { %3153 = vmatpush1.bf16.msra.mxu0 %v8694_v11  ;;  %4248 = vmatprep.subr.bf16.mxu1 %v8853_v43  ;;  %v8893_v11 = vld [vmem:[%s10272_s0 + $0x278] ss:$24 sps:$4 sm:$0xff]  }
 0x4c0   : > { %3154 = vmatprep.subr.bf16.mxu0 %v8702_v12  ;;  %v8773_v12 = vld [vmem:[%s10267_s6 + $0x380] ss:$48 sps:$4 sm:$0xff]  }
 0x4c1   : > { %v8824_v43 = vld [vmem:[%s10272_s0 + $0x60] ss:$24 sps:$4 sm:$0xff]  }
 0x4c2   : > { %4249 = vmatpush1.bf16.msra.mxu1 %v8851_v44  ;;  %v8832_v44 = vld [vmem:[%s10272_s0 + $0x94] ss:$24 sps:$4 sm:$0xff]  }
 0x4c3   : > { %3155 = vmatpush1.bf16.msra.mxu0 %v8700_v17  ;;  %4250 = vmatprep.subr.bf16.mxu1 %v8859_v49  ;;  %v8899_v17 = vld [vmem:[%s10272_s0 + $0x2a8] ss:$24 sps:$4 sm:$0xff]   ;;  %v8838_v49 = vld [vmem:[%s10272_s0 + $0xc4] ss:$24 sps:$4 sm:$0xff]  }
 0x4c4   : > { %3156 = vmatprep.subr.bf16.mxu0 %v8708_v20  ;;  %v8779_v20 = vld [vmem:[%s10267_s6 + $0x3e0] ss:$48 sps:$4 sm:$0xff]  }
 0x4c6   : > { %4251 = vmatpush1.bf16.msra.mxu1 %v8857_v51  ;;  %v10830_v51 = vld [vmem:[%s10233_s9] sm:$0xff] }
 0x4c7   : > { %3157 = vmatpush1.bf16.msra.mxu0 %v8706_v23  ;;  %4252 = vmatprep.subr.bf16.mxu1 %v8865_v53  ;;  %v8785_v23 = vld [vmem:[%s10267_s6 + $0x440] ss:$48 sps:$4 sm:$0xff]  }
 0x4c8   : > { %3158 = vmatprep.subr.bf16.mxu0 %v8714_v25  ;;  %v8905_v25 = vld [vmem:[%s10272_s0 + $0x2d8] ss:$24 sps:$4 sm:$0xff]  }
 0x4c9   : > { %v8836_v53 = vld [vmem:[%s10272_s0 + $0xc0] ss:$24 sps:$4 sm:$0xff]  }
 0x4ca   : > { %4253 = vmatpush1.bf16.msra.mxu1 %v8863_v54 }
 0x4cb   : > { %3159 = vmatpush1.bf16.msra.mxu0 %v8712_v33  ;;  %4254 = vmatprep.subr.bf16.mxu1 %v8871_v56  ;;  %v8797_v33 = vld [vmem:[%s10267_s6 + $0x500] ss:$48 sps:$4 sm:$0xff]  }
 0x4cc   : > { %3210 = vmatprep.subr.bf16.mxu0 %v8721_v27  ;;  %v8803_v27 = vld [vmem:[%s10267_s6 + $0x560] ss:$48 sps:$4 sm:$0xff]  }
 0x4cd   : > { %v8842_v56 = vld [vmem:[%s10272_s0 + $0xf0] ss:$24 sps:$4 sm:$0xff]  }
 0x4ce   : > { %3161 = vmatmul.mubr.bf16.vlgmr.msra.gmra.mrb[8].mxu0 %v10591_v46  ;;  %4255 = vmatpush1.bf16.msra.mxu1 %v8869_v58 }
 0x4cf   : > { %3211 = vmatpush1.bf16.msra.mxu0 %v8719_v37  ;;  %3242 = vmatprep.mubr.bf16.mxu0 %v10560_v18  ;;  %v8809_v37 = vld [vmem:[%s10267_s6 + $0x5c0] ss:$48 sps:$4 sm:$0xff]  }
 0x4d0   : > { %3212 = vmatprep.subr.bf16.mxu0 %v8727_v38  ;;  %4256 = vmatprep.subr.bf16.mxu1 %v8877_v60  ;;  %v8814_v38 = vld [vmem:[%s10272_s0 + $0x4] ss:$24 sps:$4 sm:$0xff]  }
 0x4d2   : > { %4257 = vmatpush1.bf16.msra.mxu1 %v8875_v0 }
 0x4d3   : > { %3213 = vmatpush1.bf16.msra.mxu0 %v8725_v40  ;;  %4258 = vmatprep.subr.bf16.mxu1 %v8883_v1  ;;  %v8820_v40 = vld [vmem:[%s10272_s0 + $0x34] ss:$24 sps:$4 sm:$0xff]  }
 0x4d4   : > { %3214 = vmatprep.subr.bf16.mxu0 %v8733_v41  ;;  %v8818_v41 = vld [vmem:[%s10272_s0 + $0x30] ss:$24 sps:$4 sm:$0xff]   ;;  %v8856_v1 = vld [vmem:[%s10272_s0 + $0x154] ss:$24 sps:$4 sm:$0xff]  }
 0x4d6   : > { %4259 = vmatpush1.bf16.msra.mxu1 %v8881_v4  ;;  %v8862_v4 = vld [vmem:[%s10272_s0 + $0x184] ss:$24 sps:$4 sm:$0xff]  }
 0x4d7   : > { %3215 = vmatpush1.bf16.msra.mxu0 %v8731_v47  ;;  %4260 = vmatprep.subr.bf16.mxu1 %v8889_v5  ;;  %v8830_v47 = vld [vmem:[%s10272_s0 + $0x90] ss:$24 sps:$4 sm:$0xff]   ;;  %v8860_v5 = vld [vmem:[%s10272_s0 + $0x180] ss:$24 sps:$4 sm:$0xff]  }
 0x4d8   : > { %3216 = vmatprep.subr.bf16.mxu0 %v8739_v50  ;;  %v10827_v50 = vsub.s32 0, %v10550_v9 }
 0x4da   : > { %4261 = vmatpush1.bf16.msra.mxu1 %v8887_v8  ;;  %v2004_v54 = vrot.slane %v10830_v51, %v10827_v50  ;;  %v8874_v8 = vld [vmem:[%s10272_s0 + $0x1e4] ss:$24 sps:$4 sm:$0xff]  }
 0x4db   : > { %3217 = vmatpush1.bf16.msra.mxu0 %v8737_v52  ;;  %4262 = vmatprep.subr.bf16.mxu1 %v8895_v10  ;;  %v10833_v52 = vsub.s32 1, %v10550_v9  ;;  %v8872_v10 = vld [vmem:[%s10272_s0 + $0x1e0] ss:$24 sps:$4 sm:$0xff]  }
 0x4dc   : > { %3218 = vmatprep.subr.bf16.mxu0 %v8745_v26  ;;  %v8844_v26 = vld [vmem:[%s10272_s0 + $0xf4] ss:$24 sps:$4 sm:$0xff]  }
 0x4de   : > { %4263 = vmatpush1.bf16.msra.mxu1 %v8893_v11  ;;  %v8880_v11 = vld [vmem:[%s10272_s0 + $0x214] ss:$24 sps:$4 sm:$0xff]  }
 0x4df   : > { %3219 = vmatpush1.bf16.msra.mxu0 %v8743_v55  ;;  %4264 = vmatprep.subr.bf16.mxu1 %v8901_v13  ;;  %v2008_v55 = vrot.slane %v10830_v51, %v10833_v52  ;;  %v8886_v13 = vld [vmem:[%s10272_s0 + $0x244] ss:$24 sps:$4 sm:$0xff]  }
 0x4e0   : > { %3220 = vmatprep.subr.bf16.mxu0 %v8751_v57  ;;  %v8850_v57 = vld [vmem:[%s10272_s0 + $0x124] ss:$24 sps:$4 sm:$0xff]  }
 0x4e2   : > { %4265 = vmatpush1.bf16.msra.mxu1 %v8899_v17  ;;  %v8892_v17 = vld [vmem:[%s10272_s0 + $0x274] ss:$24 sps:$4 sm:$0xff]  }
 0x4e3   : > { %3221 = vmatpush1.bf16.msra.mxu0 %v8749_v59  ;;  %4266 = vmatprep.subr.bf16.mxu1 %v8907_v21  ;;  %v8898_v21 = vld [vmem:[%s10272_s0 + $0x2a4] ss:$24 sps:$4 sm:$0xff]  }
 0x4e4   : > { %3222 = vmatprep.subr.bf16.mxu0 %v8757_v61 }
 0x4e6   : > { %4267 = vmatpush1.bf16.msra.mxu1 %v8905_v25  ;;  %v8902_v25 = vld [vmem:[%s10272_s0 + $0x2d0] ss:$24 sps:$4 sm:$0xff]  }
 0x4e7   : > { %3223 = vmatpush1.bf16.msra.mxu0 %v8755_v62 }
 0x4e8   : > { %3224 = vmatprep.subr.bf16.mxu0 %v8763_v63  ;;  %v8848_v63 = vld [vmem:[%s10272_s0 + $0x120] ss:$24 sps:$4 sm:$0xff]  }
 0x4eb   : > { %3225 = vmatpush1.bf16.msra.mxu0 %v8761_v2 }
 0x4ec   : > { %3226 = vmatprep.subr.bf16.mxu0 %v8769_v3  ;;  %v8854_v3 = vld [vmem:[%s10272_s0 + $0x150] ss:$24 sps:$4 sm:$0xff]  }
 0x4ef   : > { %3227 = vmatpush1.bf16.msra.mxu0 %v8767_v6  ;;  %v8868_v6 = vld [vmem:[%s10272_s0 + $0x1b4] ss:$24 sps:$4 sm:$0xff]  }
 0x4f0   : > { %3228 = vmatprep.subr.bf16.mxu0 %v8775_v7  ;;  %v8866_v7 = vld [vmem:[%s10272_s0 + $0x1b0] ss:$24 sps:$4 sm:$0xff]  }
 0x4f3   : > { %3229 = vmatpush1.bf16.msra.mxu0 %v8773_v12  ;;  %v8878_v12 = vld [vmem:[%s10272_s0 + $0x210] ss:$24 sps:$4 sm:$0xff]  }
 0x4f4   : > { %3230 = vmatprep.subr.bf16.mxu0 %v8781_v15  ;;  %v8884_v15 = vld [vmem:[%s10272_s0 + $0x240] ss:$24 sps:$4 sm:$0xff]  }
 0x4f7   : > { %3231 = vmatpush1.bf16.msra.mxu0 %v8779_v20  ;;  %v8890_v20 = vld [vmem:[%s10272_s0 + $0x270] ss:$24 sps:$4 sm:$0xff]  }
 0x4f8   : > { %3232 = vmatprep.subr.bf16.mxu0 %v8787_v22  ;;  %v8896_v22 = vld [vmem:[%s10272_s0 + $0x2a0] ss:$24 sps:$4 sm:$0xff]  }
 0x4fb   : > { %3233 = vmatpush1.bf16.msra.mxu0 %v8785_v23  ;;  %v8904_v23 = vld [vmem:[%s10272_s0 + $0x2d4] ss:$24 sps:$4 sm:$0xff]  }
 0x4fc   : > { %3234 = vmatprep.subr.bf16.mxu0 %v8793_v30  ;;  %v8910_v30 = vld [vmem:[%s10272_s0 + $0x14] ss:$24 sps:$4 sm:$0xff]  }
 0x4ff   : > { %3235 = vmatpush1.bf16.msra.mxu0 %v8791_v31  ;;  %v2027_v31 = vsub.s32 6, %v10550_v9 }
 0x500   : > { %3236 = vmatprep.subr.bf16.mxu0 %v8799_v32  ;;  %v2031_v32 = vsub.s32 7, %v10550_v9 }
 0x503   : > { %3237 = vmatpush1.bf16.msra.mxu0 %v8797_v33  ;;  %v2028_v33 = vrot.slane %v10830_v51, %v2027_v31 }
 0x504   : > { %3238 = vmatprep.subr.bf16.mxu0 %v8805_v34  ;;  %v2032_v34 = vrot.slane %v10830_v51, %v2031_v32 }
 0x507   : > { %3239 = vmatpush1.bf16.msra.mxu0 %v8803_v27 }
 0x508   : > { %3240 = vmatprep.subr.bf16.mxu0 %v8811_v35 }
 0x50b   : > { %3241 = vmatpush1.bf16.msra.mxu0 %v8809_v37 }
 0x50c   : > { %4183 = vmatprep.subr.bf16.mxu0 %v8814_v38 }
 0x50e   : > { %3243 = vmatmul.mubr.bf16.vlgmr.msra.gmra.mrb[12].mxu0 %v10591_v46 }
 0x50f   : > { %4184 = vmatpush1.bf16.msra.mxu0 %v8812_v39 }
 0x510   : > { %4185 = vmatprep.subr.bf16.mxu0 %v8820_v40 }
 0x513   : > { %4186 = vmatpush1.bf16.msra.mxu0 %v8818_v41 }
 0x514   : > { %4187 = vmatprep.subr.bf16.mxu0 %v8826_v42 }
 0x517   : > { %4188 = vmatpush1.bf16.msra.mxu0 %v8824_v43 }
 0x518   : > { %4189 = vmatprep.subr.bf16.mxu0 %v8832_v44 }
 0x51b   : > { %4190 = vmatpush1.bf16.msra.mxu0 %v8830_v47 }
 0x51c   : > { %4191 = vmatprep.subr.bf16.mxu0 %v8838_v49 }
 0x51f   : > { %4192 = vmatpush1.bf16.msra.mxu0 %v8836_v53 }
 0x520   : > { %4193 = vmatprep.subr.bf16.mxu0 %v8844_v26 }
 0x521   : > { %v3080_v58 = vpop.f32.mrb[0].mxu0 }
 0x522   : > { %v10843_v59 = vadd.f32 %v3080_v58, %v2004_v54  ;;  %v3082_v60 = vpop.f32.mrb[1].mxu0  ;;  %v10883_v58 = vsub.s32 3, %v10550_v9 }
 0x523   : > { %v10845_v61 = vadd.f32 %v3082_v60, %v2008_v55  ;;  %v3084_v62 = vpop.f32.mrb[2].mxu0  ;;  %4194 = vmatpush1.bf16.msra.mxu0 %v8842_v56  ;;  %v10880_v55 = vsub.s32 2, %v10550_v9 }
 0x524   : > { %v3085_v0 = vpop.f32.mrb[3].mxu0  ;;  %4195 = vmatprep.subr.bf16.mxu0 %v8850_v57 }
 0x525   : > { %v3294_v2 = vcombine.low %v10843_v59, %v10845_v61  ;;  %v2012_v62 = vrot.slane %v10830_v51, %v10880_v55  ;;  %v2016_v0 = vrot.slane %v10830_v51, %v10883_v58 }
 0x527   : > { %4196 = vmatpush1.bf16.msra.mxu0 %v8848_v63  ;;  %v3203_v35 = vpop.f32.mrb[0].mxu1 }
 0x528   : > { %4197 = vmatprep.subr.bf16.mxu0 %v8856_v1  ;;  %v10873_v37 = vadd.f32 %v3203_v35, %v2028_v33  ;;  %v3205_v38 = vpop.f32.mrb[1].mxu1 }
 0x529   : > { %v10875_v40 = vadd.f32 %v3205_v38, %v2032_v34  ;;  %v3207_v41 = vpop.f32.mrb[2].mxu1 }
 0x52a   : > { %v3208_v42 = vpop.f32.mrb[3].mxu1 }
 0x52b   : > { %4198 = vmatpush1.bf16.msra.mxu0 %v8854_v3  ;;  %v3371_v43 = vcombine.low %v10873_v37, %v10875_v40  ;;  %v3301_v3 = vrot.slane %v3294_v2, %v10556_v14 }
 0x52c   : > { %4199 = vmatprep.subr.bf16.mxu0 %v8862_v4 }
 0x52f   : > { %4200 = vmatpush1.bf16.msra.mxu0 %v8860_v5 }
 0x530   : > { %4201 = vmatprep.subr.bf16.mxu0 %v8868_v6 }
 0x533   : > { %4202 = vmatpush1.bf16.msra.mxu0 %v8866_v7 }
 0x534   : > { %4203 = vmatprep.subr.bf16.mxu0 %v8874_v8 }
 0x535   : > { %v3481_v27 = vpop.xlane.xlu0 %3480 }
 0x536   : > { %v3491_v44 = vmul.f32 0.00390625, %v3481_v27 }
 0x537   : > { %4204 = vmatpush1.bf16.msra.mxu0 %v8872_v10 }
 0x538   : > { %4205 = vmatprep.subr.bf16.mxu0 %v8880_v11  ;;  %v3484_v39 = vpop.xlane.xlu1 %3483  ;;  %v3495_v54 = vadd.f32 1e-05, %v3491_v44  ;;  %v3302_v11 = vcombine.high %v3301_v3, %v3301_v3 }
 0x539   : > { %v3487_v47 = vpop.xlane.xlu0 %3486  ;;  %v3492_v49 = vmul.f32 0.00390625, %v3484_v39 }
 0x53a   : > { %v3493_v26 = vmul.f32 0.00390625, %v3487_v47  ;;  %9196 = vrsqrt.f32 %v3495_v54  ;;  %v3316_v59 = vrot.slane %v3302_v11, %v10556_v14  ;;  %v8916_v11 = vld [vmem:[%s10272_s0 + $0x74] ss:$24 sps:$4 sm:$0xff]  }
 0x53b   : > { %4206 = vmatpush1.bf16.msra.mxu0 %v8878_v12  ;;  %v3496_v56 = vadd.f32 1e-05, %v3492_v49  ;;  %v3309_v12 = vrot.slane %v3301_v3, %v10556_v14 }
 0x53c   : > { %4207 = vmatprep.subr.bf16.mxu0 %v8886_v13  ;;  %v3490_v53 = vpop.xlane.xlu1 %3489  ;;  %v3497_v60 = vadd.f32 1e-05, %v3493_v26  ;;  %v3558_v41 = vrot.slane %v3316_v59, %v10833_v52 }
 0x53d   : > { %v3494_v57 = vmul.f32 0.00390625, %v3490_v53  ;;  %9198 = vrsqrt.f32 %v3496_v56  ;;  %v3546_v2 = vrot.slane %v3309_v12, %v10827_v50  ;;  %v3550_v32 = vrot.slane %v3309_v12, %v10833_v52  ;;  %v8914_v12 = vld [vmem:[%s10272_s0 + $0x70] ss:$24 sps:$4 sm:$0xff]  }
 0x53e   : > { %9200 = vrsqrt.f32 %v3497_v60 }
 0x53f   : > { %4208 = vmatpush1.bf16.msra.mxu0 %v8884_v15  ;;  %v3498_v63 = vadd.f32 1e-05, %v3494_v57 }
 0x540   : > { %4209 = vmatprep.subr.bf16.mxu0 %v8892_v17 }
 0x541   : > { %9202 = vrsqrt.f32 %v3498_v63 }
 0x543   : > { %4210 = vmatpush1.bf16.msra.mxu0 %v8890_v20 }
 0x544   : > { %4211 = vmatprep.subr.bf16.mxu0 %v8898_v21  ;;  %v9197_v15 = vpop.eup %9196 }
 0x545   : > { %v3504_v31 = vmul.f32 %v9197_v15, %v10689_v19 }
 0x547   : > { %4212 = vmatpush1.bf16.msra.mxu0 %v8896_v22  ;;  %v9199_v17 = vpop.eup %9198 }
 0x548   : > { %4213 = vmatprep.subr.bf16.mxu0 %v8904_v23  ;;  %v9201_v61 = vpop.eup %9200  ;;  %v3506_v38 = vmul.f32 %v9199_v17, %v10704_v29 }
 0x549   : > { %v3508_v39 = vmul.f32 %v9201_v61, %v10694_v28 }
 0x54b   : > { %4214 = vmatpush1.bf16.msra.mxu0 %v8902_v25  ;;  %v3503_v25 = vmul.f32 %v9197_v15, %v10687_v16  ;;  %v9203_v33 = vpop.eup %9202  ;;  %v3507_v16 = vmul.f32 %v9201_v61, %v10692_v24  ;;  %v8917_v15 = vld [vmem:[%s10272_s0 + $0xa0] ss:$24 sps:$4 sm:$0xff]   ;;  %v8928_v61 = vld [vmem:[%s10272_s0 + $0x134] ss:$24 sps:$4 sm:$0xff]  }
 0x54c   : > { %4289 = vmatprep.subr.bf16.mxu0 %v8910_v30  ;;  %v3505_v30 = vmul.f32 %v9199_v17, %v10702_v36  ;;  %v3554_v36 = vrot.slane %v3316_v59, %v10827_v50  ;;  %v3510_v49 = vmul.f32 %v9203_v33, %v10714_v48  ;;  %v3509_v26 = vmul.f32 %v9203_v33, %v10712_v45  ;;  %v8922_v17 = vld [vmem:[%s10272_s0 + $0xd4] ss:$24 sps:$4 sm:$0xff]   ;;  %v8923_v59 = vld [vmem:[%s10272_s0 + $0x100] ss:$24 sps:$4 sm:$0xff]  }
 0x561   : > { %v3121_v1 = vpop.f32.mrb[4].mxu0 }
 0x562   : > { %v3122_v4 = vadd.f32 %v3121_v1, %v2012_v62  ;;  %v3123_v5 = vpop.f32.mrb[5].mxu0  ;;  %v8908_v1 = vld [vmem:[%s10272_s0 + $0x10] ss:$24 sps:$4 sm:$0xff]  }
 0x563   : > { %v3124_v6 = vadd.f32 %v3123_v5, %v2016_v0  ;;  %v3125_v7 = vpop.f32.mrb[6].mxu0 }
 0x564   : > { %v3126_v8 = vpop.f32.mrb[7].mxu0 }
 0x565   : > { %v3319_v10 = vcombine.low %v3122_v4, %v3124_v6  ;;  %v8913_v6 = vld [vmem:[%s10272_s0 + $0x44] ss:$24 sps:$4 sm:$0xff]  }
 0x567   : > { %v3326_v13 = vrot.slane %v3319_v10, %v10556_v14  ;;  %v8911_v10 = vld [vmem:[%s10272_s0 + $0x40] ss:$24 sps:$4 sm:$0xff]  }
 0x569   : > { %v3327_v20 = vcombine.high %v3326_v13, %v3326_v13  ;;  %v3334_v21 = vrot.slane %v3326_v13, %v10556_v14  ;;  %v8919_v13 = vld [vmem:[%s10272_s0 + $0xa4] ss:$24 sps:$4 sm:$0xff]  }
 0x56b   : > { %v3341_v22 = vrot.slane %v3327_v20, %v10556_v14  ;;  %v3511_v23 = vadd.f32 1.0, %v3334_v21  ;;  %v8920_v20 = vld [vmem:[%s10272_s0 + $0xd0] ss:$24 sps:$4 sm:$0xff]   ;;  %v8925_v21 = vld [vmem:[%s10272_s0 + $0x104] ss:$24 sps:$4 sm:$0xff]  }
 0x56d   : > { %v3512_v34 = vadd.f32 1.0, %v3341_v22  ;;  %v3518_v27 = vrot.slane %v3511_v23, %v10827_v50  ;;  %v3522_v35 = vrot.slane %v3511_v23, %v10833_v52  ;;  %v8926_v22 = vld [vmem:[%s10272_s0 + $0x130] ss:$24 sps:$4 sm:$0xff]   ;;  %v8931_v23 = vld [vmem:[%s10272_s0 + $0x164] ss:$24 sps:$4 sm:$0xff]  }
 0x56f   : > { %v3535_v42 = vmul.f32 %v3518_v27, %v3503_v25  ;;  %v3537_v19 = vmul.f32 %v3518_v27, %v3505_v30  ;;  %v3536_v44 = vmul.f32 %v3522_v35, %v3504_v31  ;;  %v3538_v47 = vmul.f32 %v3522_v35, %v3506_v38  ;;  %v8929_v31 = vld [vmem:[%s10272_s0 + $0x160] ss:$24 sps:$4 sm:$0xff]  }
 0x570   : > { %v3530_v53 = vrot.slane %v3512_v34, %v10833_v52  ;;  %v3526_v29 = vrot.slane %v3512_v34, %v10827_v50 }
 0x571   : > { %v3564_v28 = vadd.f32 %v3550_v32, %v3536_v44  ;;  %v3566_v54 = vadd.f32 %v3550_v32, %v3538_v47  ;;  %v3563_v56 = vadd.f32 %v3546_v2, %v3535_v42  ;;  %v3565_v24 = vadd.f32 %v3546_v2, %v3537_v19  ;;  %v10939_v2 = vld [vmem:[%s10233_s9 + $0x8] sm:$0xf] }
 0x572   : > { %v3540_v57 = vmul.f32 %v3530_v53, %v3508_v39  ;;  %v3542_v60 = vmul.f32 %v3530_v53, %v3510_v49  ;;  %v3539_v62 = vmul.f32 %v3526_v29, %v3507_v16  ;;  %v3541_v63 = vmul.f32 %v3526_v29, %v3509_v26  ;;  %v8934_v32 = vld [vmem:[%s10272_s0 + $0x194] ss:$24 sps:$4 sm:$0xff]   ;;  %v8932_v39 = vld [vmem:[%s10272_s0 + $0x190] ss:$24 sps:$4 sm:$0xff]   ;;  %v8937_v16 = vld [vmem:[%s10272_s0 + $0x1c4] ss:$24 sps:$4 sm:$0xff]  }
 0x573   : > { %v3572_v0 = vpack.c.bf16 %v3566_v54, %v3564_v28  ;;  %v10915_v3 = vpack.c.bf16 %v3565_v24, %v3563_v56  ;;  %v2044_v25 = vrot.slane %v10939_v2, %v10880_v55  ;;  %v2048_v30 = vrot.slane %v10939_v2, %v10883_v58  ;;  %v8935_v42 = vld [vmem:[%s10272_s0 + $0x1c0] ss:$24 sps:$4 sm:$0xff]   ;;  %v8940_v19 = vld [vmem:[%s10272_s0 + $0x1f4] ss:$24 sps:$4 sm:$0xff]   ;;  %v8938_v47 = vld [vmem:[%s10272_s0 + $0x1f0] ss:$24 sps:$4 sm:$0xff]  }
 0x574   : > { %v3568_v48 = vadd.f32 %v3558_v41, %v3540_v57  ;;  %v3570_v4 = vadd.f32 %v3558_v41, %v3542_v60  ;;  %v3567_v45 = vadd.f32 %v3554_v36, %v3539_v62  ;;  %v3569_v5 = vadd.f32 %v3554_v36, %v3541_v63  ;;  %v8943_v53 = vld [vmem:[%s10272_s0 + $0x224] ss:$24 sps:$4 sm:$0xff]   ;;  %v8941_v29 = vld [vmem:[%s10272_s0 + $0x220] ss:$24 sps:$4 sm:$0xff]   ;;  %v8946_v54 = vld [vmem:[%s10272_s0 + $0x254] ss:$24 sps:$4 sm:$0xff]  }
 0x575   : > { %4215 = vmatprep.mubr.bf16.mxu0 %v3572_v0  ;;  %4268 = vmatprep.mubr.bf16.mxu1 %v3572_v0  ;;  %v2019_v44 = vsub.s32 4, %v10550_v9  ;;  %v2023_v49 = vsub.s32 5, %v10550_v9  ;;  %v8944_v60 = vld [vmem:[%s10272_s0 + $0x250] ss:$24 sps:$4 sm:$0xff]  }
 0x576   : > { %4216 = vmatmul.mubr.bf16.vlgmr.msra.gmra.mrb[16].mxu0 %v10915_v3  ;;  %4269 = vmatmul.mubr.bf16.vlgmr.msra.gmra.mrb[8].mxu1 %v10915_v3  ;;  %v10920_v7 = vpack.c.bf16 %v3570_v4, %v3568_v48  ;;  %v10922_v8 = vpack.c.bf16 %v3569_v5, %v3567_v45  ;;  %v8947_v48 = vld [vmem:[%s10272_s0 + $0x280] ss:$24 sps:$4 sm:$0xff]   ;;  %v8952_v4 = vld [vmem:[%s10272_s0 + $0x2b4] ss:$24 sps:$4 sm:$0xff]   ;;  %v8950_v45 = vld [vmem:[%s10272_s0 + $0x2b0] ss:$24 sps:$4 sm:$0xff]  }
 0x577   : > { %4290 = vmatpush1.bf16.msra.mxu0 %v8908_v1  ;;  %v2020_v26 = vrot.slane %v10830_v51, %v2019_v44  ;;  %v2024_v28 = vrot.slane %v10830_v51, %v2023_v49  ;;  %v8955_v5 = vld [vmem:[%s10272_s0 + $0x2e4] ss:$24 sps:$4 sm:$0xff]  }
 0x578   : > { %4225 = vmatprep.mubr.bf16.mxu0 %v10920_v7  ;;  %4278 = vmatprep.mubr.bf16.mxu1 %v10920_v7 }
 0x579   : > { %4291 = vmatprep.subr.bf16.mxu0 %v8913_v6  ;;  %v8953_v6 = vld [vmem:[%s10272_s0 + $0x2e0] ss:$24 sps:$4 sm:$0xff]  }
 0x57b   : > { %4292 = vmatpush1.bf16.msra.mxu0 %v8911_v10  ;;  %v9775_v10 = vmov 0.0  }
 0x57c   : > { %4293 = vmatprep.subr.bf16.mxu0 %v8916_v11  ;;  %v3285_v33 = vpop.f32.mrb[4].mxu1  ;;  %8210 = vmatprep.subr.bf16.mxu1 %v9775_v10  ;;  %v2036_v11 = vrot.slane %v10939_v2, %v10827_v50 }
 0x57d   : > { %v10949_v34 = vadd.f32 %v3285_v33, %v2044_v25  ;;  %v3287_v27 = vpop.f32.mrb[5].mxu1 }
 0x57e   : > { %4226 = vmatmul.mubr.bf16.gmra.mrb[20].mxu0 %v10922_v8  ;;  %4279 = vmatmul.mubr.bf16.gmra.mrb[12].mxu1 %v10922_v8  ;;  %v10951_v35 = vadd.f32 %v3287_v27, %v2048_v30  ;;  %v3289_v38 = vpop.f32.mrb[6].mxu1 }
 0x57f   : > { %4294 = vmatpush1.bf16.msra.mxu0 %v8914_v12  ;;  %4321 = vmatprep.mubr.bf16.mxu0 %v3572_v0  ;;  %v3290_v41 = vpop.f32.mrb[7].mxu1  ;;  %v8949_v0 = vld [vmem:[%s10272_s0 + $0x284] ss:$24 sps:$4 sm:$0xff]   ;;  %v2040_v12 = vrot.slane %v10939_v2, %v10833_v52 }
 0x580   : > { %4295 = vmatprep.subr.bf16.mxu0 %v8919_v13  ;;  %v3423_v36 = vcombine.low %v10949_v34, %v10951_v35  ;;  %8212 = vmatprep.mubr.msk.bf16.mxu1 %vm9776_vm1, %v9775_v10 }
 0x583   : > { %4296 = vmatpush1.bf16.msra.mxu0 %v8917_v15 }
 0x584   : > { %4297 = vmatprep.subr.bf16.mxu0 %v8922_v17 }
 0x587   : > { %4298 = vmatpush1.bf16.msra.mxu0 %v8920_v20 }
 0x588   : > { %4299 = vmatprep.subr.bf16.mxu0 %v8925_v21  ;;  %v3671_v21 = vld [vmem:[%s10277_s23] sm:$0x3f] }
 0x589   : > { %v3688_v25 = vrot.slane %v3671_v21, %v10883_v58 }
 0x58b   : > { %4300 = vmatpush1.bf16.msra.mxu0 %v8923_v59  ;;  %v3676_v59 = vrot.slane %v3671_v21, %v10827_v50 }
 0x58c   : > { %4301 = vmatprep.subr.bf16.mxu0 %v8928_v61  ;;  %v3680_v61 = vrot.slane %v3671_v21, %v10833_v52 }
 0x58f   : > { %4302 = vmatpush1.bf16.msra.mxu0 %v8926_v22  ;;  %v3684_v22 = vrot.slane %v3671_v21, %v10880_v55 }
 0x590   : > { %4303 = vmatprep.subr.bf16.mxu0 %v8931_v23 }
 0x593   : > { %4304 = vmatpush1.bf16.msra.mxu0 %v8929_v31 }
 0x594   : > { %4305 = vmatprep.subr.bf16.mxu0 %v8934_v32 }
 0x597   : > { %4306 = vmatpush1.bf16.msra.mxu0 %v8932_v39 }
 0x598   : > { %4307 = vmatprep.subr.bf16.mxu0 %v8937_v16 }
 0x59b   : > { %4308 = vmatpush1.bf16.msra.mxu0 %v8935_v42 }
 0x59c   : > { %4309 = vmatprep.subr.bf16.mxu0 %v8940_v19 }
 0x59f   : > { %4310 = vmatpush1.bf16.msra.mxu0 %v8938_v47 }
 0x5a0   : > { %4311 = vmatprep.subr.bf16.mxu0 %v8943_v53 }
 0x5a1   : > { %v3162_v56 = vpop.f32.mrb[8].mxu0 }
 0x5a2   : > { %v10971_v24 = vadd.f32 %v3162_v56, %v2020_v26  ;;  %v3164_v57 = vpop.f32.mrb[9].mxu0 }
 0x5a3   : > { %4312 = vmatpush1.bf16.msra.mxu0 %v8941_v29  ;;  %v10974_v62 = vadd.f32 %v3164_v57, %v2024_v28  ;;  %v3166_v63 = vpop.f32.mrb[10].mxu0 }
 0x5a4   : > { %4313 = vmatprep.subr.bf16.mxu0 %v8946_v54  ;;  %v3167_v1 = vpop.f32.mrb[11].mxu0 }
 0x5a5   : > { %v3346_v51 = vcombine.low %v10971_v24, %v10974_v62 }
 0x5a7   : > { %4314 = vmatpush1.bf16.msra.mxu0 %v8944_v60 }
 0x5a8   : > { %4315 = vmatprep.subr.bf16.mxu0 %v8949_v0 }
 0x5ab   : > { %4316 = vmatpush1.bf16.msra.mxu0 %v8947_v48 }
 0x5ac   : > { %4317 = vmatprep.subr.bf16.mxu0 %v8952_v4 }
 0x5af   : > { %4318 = vmatpush1.bf16.msra.mxu0 %v8950_v45 }
 0x5b0   : > { %4319 = vmatprep.subr.bf16.mxu0 %v8955_v5 }
 0x5b3   : > { %4320 = vmatpush1.bf16.msra.mxu0 %v8953_v6 }
 0x5b6   : > { %4322 = vmatmul.mubr.bf16.vlgmr.msra.gmra.mrb[24].mxu0 %v10915_v3 }
 0x5b7   : > { %4331 = vmatprep.mubr.bf16.mxu0 %v10920_v7 }
 0x5be   : > { %4332 = vmatmul.mubr.bf16.gmra.mrb[28].mxu0 %v10922_v8 }
 0x5e1   : > { %v3244_v13 = vpop.f32.mrb[12].mxu0 }
 0x5e2   : > { %v10994_v3 = vadd.f32 %v3244_v13, %v2036_v11  ;;  %v3246_v15 = vpop.f32.mrb[13].mxu0 }
 0x5e3   : > { %v10996_v7 = vadd.f32 %v3246_v15, %v2040_v12  ;;  %v3248_v8 = vpop.f32.mrb[14].mxu0 }
 0x5e4   : > { %v3249_v17 = vpop.f32.mrb[15].mxu0 }
 0x5e5   : > { %v3396_v20 = vcombine.low %v10994_v3, %v10996_v7 }
 0x649   : > { %v4217_v23 = vpop.f32.mrb[16].mxu0  ;;  %v4270_v2 = vpop.f32.mrb[8].mxu1 }
 0x64a   : > { %v4218_v30 = vadd.f32 %v4217_v23, %v3676_v59  ;;  %v4219_v31 = vpop.f32.mrb[17].mxu0  ;;  %v4272_v32 = vpop.f32.mrb[9].mxu1  ;;  %v4271_v39 = vadd.f32 %v4270_v2, %v3684_v22 }
 0x64b   : > { %v4220_v33 = vadd.f32 %v4219_v31, %v3680_v61  ;;  %v4221_v27 = vpop.f32.mrb[18].mxu0  ;;  %v4274_v38 = vpop.f32.mrb[10].mxu1  ;;  %v11005_v47 = vadd.f32 %v4272_v32, %v3688_v25 }
 0x64c   : > { %v4222_v41 = vadd.f32 %v4221_v27, %v3676_v59  ;;  %v4275_v16 = vadd.f32 %v4274_v38, %v3684_v22  ;;  %v4223_v42 = vpop.f32.mrb[19].mxu0  ;;  %v4276_v19 = vpop.f32.mrb[11].mxu1  ;;  %v4342_v29 = vmul.f32 0.088388346, %v4218_v30 }
 0x64d   : > { %v4224_v53 = vadd.f32 %v4223_v42, %v3680_v61  ;;  %v11007_v26 = vadd.f32 %v4276_v19, %v3688_v25  ;;  %v11009_v56 = vmul.f32 0.088388346, %v4220_v33 }
 0x64e   : > { %v4343_v28 = vmul.f32 0.088388346, %v4222_v41  ;;  %v4348_v54 = vpack.c.bf16 %v4275_v16, %v4271_v39 }
 0x64f   : > { %v11011_v57 = vmul.f32 0.088388346, %v4224_v53  ;;  %v4575_v60 = vpack.c.bf16 %v11007_v26, %v11005_v47 }
 0x650   : > { %v4346_v63 = vpack.c.bf16 %v4343_v28, %v4342_v29  ;;  %8211 = vmatpush3.bf16.xpose.msra.mxu1 %v4348_v54 }
 0x651   : > { %v4573_v0 = vpack.c.bf16 %v11011_v57, %v11009_v56  ;;  %v4227_v1 = vpop.f32.mrb[20].mxu0  ;;  %v4280_v48 = vpop.f32.mrb[12].mxu1  ;;  %8216 = vmatprep.subr.bf16.mxu1 %v9775_v10 }
 0x652   : > { %v4228_v4 = vadd.f32 %v4227_v1, %v3676_v59  ;;  %v4229_v45 = vpop.f32.mrb[21].mxu0  ;;  %v4282_v5 = vpop.f32.mrb[13].mxu1  ;;  %v4281_v13 = vadd.f32 %v4280_v48, %v3684_v22 }
 0x653   : > { %v4230_v6 = vadd.f32 %v4229_v45, %v3680_v61  ;;  %v4231_v11 = vpop.f32.mrb[22].mxu0  ;;  %v4284_v12 = vpop.f32.mrb[14].mxu1  ;;  %v11018_v2 = vadd.f32 %v4282_v5, %v3688_v25 }
 0x654   : > { %v4232_v15 = vadd.f32 %v4231_v11, %v3676_v59  ;;  %v4285_v8 = vadd.f32 %v4284_v12, %v3684_v22  ;;  %v4233_v17 = vpop.f32.mrb[23].mxu0  ;;  %v4286_v23 = vpop.f32.mrb[15].mxu1  ;;  %v4344_v32 = vmul.f32 0.088388346, %v4228_v4  ;;  %v3692_v22 = vrot.slane %v3671_v21, %v2019_v44 }
 0x655   : > { %v4234_v30 = vadd.f32 %v4233_v17, %v3680_v61  ;;  %v11020_v31 = vadd.f32 %v4286_v23, %v3688_v25  ;;  %v11022_v38 = vmul.f32 0.088388346, %v4230_v6  ;;  %v3696_v25 = vrot.slane %v3671_v21, %v2023_v49 }
 0x656   : > { %v4345_v33 = vmul.f32 0.088388346, %v4232_v15  ;;  %v4349_v27 = vpack.c.bf16 %v4285_v8, %v4281_v13 }
 0x657   : > { %v11024_v39 = vmul.f32 0.088388346, %v4234_v30  ;;  %v4576_v41 = vpack.c.bf16 %v11020_v31, %v11018_v2  ;;  %8213 = vmatmul.mubr.bf16.vlgmr.msra.gmra.mrb[16].mxu1 %v4346_v63 }
 0x658   : > { %v4347_v59 = vpack.c.bf16 %v4345_v33, %v4344_v32  ;;  %8217 = vmatpush3.bf16.xpose.msra.mxu1 %v4349_v27  ;;  %8218 = vmatprep.mubr.msk.bf16.mxu1 %vm9776_vm1, %v9775_v10 }
 0x659   : > { %v4574_v61 = vpack.c.bf16 %v11024_v39, %v11022_v38  ;;  %8222 = vmatprep.subr.bf16.mxu1 %v9775_v10 }
 0x65f   : > { %8219 = vmatmul.mubr.bf16.vlgmr.msra.gmra.mrb[20].mxu1 %v4347_v59 }
 0x660   : > { %8224 = vmatprep.mubr.msk.bf16.mxu1 %vm9776_vm1, %v9775_v10 }
 0x689   : > { %v4323_v16 = vpop.f32.mrb[24].mxu0 }
 0x68a   : > { %v4325_v42 = vpop.f32.mrb[25].mxu0  ;;  %v4324_v53 = vadd.f32 %v4323_v16, %v3692_v22 }
 0x68b   : > { %v4327_v19 = vpop.f32.mrb[26].mxu0  ;;  %v11039_v54 = vadd.f32 %v4325_v42, %v3696_v25 }
 0x68c   : > { %v4328_v29 = vadd.f32 %v4327_v19, %v3692_v22  ;;  %v4329_v28 = vpop.f32.mrb[27].mxu0 }
 0x68d   : > { %v11041_v63 = vadd.f32 %v4329_v28, %v3696_v25 }
 0x68e   : > { %v4350_v1 = vpack.c.bf16 %v4328_v29, %v4324_v53 }
 0x68f   : > { %v4577_v48 = vpack.c.bf16 %v11041_v63, %v11039_v54 }
 0x690   : > { %8223 = vmatpush3.bf16.msra.mxu1 %v4350_v1 }
 0x691   : > { %v4333_v4 = vpop.f32.mrb[28].mxu0  ;;  %8228 = vmatprep.subr.bf16.mxu1 %v9775_v10 }
 0x692   : > { %v11046_v9 = vadd.f32 %v4333_v4, %v3692_v22  ;;  %v4335_v44 = vpop.f32.mrb[29].mxu0 }
 0x693   : > { %v11048_v49 = vadd.f32 %v4335_v44, %v3696_v25  ;;  %v4337_v21 = vpop.f32.mrb[30].mxu0 }
 0x694   : > { %v11050_v45 = vadd.f32 %v4337_v21, %v3692_v22  ;;  %v4339_v5 = vpop.f32.mrb[31].mxu0 }
 0x695   : > { %v11052_v6 = vadd.f32 %v4339_v5, %v3696_v25 }
 0x696   : > { %v4351_v11 = vpack.c.bf16 %v11050_v45, %v11046_v9 }
 0x697   : > { %v4578_v12 = vpack.c.bf16 %v11052_v6, %v11048_v49 }
 0x72a   : > { %v4386_v13 = vpop.f32.mrb[16].mxu1 }
 0x72b   : > { %v8214_v15 = vpop.f32.mrb[17].mxu1  ;;  %v4435_v8 = vsel %vm4434_vm2, %v4386_v13, -inf }
 0x72c   : > { %4436 = vmax.xlane.f32.xlu0 %v4435_v8  ;;  %v4389_v17 = vpop.f32.mrb[18].mxu1 }
 0x72d   : > { %v8215_v23 = vpop.f32.mrb[19].mxu1  ;;  %v4438_v30 = vsel %vm4434_vm2, %v4389_v17, -inf }
 0x72e   : > { %4439 = vmax.xlane.f32.xlu1 %v4438_v30 }
 0x732   : > { %v4427_v32 = vpop.f32.mrb[20].mxu1 }
 0x733   : > { %v8220_v33 = vpop.f32.mrb[21].mxu1  ;;  %v4441_v27 = vsel %vm4434_vm2, %v4427_v32, -inf }
 0x734   : > { %4442 = vmax.xlane.f32.xlu0 %v4441_v27  ;;  %v4430_v59 = vpop.f32.mrb[22].mxu1 }
 0x735   : > { %v8221_v22 = vpop.f32.mrb[23].mxu1  ;;  %v4444_v25 = vsel %vm4434_vm2, %v4430_v59, -inf }
 0x736   : > { %4445 = vmax.xlane.f32.xlu1 %v4444_v25 }
 0x7b9   : > { %v4437_v16 = vpop.xlane.xlu0 %4436 }
 0x7ba   : > { %v4447_v42 = vsub.f32 %v4386_v13, %v4437_v16 }
 0x7bb   : > { %v4440_v19 = vpop.xlane.xlu1 %4439 }
 0x7bc   : > { %v4451_v53 = vmul.f32 1.442695, %v4447_v42  ;;  %v4448_v29 = vsub.f32 %v4389_v17, %v4440_v19 }
 0x7be   : > { %9204 = vpow2.f32 %v4451_v53  ;;  %v4453_v28 = vmul.f32 1.442695, %v4448_v29 }
 0x7c0   : > { %9206 = vpow2.f32 %v4453_v28 }
 0x7c1   : > { %v4443_v1 = vpop.xlane.xlu0 %4442 }
 0x7c2   : > { %v4449_v4 = vsub.f32 %v4427_v32, %v4443_v1 }
 0x7c3   : > { %v4446_v9 = vpop.xlane.xlu1 %4445 }
 0x7c4   : > { %v4455_v44 = vmul.f32 1.442695, %v4449_v4  ;;  %v4450_v21 = vsub.f32 %v4430_v59, %v4446_v9 }
 0x7c6   : > { %9208 = vpow2.f32 %v4455_v44  ;;  %v4457_v45 = vmul.f32 1.442695, %v4450_v21 }
 0x7c8   : > { %v9205_v5 = vpop.eup %9204  ;;  %9210 = vpow2.f32 %v4457_v45 }
 0x7c9   : > { %v4459_v15 = vsel %vm4434_vm2, %v9205_v5, 0.0 }
 0x7ca   : > { %v9207_v8 = vpop.eup %9206  ;;  %4460 = vadd.xlane.f32.xlu0 %v4459_v15 }
 0x7cb   : > { %v4462_v13 = vsel %vm4434_vm2, %v9207_v8, 0.0 }
 0x7cc   : > { %4463 = vadd.xlane.f32.xlu1 %v4462_v13 }
 0x7d0   : > { %v9209_v17 = vpop.eup %9208 }
 0x7d1   : > { %v4465_v23 = vsel %vm4434_vm2, %v9209_v17, 0.0 }
 0x7d2   : > { %v9211_v30 = vpop.eup %9210  ;;  %4466 = vadd.xlane.f32.xlu0 %v4465_v23 }
 0x7d3   : > { %v4468_v32 = vsel %vm4434_vm2, %v9211_v30, 0.0 }
 0x7d4   : > { %4469 = vadd.xlane.f32.xlu1 %v4468_v32 }
 0x857   : > { %v4461_v33 = vpop.xlane.xlu0 %4460 }
 0x858   : > { %9212 = vrcp.f32 %v4461_v33 }
 0x859   : > { %v4464_v27 = vpop.xlane.xlu1 %4463 }
 0x85a   : > { %9214 = vrcp.f32 %v4464_v27 }
 0x85f   : > { %v4467_v59 = vpop.xlane.xlu0 %4466 }
 0x860   : > { %9216 = vrcp.f32 %v4467_v59 }
 0x861   : > { %v4470_v22 = vpop.xlane.xlu1 %4469 }
 0x862   : > { %v9213_v25 = vpop.eup %9212  ;;  %9218 = vrcp.f32 %v4470_v22 }
 0x863   : > { %v4475_v42 = vmul.f32 %v9213_v25, %v9205_v5 }
 0x864   : > { %v9215_v16 = vpop.eup %9214 }
 0x865   : > { %v4476_v19 = vmul.f32 %v9215_v16, %v9207_v8 }
 0x867   : > { %v4479_v53 = vpack.c.bf16 %v4476_v19, %v4475_v42 }
 0x869   : > { %8225 = vmatmul.mubr.msk.bf16.vlgmr.msra.gmra.mrb[24].mxu1 %vm4434_vm2, %v4479_v53 }
 0x86a   : > { %v9217_v29 = vpop.eup %9216  ;;  %8229 = vmatpush3.bf16.msra.mxu1 %v4351_v11  ;;  %8230 = vmatprep.mubr.msk.bf16.mxu1 %vm9776_vm1, %v9775_v10 }
 0x86b   : > { %8234 = vmatprep.subr.bf16.mxu1 %v9775_v10  ;;  %v4477_v1 = vmul.f32 %v9217_v29, %v9209_v17 }
 0x86c   : > { %v9219_v28 = vpop.eup %9218 }
 0x86d   : > { %v4478_v4 = vmul.f32 %v9219_v28, %v9211_v30 }
 0x86f   : > { %v4480_v9 = vpack.c.bf16 %v4478_v4, %v4477_v1 }
 0x871   : > { %8231 = vmatmul.mubr.msk.bf16.vlgmr.msra.gmra.mrb[28].mxu1 %vm4434_vm2, %v4480_v9 }
 0x872   : > { %8236 = vmatprep.mubr.msk.bf16.mxu1 %vm9776_vm1, %v9775_v10 }
 0x873   : > { %8235 = vmatpush3.bf16.xpose.msra.mxu1 %v4575_v60 }
 0x874   : > { %8240 = vmatprep.subr.bf16.mxu1 %v9775_v10 }
 0x87a   : > { %8237 = vmatmul.mubr.bf16.vlgmr.msra.gmra.mrb[32].mxu1 %v4573_v0 }
 0x87b   : > { %8241 = vmatpush3.bf16.xpose.msra.mxu1 %v4576_v41  ;;  %8242 = vmatprep.mubr.msk.bf16.mxu1 %vm9776_vm1, %v9775_v10 }
 0x87c   : > { %8246 = vmatprep.subr.bf16.mxu1 %v9775_v10 }
 0x882   : > { %8243 = vmatmul.mubr.bf16.vlgmr.msra.gmra.mrb[36].mxu1 %v4574_v61 }
 0x883   : > { %8247 = vmatpush3.bf16.msra.mxu1 %v4577_v48  ;;  %8248 = vmatprep.mubr.msk.bf16.mxu1 %vm9776_vm1, %v9775_v10 }
 0x884   : > { %8252 = vmatprep.subr.bf16.mxu1 %v9775_v10 }
 0x93c   : > { %v11095_v47 = vpop.f32.mrb[24].mxu1 }
 0x93d   : > { %v8226_v26 = vpop.f32.mrb[25].mxu1 }
 0x93e   : > { %v11097_v56 = vpop.f32.mrb[26].mxu1 }
 0x93f   : > { %v4795_v57 = vpack.c.bf16 %v11097_v56, %v11095_v47  ;;  %v8227_v60 = vpop.f32.mrb[27].mxu1 }
 0x940   : > { %v8956_v60 = vld [vmem:[%s10262_s29] ss:$8 sps:$4 sm:$0xff]  }
 0x944   : > { %v11101_v0 = vpop.f32.mrb[28].mxu1 }
 0x945   : > { %v8232_v2 = vpop.f32.mrb[29].mxu1 }
 0x946   : > { %v11103_v31 = vpop.f32.mrb[30].mxu1  ;;  %v8958_v2 = vld [vmem:[%s10262_s29 + $0x4] ss:$8 sps:$4 sm:$0xff]  }
 0x947   : > { %v4797_v38 = vpack.c.bf16 %v11103_v31, %v11101_v0  ;;  %v8233_v39 = vpop.f32.mrb[31].mxu1  ;;  %5003 = vmatprep.subr.bf16.mxu0 %v8958_v2 }
 0x948   : > { %v8961_v39 = vld [vmem:[%s10262_s29 + $0x14] ss:$8 sps:$4 sm:$0xff]   ;;  %5004 = vmatpush1.bf16.msra.mxu0 %v8956_v60 }
 0x949   : > { %5005 = vmatprep.subr.bf16.mxu0 %v8961_v39 }
 0x94d   : > { %v4613_v41 = vpop.f32.mrb[32].mxu1 }
 0x94e   : > { %v8238_v61 = vpop.f32.mrb[33].mxu1  ;;  %v4661_v54 = vsel %vm4434_vm2, %v4613_v41, -inf }
 0x94f   : > { %4662 = vmax.xlane.f32.xlu0 %v4661_v54  ;;  %v4616_v63 = vpop.f32.mrb[34].mxu1  ;;  %v8964_v61 = vld [vmem:[%s10262_s29 + $0x24] ss:$8 sps:$4 sm:$0xff]   ;;  %v8962_v54 = vld [vmem:[%s10262_s29 + $0x20] ss:$8 sps:$4 sm:$0xff]  }
 0x950   : > { %v8239_v48 = vpop.f32.mrb[35].mxu1  ;;  %v4664_v11 = vsel %vm4434_vm2, %v4616_v63, -inf }
 0x951   : > { %4665 = vmax.xlane.f32.xlu1 %v4664_v11  ;;  %v8965_v48 = vld [vmem:[%s10262_s29 + $0x30] ss:$8 sps:$4 sm:$0xff]   ;;  %v8970_v11 = vld [vmem:[%s10262_s29 + $0x44] ss:$8 sps:$4 sm:$0xff]  }
 0x955   : > { %v4654_v44 = vpop.f32.mrb[36].mxu1 }
 0x956   : > { %v8244_v21 = vpop.f32.mrb[37].mxu1  ;;  %v4667_v45 = vsel %vm4434_vm2, %v4654_v44, -inf }
 0x957   : > { %4668 = vmax.xlane.f32.xlu0 %v4667_v45  ;;  %v4657_v5 = vpop.f32.mrb[38].mxu1  ;;  %v8973_v21 = vld [vmem:[%s10262_s29 + $0x54] ss:$8 sps:$4 sm:$0xff]   ;;  %v8971_v45 = vld [vmem:[%s10262_s29 + $0x50] ss:$8 sps:$4 sm:$0xff]  }
 0x958   : > { %v8245_v15 = vpop.f32.mrb[39].mxu1  ;;  %v4670_v8 = vsel %vm4434_vm2, %v4657_v5, -inf }
 0x959   : > { %4671 = vmax.xlane.f32.xlu1 %v4670_v8  ;;  %v8974_v15 = vld [vmem:[%s10262_s29 + $0x60] ss:$8 sps:$4 sm:$0xff]   ;;  %v8979_v8 = vld [vmem:[%s10262_s29 + $0x74] ss:$8 sps:$4 sm:$0xff]  }
 0x9dc   : > { %v4663_v13 = vpop.xlane.xlu0 %4662 }
 0x9dd   : > { %v4673_v17 = vsub.f32 %v4613_v41, %v4663_v13  ;;  %v8959_v41 = vld [vmem:[%s10262_s29 + $0x10] ss:$8 sps:$4 sm:$0xff]  }
 0x9de   : > { %v4666_v23 = vpop.xlane.xlu1 %4665  ;;  %5006 = vmatpush1.bf16.msra.mxu0 %v8959_v41  ;;  %v8977_v13 = vld [vmem:[%s10262_s29 + $0x70] ss:$8 sps:$4 sm:$0xff]  }
 0x9df   : > { %v4677_v30 = vmul.f32 1.442695, %v4673_v17  ;;  %v4674_v32 = vsub.f32 %v4616_v63, %v4666_v23  ;;  %5007 = vmatprep.subr.bf16.mxu0 %v8964_v61  ;;  %v8967_v63 = vld [vmem:[%s10262_s29 + $0x34] ss:$8 sps:$4 sm:$0xff]   ;;  %v8982_v17 = vld [vmem:[%s10262_s29 + $0x84] ss:$8 sps:$4 sm:$0xff]  }
 0x9e0   : > { %v8980_v23 = vld [vmem:[%s10262_s29 + $0x80] ss:$8 sps:$4 sm:$0xff]  }
 0x9e1   : > { %9220 = vpow2.f32 %v4677_v30  ;;  %v4679_v33 = vmul.f32 1.442695, %v4674_v32  ;;  %v8985_v30 = vld [vmem:[%s10262_s29 + $0x94] ss:$8 sps:$4 sm:$0xff]   ;;  %v8983_v32 = vld [vmem:[%s10262_s29 + $0x90] ss:$8 sps:$4 sm:$0xff]  }
 0x9e2   : > { %5008 = vmatpush1.bf16.msra.mxu0 %v8962_v54 }
 0x9e3   : > { %9222 = vpow2.f32 %v4679_v33  ;;  %5009 = vmatprep.subr.bf16.mxu0 %v8967_v63  ;;  %v8988_v33 = vld [vmem:[%s10262_s29 + $0xa4] ss:$8 sps:$4 sm:$0xff]  }
 0x9e4   : > { %v4669_v27 = vpop.xlane.xlu0 %4668 }
 0x9e5   : > { %v4675_v59 = vsub.f32 %v4654_v44, %v4669_v27  ;;  %v8968_v44 = vld [vmem:[%s10262_s29 + $0x40] ss:$8 sps:$4 sm:$0xff]  }
 0x9e6   : > { %v4672_v22 = vpop.xlane.xlu1 %4671  ;;  %5010 = vmatpush1.bf16.msra.mxu0 %v8965_v48  ;;  %v8986_v27 = vld [vmem:[%s10262_s29 + $0xa0] ss:$8 sps:$4 sm:$0xff]  }
 0x9e7   : > { %v4681_v25 = vmul.f32 1.442695, %v4675_v59  ;;  %v4676_v16 = vsub.f32 %v4657_v5, %v4672_v22  ;;  %5011 = vmatprep.subr.bf16.mxu0 %v8970_v11  ;;  %v8976_v5 = vld [vmem:[%s10262_s29 + $0x64] ss:$8 sps:$4 sm:$0xff]   ;;  %v8991_v59 = vld [vmem:[%s10262_s29 + $0xb4] ss:$8 sps:$4 sm:$0xff]  }
 0x9e8   : > { %v8989_v22 = vld [vmem:[%s10262_s29 + $0xb0] ss:$8 sps:$4 sm:$0xff]  }
 0x9e9   : > { %9224 = vpow2.f32 %v4681_v25  ;;  %v4683_v42 = vmul.f32 1.442695, %v4676_v16  ;;  %v8994_v25 = vld [vmem:[%s10262_s29 + $0xc4] ss:$8 sps:$4 sm:$0xff]   ;;  %v8992_v16 = vld [vmem:[%s10262_s29 + $0xc0] ss:$8 sps:$4 sm:$0xff]  }
 0x9ea   : > { %5012 = vmatpush1.bf16.msra.mxu0 %v8968_v44 }
 0x9eb   : > { %v11111_v19 = vpop.eup %9220  ;;  %9226 = vpow2.f32 %v4683_v42  ;;  %5013 = vmatprep.subr.bf16.mxu0 %v8973_v21  ;;  %v8997_v42 = vld [vmem:[%s10262_s29 + $0xd4] ss:$8 sps:$4 sm:$0xff]  }
 0x9ec   : > { %v4685_v53 = vsel %vm4434_vm2, %v11111_v19, 0.0 }
 0x9ed   : > { %v11115_v29 = vpop.eup %9222  ;;  %4686 = vadd.xlane.f32.xlu0 %v4685_v53  ;;  %v8995_v53 = vld [vmem:[%s10262_s29 + $0xd0] ss:$8 sps:$4 sm:$0xff]  }
 0x9ee   : > { %v4688_v28 = vsel %vm4434_vm2, %v11115_v29, 0.0  ;;  %5014 = vmatpush1.bf16.msra.mxu0 %v8971_v45 }
 0x9ef   : > { %4689 = vadd.xlane.f32.xlu1 %v4688_v28  ;;  %5015 = vmatprep.subr.bf16.mxu0 %v8976_v5  ;;  %v9000_v28 = vld [vmem:[%s10262_s29 + $0xe4] ss:$8 sps:$4 sm:$0xff]  }
 0x9f2   : > { %5016 = vmatpush1.bf16.msra.mxu0 %v8974_v15 }
 0x9f3   : > { %v11119_v1 = vpop.eup %9224  ;;  %5017 = vmatprep.subr.bf16.mxu0 %v8979_v8 }
 0x9f4   : > { %v4691_v4 = vsel %vm4434_vm2, %v11119_v1, 0.0 }
 0x9f5   : > { %v11123_v9 = vpop.eup %9226  ;;  %4692 = vadd.xlane.f32.xlu0 %v4691_v4  ;;  %v8998_v4 = vld [vmem:[%s10262_s29 + $0xe0] ss:$8 sps:$4 sm:$0xff]  }
 0x9f6   : > { %v4694_v26 = vsel %vm4434_vm2, %v11123_v9, 0.0  ;;  %5018 = vmatpush1.bf16.msra.mxu0 %v8977_v13 }
 0x9f7   : > { %4695 = vadd.xlane.f32.xlu1 %v4694_v26  ;;  %5019 = vmatprep.subr.bf16.mxu0 %v8982_v17 }
 0x9fa   : > { %5020 = vmatpush1.bf16.msra.mxu0 %v8980_v23  ;;  %v3353_v23 = vrot.slane %v3346_v51, %v10556_v14 }
 0x9fb   : > { %5021 = vmatprep.subr.bf16.mxu0 %v8985_v30  ;;  %v4831_v30 = vld [vmem:[%s10282_s17] sm:$0x3] }
 0x9fc   : > { %v4836_v47 = vrot.slane %v4831_v30, %v10827_v50  ;;  %v4840_v56 = vrot.slane %v4831_v30, %v10833_v52  ;;  %v9290_v30 = vld [vmem:[#allocation2 + $0x30] sm:$0xff] }
 0x9fe   : > { %5022 = vmatpush1.bf16.msra.mxu0 %v8983_v32  ;;  %v3361_v32 = vrot.slane %v3353_v23, %v10556_v14 }
 0x9ff   : > { %5023 = vmatprep.subr.bf16.mxu0 %v8988_v33  ;;  %v3354_v33 = vcombine.high %v3353_v23, %v3353_v23 }
 0xa00   : > { %v5063_v31 = vrot.slane %v3361_v32, %v10833_v52 }
 0xa02   : > { %5024 = vmatpush1.bf16.msra.mxu0 %v8986_v27 }
 0xa03   : > { %5025 = vmatprep.subr.bf16.mxu0 %v8991_v59  ;;  %v5059_v59 = vrot.slane %v3361_v32, %v10827_v50 }
 0xa06   : > { %5026 = vmatpush1.bf16.msra.mxu0 %v8989_v22 }
 0xa07   : > { %5027 = vmatprep.subr.bf16.mxu0 %v8994_v25 }
 0xa0a   : > { %5028 = vmatpush1.bf16.msra.mxu0 %v8992_v16 }
 0xa0b   : > { %5029 = vmatprep.subr.bf16.mxu0 %v8997_v42  ;;  %v9284_v42 = vld [vmem:[#allocation2] sm:$0xff] }
 0xa0e   : > { %5030 = vmatpush1.bf16.msra.mxu0 %v8995_v53 }
 0xa0f   : > { %5031 = vmatprep.subr.bf16.mxu0 %v9000_v28 }
 0xa12   : > { %5032 = vmatpush1.bf16.msra.mxu0 %v8998_v4  ;;  %v3368_v4 = vrot.slane %v3354_v33, %v10556_v14 }
 0xa7a   : > { %v4687_v26 = vpop.xlane.xlu0 %4686 }
 0xa7b   : > { %9228 = vrcp.f32 %v4687_v26  ;;  %v9285_v26 = vld [vmem:[#allocation2 + $0x8] sm:$0xff] }
 0xa7c   : > { %v4690_v60 = vpop.xlane.xlu1 %4689 }
 0xa7d   : > { %9230 = vrcp.f32 %v4690_v60 }
 0xa82   : > { %v4693_v2 = vpop.xlane.xlu0 %4692 }
 0xa83   : > { %9232 = vrcp.f32 %v4693_v2 }
 0xa84   : > { %v4696_v39 = vpop.xlane.xlu1 %4695 }
 0xa85   : > { %v9229_v41 = vpop.eup %9228  ;;  %9234 = vrcp.f32 %v4696_v39  ;;  %v9286_v39 = vld [vmem:[#allocation2 + $0x10] sm:$0xff] }
 0xa86   : > { %v4701_v54 = vmul.f32 %v9229_v41, %v11111_v19  ;;  %v9003_v19 = vld [vmem:[%s10262_s29 + $0xf4] ss:$8 sps:$4 sm:$0xff]  }
 0xa87   : > { %v9231_v61 = vpop.eup %9230  ;;  %5033 = vmatprep.subr.bf16.mxu0 %v9003_v19 }
 0xa88   : > { %v4702_v63 = vmul.f32 %v9231_v61, %v11115_v29  ;;  %v9001_v29 = vld [vmem:[%s10262_s29 + $0xf0] ss:$8 sps:$4 sm:$0xff]  }
 0xa89   : > { %5034 = vmatpush1.bf16.msra.mxu0 %v9001_v29  ;;  %v9287_v61 = vld [vmem:[#allocation2 + $0x18] sm:$0xff] }
 0xa8a   : > { %v4705_v48 = vpack.c.bf16 %v4702_v63, %v4701_v54 }
 0xa8c   : > { %8249 = vmatmul.mubr.msk.bf16.vlgmr.msra.gmra.mrb[40].mxu1 %vm4434_vm2, %v4705_v48 }
 0xa8d   : > { %v9233_v11 = vpop.eup %9232  ;;  %8253 = vmatpush3.bf16.msra.mxu1 %v4578_v12  ;;  %8254 = vmatprep.mubr.msk.bf16.mxu1 %vm9776_vm1, %v9775_v10 }
 0xa8e   : > { %v4703_v21 = vmul.f32 %v9233_v11, %v11119_v1 }
 0xa8f   : > { %v9235_v44 = vpop.eup %9234 }
 0xa90   : > { %v4704_v45 = vmul.f32 %v9235_v44, %v11123_v9  ;;  %v5067_v44 = vrot.slane %v3368_v4, %v10827_v50 }
 0xa92   : > { %v4706_v5 = vpack.c.bf16 %v4704_v45, %v4703_v21 }
 0xa94   : > { %8255 = vmatmul.mubr.msk.bf16.vlgmr.msra.gmra.mrb[44].mxu1 %vm4434_vm2, %v4706_v5  ;;  %v5071_v5 = vrot.slane %v3368_v4, %v10833_v52  ;;  %v9027_v4 = vld [vmem:[%s10287_s24 + $0x6c] ss:$16 sps:$4 sm:$0xff]  }
 0xb5f   : > { %v4744_v15 = vpop.f32.mrb[40].mxu1 }
 0xb60   : > { %v8250_v8 = vpop.f32.mrb[41].mxu1 }
 0xb61   : > { %v4747_v49 = vpop.f32.mrb[42].mxu1 }
 0xb62   : > { %v4796_v6 = vpack.c.bf16 %v4747_v49, %v4744_v15  ;;  %v8251_v12 = vpop.f32.mrb[43].mxu1 }
 0xb64   : > { %5035 = vmatprep.mubr.bf16.mxu0 %v4796_v6 }
 0xb65   : > { %5036 = vmatmul.mubr.bf16.vlgmr.msra.gmra.mrb[32].mxu0 %v4795_v57 }
 0xb67   : > { %v4788_v10 = vpop.f32.mrb[44].mxu1 }
 0xb68   : > { %v8256_v1 = vpop.f32.mrb[45].mxu1 }
 0xb69   : > { %v4791_v9 = vpop.f32.mrb[46].mxu1 }
 0xb6a   : > { %v4798_v13 = vpack.c.bf16 %v4791_v9, %v4788_v10  ;;  %v8257_v17 = vpop.f32.mrb[47].mxu1  ;;  %v9288_v10 = vld [vmem:[#allocation2 + $0x20] sm:$0xff] }
 0xb6c   : > { %5045 = vmatprep.mubr.bf16.mxu0 %v4798_v13  ;;  %v9289_v13 = vld [vmem:[#allocation2 + $0x28] sm:$0xff] }
 0xb6d   : > { %5046 = vmatmul.mubr.bf16.gmra.mrb[36].mxu0 %v4797_v38 }
 0xc38   : > { %v5037_v57 = vpop.f32.mrb[32].mxu0 }
 0xc39   : > { %v5038_v27 = vadd.f32 %v5037_v57, %v4836_v47  ;;  %v5039_v22 = vpop.f32.mrb[33].mxu0 }
 0xc3a   : > { %v5040_v0 = vadd.f32 %v5039_v22, %v4840_v56  ;;  %v5041_v38 = vpop.f32.mrb[34].mxu0  ;;  %v9007_v22 = vld [vmem:[%s10287_s24 + $0x8] ss:$16 sps:$4 sm:$0xff]  }
 0xc3b   : > { %v5076_v25 = vmul.f32 %v5059_v59, %v5038_v27  ;;  %v5042_v24 = vadd.f32 %v5041_v38, %v4836_v47  ;;  %v5043_v62 = vpop.f32.mrb[35].mxu0  ;;  %v9004_v27 = vld [vmem:[%s10287_s24] ss:$16 sps:$4 sm:$0xff]   ;;  %v9015_v38 = vld [vmem:[%s10287_s24 + $0x2c] ss:$16 sps:$4 sm:$0xff]  }
 0xc3c   : > { %v5077_v51 = vmul.f32 %v5063_v31, %v5040_v0  ;;  %v5044_v16 = vadd.f32 %v5043_v62, %v4840_v56  ;;  %v9009_v0 = vld [vmem:[%s10287_s24 + $0xc] ss:$16 sps:$4 sm:$0xff]   ;;  %v9018_v62 = vld [vmem:[%s10287_s24 + $0x44] ss:$16 sps:$4 sm:$0xff]  }
 0xc3d   : > { %v11186_v53 = vadd.f32 %v9284_v42, %v5076_v25  ;;  %v5078_v28 = vmul.f32 %v5059_v59, %v5042_v24  ;;  %v9006_v59 = vld [vmem:[%s10287_s24 + $0x4] ss:$16 sps:$4 sm:$0xff]   ;;  %5679 = vmatprep.subr.bf16.mxu0 %v9009_v0  ;;  %v9010_v25 = vld [vmem:[%s10287_s24 + $0x20] ss:$16 sps:$4 sm:$0xff]   ;;  %v9013_v24 = vld [vmem:[%s10287_s24 + $0x28] ss:$16 sps:$4 sm:$0xff]  }
 0xc3e   : > { %v11189_v60 = vadd.f32 %v9285_v26, %v5077_v51  ;;  %v5079_v2 = vmul.f32 %v5063_v31, %v5044_v16  ;;  %v9012_v31 = vld [vmem:[%s10287_s24 + $0x24] ss:$16 sps:$4 sm:$0xff]   ;;  %5626 = vmatprep.subr.bf16.mxu1 %v9006_v59  ;;  %5680 = vmatpush1.bf16.msra.mxu0 %v9007_v22  ;;  %v9021_v51 = vld [vmem:[%s10287_s24 + $0x4c] ss:$16 sps:$4 sm:$0xff]   ;;  %v9016_v16 = vld [vmem:[%s10287_s24 + $0x40] ss:$16 sps:$4 sm:$0xff]  }
 0xc3f   : > { %v11191_v41 = vadd.f32 %v9286_v39, %v5078_v28  ;;  %5627 = vmatpush1.bf16.msra.mxu1 %v9004_v27  ;;  %5681 = vmatprep.subr.bf16.mxu0 %v9015_v38  ;;  %v9019_v42 = vld [vmem:[%s10287_s24 + $0x48] ss:$16 sps:$4 sm:$0xff]   ;;  %v9024_v28 = vld [vmem:[%s10287_s24 + $0x64] ss:$16 sps:$4 sm:$0xff]   ;;  %v9022_v26 = vld [vmem:[%s10287_s24 + $0x60] ss:$16 sps:$4 sm:$0xff]  }
 0xc40   : > { %v11193_v54 = vadd.f32 %v9287_v61, %v5079_v2  ;;  %v5047_v63 = vpop.f32.mrb[36].mxu0  ;;  %v5092_v48 = vadd.f32 %v11189_v60, %v11186_v53  ;;  %5628 = vmatprep.subr.bf16.mxu1 %v9012_v31  ;;  %v9025_v2 = vld [vmem:[%s10287_s24 + $0x68] ss:$16 sps:$4 sm:$0xff]   ;;  %v9030_v39 = vld [vmem:[%s10287_s24 + $0x84] ss:$16 sps:$4 sm:$0xff]  }
 0xc41   : > { %v5048_v11 = vadd.f32 %v5047_v63, %v4836_v47  ;;  %v5049_v21 = vpop.f32.mrb[37].mxu0  ;;  %v9033_v61 = vld [vmem:[%s10287_s24 + $0x8c] ss:$16 sps:$4 sm:$0xff]   ;;  %v9028_v63 = vld [vmem:[%s10287_s24 + $0x80] ss:$16 sps:$4 sm:$0xff]  }
 0xc42   : > { %v5050_v45 = vadd.f32 %v5049_v21, %v4840_v56  ;;  %5093 = vadd.xlane.f32.xlu0 %v5092_v48  ;;  %v5051_v19 = vpop.f32.mrb[38].mxu0  ;;  %v5095_v29 = vadd.f32 %v11193_v54, %v11191_v41  ;;  %5682 = vmatpush1.bf16.msra.mxu0 %v9013_v24  ;;  %v9031_v48 = vld [vmem:[%s10287_s24 + $0x88] ss:$16 sps:$4 sm:$0xff]   ;;  %v9034_v21 = vld [vmem:[%s10287_s24 + $0xa0] ss:$16 sps:$4 sm:$0xff]  }
 0xc43   : > { %v5080_v15 = vmul.f32 %v5067_v44, %v5048_v11  ;;  %v5052_v8 = vadd.f32 %v5051_v19, %v4836_v47  ;;  %v5053_v49 = vpop.f32.mrb[39].mxu0  ;;  %v9291_v47 = vld [vmem:[#allocation2 + $0x38] sm:$0xff]  ;;  %5629 = vmatpush1.bf16.msra.mxu1 %v9010_v25  ;;  %5683 = vmatprep.subr.bf16.mxu0 %v9021_v51  ;;  %v9036_v11 = vld [vmem:[%s10287_s24 + $0xa4] ss:$16 sps:$4 sm:$0xff]  }
 0xc44   : > { %v5081_v6 = vmul.f32 %v5071_v5, %v5050_v45  ;;  %v5054_v12 = vadd.f32 %v5053_v49, %v4840_v56  ;;  %5096 = vadd.xlane.f32.xlu1 %v5095_v29  ;;  %5630 = vmatprep.subr.bf16.mxu1 %v9018_v62  ;;  %v9037_v45 = vld [vmem:[%s10287_s24 + $0xa8] ss:$16 sps:$4 sm:$0xff]   ;;  %v9045_v19 = vld [vmem:[%s10287_s24 + $0xcc] ss:$16 sps:$4 sm:$0xff]   ;;  %v9040_v29 = vld [vmem:[%s10287_s24 + $0xc0] ss:$16 sps:$4 sm:$0xff]  }
 0xc45   : > { %v11201_v1 = vadd.f32 %v9288_v10, %v5080_v15  ;;  %v5082_v9 = vmul.f32 %v5067_v44, %v5052_v8  ;;  %v9039_v44 = vld [vmem:[%s10287_s24 + $0xac] ss:$16 sps:$4 sm:$0xff]   ;;  %v9043_v15 = vld [vmem:[%s10287_s24 + $0xc8] ss:$16 sps:$4 sm:$0xff]   ;;  %v9048_v8 = vld [vmem:[%s10287_s24 + $0xe4] ss:$16 sps:$4 sm:$0xff]  }
 0xc46   : > { %v11203_v17 = vadd.f32 %v9289_v13, %v5081_v6  ;;  %v5083_v23 = vmul.f32 %v5071_v5, %v5054_v12  ;;  %5684 = vmatpush1.bf16.msra.mxu0 %v9019_v42  ;;  %v9042_v5 = vld [vmem:[%s10287_s24 + $0xc4] ss:$16 sps:$4 sm:$0xff]   ;;  %v9051_v49 = vld [vmem:[%s10287_s24 + $0xec] ss:$16 sps:$4 sm:$0xff]   ;;  %v9046_v6 = vld [vmem:[%s10287_s24 + $0xe0] ss:$16 sps:$4 sm:$0xff]  }
 0xc47   : > { %v11205_v32 = vadd.f32 %v9290_v30, %v5082_v9  ;;  %5631 = vmatpush1.bf16.msra.mxu1 %v9016_v16  ;;  %5685 = vmatprep.subr.bf16.mxu0 %v9027_v4  ;;  %v9049_v12 = vld [vmem:[%s10287_s24 + $0xe8] ss:$16 sps:$4 sm:$0xff]   ;;  %v9054_v10 = vld [vmem:[%s10287_s24 + $0x104] ss:$16 sps:$4 sm:$0xff]   ;;  %v9057_v9 = vld [vmem:[%s10287_s24 + $0x10c] ss:$16 sps:$4 sm:$0xff]  }
 0xc48   : > { %v11207_v56 = vadd.f32 %v9291_v47, %v5083_v23  ;;  %v5098_v57 = vadd.f32 %v11203_v17, %v11201_v1  ;;  %5632 = vmatprep.subr.bf16.mxu1 %v9024_v28  ;;  %v9052_v13 = vld [vmem:[%s10287_s24 + $0x100] ss:$16 sps:$4 sm:$0xff]   ;;  %v9055_v23 = vld [vmem:[%s10287_s24 + $0x108] ss:$16 sps:$4 sm:$0xff]   ;;  %v9060_v30 = vld [vmem:[%s10287_s24 + $0x124] ss:$16 sps:$4 sm:$0xff]  }
 0xc49   : > { %v9063_v47 = vld [vmem:[%s10287_s24 + $0x12c] ss:$16 sps:$4 sm:$0xff]  }
 0xc4a   : > { %5099 = vadd.xlane.f32.xlu0 %v5098_v57  ;;  %v5101_v33 = vadd.f32 %v11207_v56, %v11205_v32  ;;  %5686 = vmatpush1.bf16.msra.mxu0 %v9025_v2  ;;  %v9058_v57 = vld [vmem:[%s10287_s24 + $0x120] ss:$16 sps:$4 sm:$0xff]  }
 0xc4b   : > { %5633 = vmatpush1.bf16.msra.mxu1 %v9022_v26  ;;  %5687 = vmatprep.subr.bf16.mxu0 %v9033_v61 }
 0xc4c   : > { %5102 = vadd.xlane.f32.xlu1 %v5101_v33  ;;  %5634 = vmatprep.subr.bf16.mxu1 %v9030_v39  ;;  %v9061_v33 = vld [vmem:[%s10287_s24 + $0x128] ss:$16 sps:$4 sm:$0xff]  }
 0xc4e   : > { %5688 = vmatpush1.bf16.msra.mxu0 %v9031_v48 }
 0xc4f   : > { %5635 = vmatpush1.bf16.msra.mxu1 %v9028_v63  ;;  %5689 = vmatprep.subr.bf16.mxu0 %v9039_v44 }
 0xc50   : > { %5636 = vmatprep.subr.bf16.mxu1 %v9036_v11 }
 0xc52   : > { %5690 = vmatpush1.bf16.msra.mxu0 %v9037_v45 }
 0xc53   : > { %5637 = vmatpush1.bf16.msra.mxu1 %v9034_v21  ;;  %5691 = vmatprep.subr.bf16.mxu0 %v9045_v19 }
 0xc54   : > { %5638 = vmatprep.subr.bf16.mxu1 %v9042_v5 }
 0xc56   : > { %5692 = vmatpush1.bf16.msra.mxu0 %v9043_v15 }
 0xc57   : > { %5639 = vmatpush1.bf16.msra.mxu1 %v9040_v29  ;;  %5693 = vmatprep.subr.bf16.mxu0 %v9051_v49  ;;  %v9069_v49 = vld [vmem:[%s10287_s24 + $0x14c] ss:$16 sps:$4 sm:$0xff]  }
 0xc58   : > { %5640 = vmatprep.subr.bf16.mxu1 %v9048_v8  ;;  %v9066_v8 = vld [vmem:[%s10287_s24 + $0x144] ss:$16 sps:$4 sm:$0xff]  }
 0xc5a   : > { %5694 = vmatpush1.bf16.msra.mxu0 %v9049_v12  ;;  %v9067_v12 = vld [vmem:[%s10287_s24 + $0x148] ss:$16 sps:$4 sm:$0xff]  }
 0xc5b   : > { %5641 = vmatpush1.bf16.msra.mxu1 %v9046_v6  ;;  %5695 = vmatprep.subr.bf16.mxu0 %v9057_v9  ;;  %v9064_v6 = vld [vmem:[%s10287_s24 + $0x140] ss:$16 sps:$4 sm:$0xff]   ;;  %v9075_v9 = vld [vmem:[%s10287_s24 + $0x16c] ss:$16 sps:$4 sm:$0xff]  }
 0xc5c   : > { %5642 = vmatprep.subr.bf16.mxu1 %v9054_v10  ;;  %v9072_v10 = vld [vmem:[%s10287_s24 + $0x164] ss:$16 sps:$4 sm:$0xff]  }
 0xc5e   : > { %5696 = vmatpush1.bf16.msra.mxu0 %v9055_v23  ;;  %v9073_v23 = vld [vmem:[%s10287_s24 + $0x168] ss:$16 sps:$4 sm:$0xff]  }
 0xc5f   : > { %5643 = vmatpush1.bf16.msra.mxu1 %v9052_v13  ;;  %5697 = vmatprep.subr.bf16.mxu0 %v9063_v47  ;;  %v9070_v13 = vld [vmem:[%s10287_s24 + $0x160] ss:$16 sps:$4 sm:$0xff]   ;;  %v9081_v47 = vld [vmem:[%s10287_s24 + $0x18c] ss:$16 sps:$4 sm:$0xff]  }
 0xc60   : > { %5644 = vmatprep.subr.bf16.mxu1 %v9060_v30  ;;  %v9078_v30 = vld [vmem:[%s10287_s24 + $0x184] ss:$16 sps:$4 sm:$0xff]  }
 0xc62   : > { %5698 = vmatpush1.bf16.msra.mxu0 %v9061_v33  ;;  %v9079_v33 = vld [vmem:[%s10287_s24 + $0x188] ss:$16 sps:$4 sm:$0xff]  }
 0xc63   : > { %5645 = vmatpush1.bf16.msra.mxu1 %v9058_v57  ;;  %5699 = vmatprep.subr.bf16.mxu0 %v9069_v49  ;;  %v9076_v57 = vld [vmem:[%s10287_s24 + $0x180] ss:$16 sps:$4 sm:$0xff]  }
 0xc64   : > { %5646 = vmatprep.subr.bf16.mxu1 %v9066_v8 }
 0xc66   : > { %5700 = vmatpush1.bf16.msra.mxu0 %v9067_v12 }
 0xc67   : > { %5647 = vmatpush1.bf16.msra.mxu1 %v9064_v6  ;;  %5701 = vmatprep.subr.bf16.mxu0 %v9075_v9  ;;  %v3378_v6 = vrot.slane %v3371_v43, %v10556_v14 }
 0xc68   : > { %5648 = vmatprep.subr.bf16.mxu1 %v9072_v10 }
 0xc69   : > { %v3386_v3 = vrot.slane %v3378_v6, %v10556_v14 }
 0xc6a   : > { %5702 = vmatpush1.bf16.msra.mxu0 %v9073_v23 }
 0xc6b   : > { %5649 = vmatpush1.bf16.msra.mxu1 %v9070_v13  ;;  %5703 = vmatprep.subr.bf16.mxu0 %v9081_v47 }
 0xc6c   : > { %5650 = vmatprep.subr.bf16.mxu1 %v9078_v30 }
 0xc6e   : > { %5704 = vmatpush1.bf16.msra.mxu0 %v9079_v33 }
 0xc6f   : > { %5651 = vmatpush1.bf16.msra.mxu1 %v9076_v57 }
 0xccf   : > { %v5094_v27 = vpop.xlane.xlu0 %5093 }
 0xcd0   : > { %v5104_v59 = vmul.f32 0.00390625, %v5094_v27  ;;  %v9084_v27 = vld [vmem:[%s10287_s24 + $0x1a4] ss:$16 sps:$4 sm:$0xff]  }
 0xcd1   : > { %v5097_v22 = vpop.xlane.xlu1 %5096  ;;  %5652 = vmatprep.subr.bf16.mxu1 %v9084_v27  ;;  %v3379_v27 = vcombine.high %v3378_v6, %v3378_v6 }
 0xcd2   : > { %v11254_v0 = vsub.f32 %v11186_v53, %v5104_v59  ;;  %v11257_v31 = vsub.f32 %v11189_v60, %v5104_v59  ;;  %v5105_v38 = vmul.f32 0.00390625, %v5097_v22  ;;  %v9087_v59 = vld [vmem:[%s10287_s24 + $0x1ac] ss:$16 sps:$4 sm:$0xff]   ;;  %v9082_v22 = vld [vmem:[%s10287_s24 + $0x1a0] ss:$16 sps:$4 sm:$0xff]  }
 0xcd3   : > { %5705 = vmatprep.subr.bf16.mxu0 %v9087_v59  ;;  %5653 = vmatpush1.bf16.msra.mxu1 %v9082_v22  ;;  %v5191_v59 = vrot.slane %v3386_v3, %v10827_v50  ;;  %v5195_v22 = vrot.slane %v3386_v3, %v10833_v52 }
 0xcd4   : > { %v11260_v25 = vsub.f32 %v11191_v41, %v5105_v38  ;;  %v11263_v24 = vsub.f32 %v11193_v54, %v5105_v38  ;;  %v5116_v62 = vmul.f32 %v11254_v0, %v11254_v0  ;;  %v5117_v51 = vmul.f32 %v11257_v31, %v11257_v31  ;;  %v9085_v38 = vld [vmem:[%s10287_s24 + $0x1a8] ss:$16 sps:$4 sm:$0xff]  }
 0xcd5   : > { %5706 = vmatpush1.bf16.msra.mxu0 %v9085_v38 }
 0xcd6   : > { %v5124_v16 = vadd.f32 %v5117_v51, %v5116_v62  ;;  %v5118_v42 = vmul.f32 %v11260_v25, %v11260_v25  ;;  %v5119_v28 = vmul.f32 %v11263_v24, %v11263_v24  ;;  %v9088_v62 = vld [vmem:[%s10287_s24 + $0x1c0] ss:$16 sps:$4 sm:$0xff]   ;;  %v9090_v51 = vld [vmem:[%s10287_s24 + $0x1c4] ss:$16 sps:$4 sm:$0xff]  }
 0xcd7   : > { %v5100_v4 = vpop.xlane.xlu0 %5099  ;;  %5654 = vmatprep.subr.bf16.mxu1 %v9090_v51 }
 0xcd8   : > { %v5106_v26 = vmul.f32 0.00390625, %v5100_v4  ;;  %5125 = vadd.xlane.f32.xlu0 %v5124_v16  ;;  %v5127_v2 = vadd.f32 %v5119_v28, %v5118_v42  ;;  %v9091_v16 = vld [vmem:[%s10287_s24 + $0x1c8] ss:$16 sps:$4 sm:$0xff]   ;;  %v9093_v42 = vld [vmem:[%s10287_s24 + $0x1cc] ss:$16 sps:$4 sm:$0xff]   ;;  %5655 = vmatpush1.bf16.msra.mxu1 %v9088_v62 }
 0xcd9   : > { %v5103_v39 = vpop.xlane.xlu1 %5102  ;;  %v9096_v28 = vld [vmem:[%s10287_s24 + $0x1e4] ss:$16 sps:$4 sm:$0xff]   ;;  %v9099_v4 = vld [vmem:[%s10287_s24 + $0x1ec] ss:$16 sps:$4 sm:$0xff]   ;;  %5707 = vmatprep.subr.bf16.mxu0 %v9093_v42 }
 0xcda   : > { %v11274_v61 = vsub.f32 %v11201_v1, %v5106_v26  ;;  %v11277_v63 = vsub.f32 %v11203_v17, %v5106_v26  ;;  %v5107_v48 = vmul.f32 0.00390625, %v5103_v39  ;;  %5128 = vadd.xlane.f32.xlu1 %v5127_v2  ;;  %v9094_v26 = vld [vmem:[%s10287_s24 + $0x1e0] ss:$16 sps:$4 sm:$0xff]   ;;  %5708 = vmatpush1.bf16.msra.mxu0 %v9091_v16  ;;  %v9097_v2 = vld [vmem:[%s10287_s24 + $0x1e8] ss:$16 sps:$4 sm:$0xff]  }
 0xcdb   : > { %5656 = vmatprep.subr.bf16.mxu1 %v9096_v28  ;;  %5709 = vmatprep.subr.bf16.mxu0 %v9099_v4  ;;  %v9102_v39 = vld [vmem:[%s10241_s21 + $0x4] ss:$8 sps:$4 sm:$0xff]  }
 0xcdc   : > { %v11280_v11 = vsub.f32 %v11205_v32, %v5107_v48  ;;  %v11283_v44 = vsub.f32 %v11207_v56, %v5107_v48  ;;  %v5120_v21 = vmul.f32 %v11274_v61, %v11274_v61  ;;  %v5121_v45 = vmul.f32 %v11277_v63, %v11277_v63  ;;  %5657 = vmatpush1.bf16.msra.mxu1 %v9094_v26 }
 0xcdd   : > { %6280 = vmatprep.subr.bf16.mxu1 %v9102_v39 }
 0xcde   : > { %v5130_v5 = vadd.f32 %v5121_v45, %v5120_v21  ;;  %v5122_v19 = vmul.f32 %v11280_v11, %v11280_v11  ;;  %v5123_v29 = vmul.f32 %v11283_v44, %v11283_v44  ;;  %5710 = vmatpush1.bf16.msra.mxu0 %v9097_v2 }
 0xce0   : > { %5131 = vadd.xlane.f32.xlu0 %v5130_v5  ;;  %v5133_v15 = vadd.f32 %v5123_v29, %v5122_v19  ;;  %v3403_v29 = vrot.slane %v3396_v20, %v10556_v14 }
 0xce2   : > { %5134 = vadd.xlane.f32.xlu1 %v5133_v15  ;;  %v3411_v8 = vrot.slane %v3403_v29, %v10556_v14  ;;  %v3404_v9 = vcombine.high %v3403_v29, %v3403_v29 }
 0xce4   : > { %v5156_v30 = vadd.f32 1.0, %v3411_v8  ;;  %v3418_v47 = vrot.slane %v3404_v9, %v10556_v14 }
 0xce6   : > { %v5163_v57 = vrot.slane %v5156_v30, %v10827_v50  ;;  %v5167_v33 = vrot.slane %v5156_v30, %v10833_v52  ;;  %v5157_v42 = vadd.f32 1.0, %v3418_v47  ;;  %v9103_v30 = vld [vmem:[%s10241_s21 + $0x10] ss:$8 sps:$4 sm:$0xff]  }
 0xce8   : > { %v5171_v8 = vrot.slane %v5157_v42, %v10827_v50 }
 0xd65   : > { %v5126_v48 = vpop.xlane.xlu0 %5125 }
 0xd66   : > { %v5136_v21 = vmul.f32 0.00390625, %v5126_v48 }
 0xd67   : > { %v5129_v45 = vpop.xlane.xlu1 %5128 }
 0xd68   : > { %v5140_v5 = vadd.f32 1e-05, %v5136_v21  ;;  %v5137_v19 = vmul.f32 0.00390625, %v5129_v45  ;;  %v5175_v21 = vrot.slane %v5157_v42, %v10833_v52  ;;  %v9124_v42 = vld [vmem:[%s10241_s21 + $0x80] ss:$8 sps:$4 sm:$0xff]  }
 0xd6a   : > { %9236 = vrsqrt.f32 %v5140_v5  ;;  %v5141_v15 = vadd.f32 1e-05, %v5137_v19  ;;  %v9100_v19 = vld [vmem:[%s10241_s21] ss:$8 sps:$4 sm:$0xff]  }
 0xd6c   : > { %9238 = vrsqrt.f32 %v5141_v15 }
 0xd6d   : > { %v5132_v49 = vpop.xlane.xlu0 %5131 }
 0xd6e   : > { %v5138_v12 = vmul.f32 0.00390625, %v5132_v49  ;;  %v9105_v49 = vld [vmem:[%s10241_s21 + $0x14] ss:$8 sps:$4 sm:$0xff]  }
 0xd6f   : > { %v5135_v10 = vpop.xlane.xlu1 %5134 }
 0xd70   : > { %v5142_v13 = vadd.f32 1e-05, %v5138_v12  ;;  %v5139_v23 = vmul.f32 0.00390625, %v5135_v10 }
 0xd72   : > { %9240 = vrsqrt.f32 %v5142_v13  ;;  %v5143_v7 = vadd.f32 1e-05, %v5139_v23 }
 0xd74   : > { %v9237_v20 = vpop.eup %9236  ;;  %9242 = vrsqrt.f32 %v5143_v7  ;;  %v9108_v7 = vld [vmem:[%s10241_s21 + $0x24] ss:$8 sps:$4 sm:$0xff]  }
 0xd75   : > { %v5148_v37 = vmul.f32 %v9237_v20, %v11254_v0  ;;  %v5149_v40 = vmul.f32 %v9237_v20, %v11257_v31  ;;  %v3393_v31 = vrot.slane %v3379_v27, %v10556_v14  ;;  %v9117_v27 = vld [vmem:[%s10241_s21 + $0x54] ss:$8 sps:$4 sm:$0xff]  }
 0xd76   : > { %v9239_v43 = vpop.eup %9238 }
 0xd77   : > { %v5150_v38 = vmul.f32 %v9239_v43, %v11260_v25  ;;  %v5151_v62 = vmul.f32 %v9239_v43, %v11263_v24  ;;  %v5181_v51 = vmul.f32 %v5167_v33, %v5149_v40  ;;  %v5180_v16 = vmul.f32 %v5163_v57, %v5148_v37  ;;  %v9109_v37 = vld [vmem:[%s10241_s21 + $0x30] ss:$8 sps:$4 sm:$0xff]   ;;  %v9114_v40 = vld [vmem:[%s10241_s21 + $0x44] ss:$8 sps:$4 sm:$0xff]   ;;  %v9112_v43 = vld [vmem:[%s10241_s21 + $0x40] ss:$8 sps:$4 sm:$0xff]  }
 0xd78   : > { %v5203_v15 = vrot.slane %v3393_v31, %v10833_v52 }
 0xd79   : > { %v5183_v28 = vmul.f32 %v5167_v33, %v5151_v62  ;;  %v5209_v4 = vadd.f32 %v5195_v22, %v5181_v51  ;;  %v5182_v0 = vmul.f32 %v5163_v57, %v5150_v38  ;;  %v5208_v26 = vadd.f32 %v5191_v59, %v5180_v16  ;;  %v9106_v57 = vld [vmem:[%s10241_s21 + $0x20] ss:$8 sps:$4 sm:$0xff]   ;;  %v9111_v33 = vld [vmem:[%s10241_s21 + $0x34] ss:$8 sps:$4 sm:$0xff]   ;;  %v9121_v51 = vld [vmem:[%s10241_s21 + $0x70] ss:$8 sps:$4 sm:$0xff]  }
 0xd7a   : > { %v9118_v38 = vld [vmem:[%s10241_s21 + $0x60] ss:$8 sps:$4 sm:$0xff]   ;;  %v9123_v62 = vld [vmem:[%s10241_s21 + $0x74] ss:$8 sps:$4 sm:$0xff]   ;;  %v9126_v16 = vld [vmem:[%s10241_s21 + $0x84] ss:$8 sps:$4 sm:$0xff]  }
 0xd7b   : > { %v5211_v2 = vadd.f32 %v5195_v22, %v5183_v28  ;;  %v5210_v39 = vadd.f32 %v5191_v59, %v5182_v0  ;;  %v9115_v59 = vld [vmem:[%s10241_s21 + $0x50] ss:$8 sps:$4 sm:$0xff]   ;;  %v9120_v22 = vld [vmem:[%s10241_s21 + $0x64] ss:$8 sps:$4 sm:$0xff]   ;;  %v9129_v28 = vld [vmem:[%s10241_s21 + $0x94] ss:$8 sps:$4 sm:$0xff]  }
 0xd7c   : > { %v9241_v48 = vpop.eup %9240  ;;  %v9132_v0 = vld [vmem:[%s10241_s21 + $0xa4] ss:$8 sps:$4 sm:$0xff]  }
 0xd7d   : > { %v5217_v45 = vpack.c.bf16 %v5211_v2, %v5209_v4  ;;  %v5216_v25 = vpack.c.bf16 %v5210_v39, %v5208_v26  ;;  %v5153_v24 = vmul.f32 %v9241_v48, %v11277_v63  ;;  %v5152_v5 = vmul.f32 %v9241_v48, %v11274_v61  ;;  %v9127_v4 = vld [vmem:[%s10241_s21 + $0x90] ss:$8 sps:$4 sm:$0xff]   ;;  %v9130_v26 = vld [vmem:[%s10241_s21 + $0xa0] ss:$8 sps:$4 sm:$0xff]   ;;  %v9138_v39 = vld [vmem:[%s10241_s21 + $0xc4] ss:$8 sps:$4 sm:$0xff]  }
 0xd7e   : > { %v9243_v29 = vpop.eup %9242  ;;  %v5199_v63 = vrot.slane %v3393_v31, %v10827_v50  ;;  %v9135_v31 = vld [vmem:[%s10241_s21 + $0xb4] ss:$8 sps:$4 sm:$0xff]   ;;  %v9133_v2 = vld [vmem:[%s10241_s21 + $0xb0] ss:$8 sps:$4 sm:$0xff]   ;;  %v9136_v48 = vld [vmem:[%s10241_s21 + $0xc0] ss:$8 sps:$4 sm:$0xff]  }
 0xd7f   : > { %5658 = vmatprep.mubr.bf16.mxu1 %v5217_v45  ;;  %5711 = vmatprep.mubr.bf16.mxu0 %v5217_v45  ;;  %v5155_v6 = vmul.f32 %v9243_v29, %v11283_v44  ;;  %v5185_v12 = vmul.f32 %v5175_v21, %v5153_v24  ;;  %v5154_v10 = vmul.f32 %v9243_v29, %v11280_v11  ;;  %v9139_v45 = vld [vmem:[%s10241_s21 + $0xd0] ss:$8 sps:$4 sm:$0xff]   ;;  %v9144_v24 = vld [vmem:[%s10241_s21 + $0xe4] ss:$8 sps:$4 sm:$0xff]  }
 0xd80   : > { %5659 = vmatmul.mubr.bf16.vlgmr.msra.gmra.mrb[48].mxu1 %v5216_v25  ;;  %5712 = vmatmul.mubr.bf16.vlgmr.msra.gmra.mrb[40].mxu0 %v5216_v25  ;;  %v5184_v61 = vmul.f32 %v5171_v8, %v5152_v5  ;;  %v9142_v25 = vld [vmem:[%s10241_s21 + $0xe0] ss:$8 sps:$4 sm:$0xff]   ;;  %v9147_v5 = vld [vmem:[%s10241_s21 + $0xf4] ss:$8 sps:$4 sm:$0xff]   ;;  %v9150_v29 = vld [vmem:[%s10241_s21 + $0x104] ss:$8 sps:$4 sm:$0xff]  }
 0xd81   : > { %v5187_v9 = vmul.f32 %v5175_v21, %v5155_v6  ;;  %v5213_v13 = vadd.f32 %v5203_v15, %v5185_v12  ;;  %v5186_v23 = vmul.f32 %v5171_v8, %v5154_v10  ;;  %6281 = vmatpush1.bf16.msra.mxu1 %v9100_v19  ;;  %v9141_v21 = vld [vmem:[%s10241_s21 + $0xd4] ss:$8 sps:$4 sm:$0xff]   ;;  %v9145_v19 = vld [vmem:[%s10241_s21 + $0xf0] ss:$8 sps:$4 sm:$0xff]  }
 0xd82   : > { %v5212_v3 = vadd.f32 %v5199_v63, %v5184_v61  ;;  %6282 = vmatprep.subr.bf16.mxu1 %v9105_v49 }
 0xd83   : > { %v5215_v44 = vadd.f32 %v5203_v15, %v5187_v9  ;;  %v5214_v20 = vadd.f32 %v5199_v63, %v5186_v23  ;;  %v5284_v15 = vld [vmem:[%s10239_s20] sm:$0xf] }
 0xd84   : > { %v11380_v8 = vrot.slane %v5284_v15, %v10827_v50  ;;  %v11383_v49 = vrot.slane %v5284_v15, %v10880_v55  ;;  %v11386_v6 = vrot.slane %v5284_v15, %v10833_v52  ;;  %v11389_v12 = vrot.slane %v5284_v15, %v10883_v58 }
 0xd85   : > { %v5219_v11 = vpack.c.bf16 %v5215_v44, %v5213_v13  ;;  %v5218_v47 = vpack.c.bf16 %v5214_v20, %v5212_v3  ;;  %6283 = vmatpush1.bf16.msra.mxu1 %v9103_v30 }
 0xd86   : > { %6284 = vmatprep.subr.bf16.mxu1 %v9108_v7 }
 0xd87   : > { %5668 = vmatprep.mubr.bf16.mxu1 %v5219_v11  ;;  %5721 = vmatprep.mubr.bf16.mxu0 %v5219_v11 }
 0xd88   : > { %5669 = vmatmul.mubr.bf16.gmra.mrb[52].mxu1 %v5218_v47  ;;  %5722 = vmatmul.mubr.bf16.gmra.mrb[44].mxu0 %v5218_v47 }
 0xd89   : > { %6285 = vmatpush1.bf16.msra.mxu1 %v9106_v57  ;;  %6872 = vmatprep.mubr.bf16.mxu0 (!%p8077_p1), %v10560_v18 }
 0xd8a   : > { %6286 = vmatprep.subr.bf16.mxu1 %v9111_v33 }
 0xd8d   : > { %6287 = vmatpush1.bf16.msra.mxu1 %v9109_v37 }
 0xd8e   : > { %6288 = vmatprep.subr.bf16.mxu1 %v9114_v40 }
 0xd91   : > { %6289 = vmatpush1.bf16.msra.mxu1 %v9112_v43 }
 0xd92   : > { %6290 = vmatprep.subr.bf16.mxu1 %v9117_v27 }
 0xd95   : > { %6291 = vmatpush1.bf16.msra.mxu1 %v9115_v59 }
 0xd96   : > { %6292 = vmatprep.subr.bf16.mxu1 %v9120_v22 }
 0xd99   : > { %6293 = vmatpush1.bf16.msra.mxu1 %v9118_v38 }
 0xd9a   : > { %6294 = vmatprep.subr.bf16.mxu1 %v9123_v62 }
 0xd9d   : > { %6295 = vmatpush1.bf16.msra.mxu1 %v9121_v51 }
 0xd9e   : > { %6296 = vmatprep.subr.bf16.mxu1 %v9126_v16 }
 0xda1   : > { %6297 = vmatpush1.bf16.msra.mxu1 %v9124_v42 }
 0xda2   : > { %6298 = vmatprep.subr.bf16.mxu1 %v9129_v28 }
 0xda5   : > { %6299 = vmatpush1.bf16.msra.mxu1 %v9127_v4 }
 0xda6   : > { %6300 = vmatprep.subr.bf16.mxu1 %v9132_v0 }
 0xda9   : > { %6301 = vmatpush1.bf16.msra.mxu1 %v9130_v26 }
 0xdaa   : > { %6302 = vmatprep.subr.bf16.mxu1 %v9135_v31 }
 0xdad   : > { %6303 = vmatpush1.bf16.msra.mxu1 %v9133_v2 }
 0xdae   : > { %6304 = vmatprep.subr.bf16.mxu1 %v9138_v39 }
 0xdb1   : > { %6305 = vmatpush1.bf16.msra.mxu1 %v9136_v48 }
 0xdb2   : > { %6306 = vmatprep.subr.bf16.mxu1 %v9141_v21 }
 0xdb5   : > { %6307 = vmatpush1.bf16.msra.mxu1 %v9139_v45 }
 0xdb6   : > { %6308 = vmatprep.subr.bf16.mxu1 %v9144_v24 }
 0xdb9   : > { %6309 = vmatpush1.bf16.msra.mxu1 %v9142_v25 }
 0xdba   : > { %6310 = vmatprep.subr.bf16.mxu1 %v9147_v5 }
 0xdbd   : > { %6311 = vmatpush1.bf16.msra.mxu1 %v9145_v19 }
 0xdbe   : > { %6333 = vmatprep.subr.bf16.mxu1 %v9150_v29 }
 0xe53   : > { %v5660_v10 = vpop.f32.mrb[48].mxu1  ;;  %v5713_v61 = vpop.f32.mrb[40].mxu0 }
 0xe54   : > { %v11392_v63 = vadd.f32 %v5660_v10, %v11380_v8  ;;  %v11395_v9 = vadd.f32 %v5713_v61, %v11383_v49  ;;  %v5662_v13 = vpop.f32.mrb[49].mxu1  ;;  %v5715_v23 = vpop.f32.mrb[41].mxu0 }
 0xe55   : > { %v11398_v30 = vadd.f32 %v5662_v13, %v11386_v6  ;;  %v11401_v3 = vadd.f32 %v5715_v23, %v11389_v12  ;;  %v5664_v7 = vpop.f32.mrb[50].mxu1  ;;  %v5717_v44 = vpop.f32.mrb[42].mxu0 }
 0xe56   : > { %v5732_v20 = vmul.f32 %v11392_v63, %v11392_v63  ;;  %v5734_v11 = vmul.f32 %v11395_v9, %v11395_v9  ;;  %v11408_v47 = vadd.f32 %v5664_v7, %v11380_v8  ;;  %v11411_v57 = vadd.f32 %v5717_v44, %v11383_v49  ;;  %v5666_v33 = vpop.f32.mrb[51].mxu1  ;;  %v5719_v37 = vpop.f32.mrb[43].mxu0 }
 0xe57   : > { %v5733_v40 = vmul.f32 %v11398_v30, %v11398_v30  ;;  %v5735_v43 = vmul.f32 %v11401_v3, %v11401_v3  ;;  %v11418_v27 = vadd.f32 %v5666_v33, %v11386_v6  ;;  %v11421_v59 = vadd.f32 %v5719_v37, %v11389_v12 }
 0xe58   : > { %v5748_v22 = vmul.f32 %v5732_v20, %v11392_v63  ;;  %v5750_v38 = vmul.f32 %v5734_v11, %v11395_v9  ;;  %v5736_v62 = vmul.f32 %v11408_v47, %v11408_v47  ;;  %v5738_v51 = vmul.f32 %v11411_v57, %v11411_v57 }
 0xe59   : > { %v5749_v16 = vmul.f32 %v5733_v40, %v11398_v30  ;;  %v5751_v42 = vmul.f32 %v5735_v43, %v11401_v3  ;;  %v5737_v28 = vmul.f32 %v11418_v27, %v11418_v27  ;;  %v5739_v4 = vmul.f32 %v11421_v59, %v11421_v59 }
 0xe5a   : > { %v5764_v0 = vmul.f32 0.044715, %v5748_v22  ;;  %v5766_v26 = vmul.f32 0.044715, %v5750_v38  ;;  %v5752_v31 = vmul.f32 %v5736_v62, %v11408_v47  ;;  %v5754_v2 = vmul.f32 %v5738_v51, %v11411_v57 }
 0xe5b   : > { %v5765_v39 = vmul.f32 0.044715, %v5749_v16  ;;  %v5767_v48 = vmul.f32 0.044715, %v5751_v42  ;;  %v5753_v21 = vmul.f32 %v5737_v28, %v11418_v27  ;;  %v5755_v45 = vmul.f32 %v5739_v4, %v11421_v59  ;;  %v5670_v25 = vpop.f32.mrb[52].mxu1  ;;  %v5723_v24 = vpop.f32.mrb[44].mxu0 }
 0xe5c   : > { %v5780_v5 = vadd.f32 %v5764_v0, %v11392_v63  ;;  %v5782_v19 = vadd.f32 %v5766_v26, %v11395_v9  ;;  %v5768_v29 = vmul.f32 0.044715, %v5752_v31  ;;  %v5770_v15 = vmul.f32 0.044715, %v5754_v2  ;;  %v5672_v10 = vpop.f32.mrb[53].mxu1  ;;  %v5725_v61 = vpop.f32.mrb[45].mxu0 }
 0xe5d   : > { %v5781_v13 = vadd.f32 %v5765_v39, %v11398_v30  ;;  %v5783_v23 = vadd.f32 %v5767_v48, %v11401_v3  ;;  %v5769_v7 = vmul.f32 0.044715, %v5753_v21  ;;  %v5771_v44 = vmul.f32 0.044715, %v5755_v45  ;;  %v5674_v20 = vpop.f32.mrb[54].mxu1  ;;  %v5727_v11 = vpop.f32.mrb[46].mxu0 }
 0xe5e   : > { %v5796_v33 = vmul.f32 0.7978846, %v5780_v5  ;;  %v5798_v37 = vmul.f32 0.7978846, %v5782_v19  ;;  %v5784_v40 = vadd.f32 %v5768_v29, %v11408_v47  ;;  %v5786_v43 = vadd.f32 %v5770_v15, %v11411_v57  ;;  %v5676_v22 = vpop.f32.mrb[55].mxu1  ;;  %v5729_v38 = vpop.f32.mrb[47].mxu0 }
 0xe5f   : > { %v5797_v62 = vmul.f32 0.7978846, %v5781_v13  ;;  %v5799_v51 = vmul.f32 0.7978846, %v5783_v23  ;;  %v5785_v16 = vadd.f32 %v5769_v7, %v11418_v27  ;;  %v5787_v42 = vadd.f32 %v5771_v44, %v11421_v59 }
 0xe60   : > { %9244 = vtanh.f32 %v5796_v33  ;;  %v5800_v28 = vmul.f32 0.7978846, %v5784_v40  ;;  %v5802_v4 = vmul.f32 0.7978846, %v5786_v43  ;;  %v11448_v0 = vadd.f32 %v5670_v25, %v11380_v8 }
 0xe61   : > { %9246 = vtanh.f32 %v5798_v37  ;;  %v5801_v26 = vmul.f32 0.7978846, %v5785_v16  ;;  %v5803_v31 = vmul.f32 0.7978846, %v5787_v42  ;;  %v11451_v2 = vadd.f32 %v5723_v24, %v11383_v49 }
 0xe62   : > { %9248 = vtanh.f32 %v5797_v62  ;;  %v5740_v39 = vmul.f32 %v11448_v0, %v11448_v0  ;;  %v11456_v48 = vadd.f32 %v5672_v10, %v11386_v6  ;;  %v11459_v21 = vadd.f32 %v5725_v61, %v11389_v12 }
 0xe63   : > { %9250 = vtanh.f32 %v5799_v51  ;;  %v5742_v45 = vmul.f32 %v11451_v2, %v11451_v2  ;;  %v11464_v25 = vadd.f32 %v5674_v20, %v11380_v8  ;;  %v11467_v24 = vadd.f32 %v5727_v11, %v11383_v49 }
 0xe64   : > { %9252 = vtanh.f32 %v5800_v28  ;;  %v5756_v5 = vmul.f32 %v5740_v39, %v11448_v0  ;;  %v5741_v19 = vmul.f32 %v11456_v48, %v11456_v48  ;;  %v5743_v29 = vmul.f32 %v11459_v21, %v11459_v21 }
 0xe65   : > { %9254 = vtanh.f32 %v5802_v4  ;;  %v5758_v15 = vmul.f32 %v5742_v45, %v11451_v2  ;;  %v5744_v10 = vmul.f32 %v11464_v25, %v11464_v25  ;;  %v5746_v8 = vmul.f32 %v11467_v24, %v11467_v24 }
 0xe66   : > { %9256 = vtanh.f32 %v5801_v26  ;;  %v5772_v49 = vmul.f32 0.044715, %v5756_v5  ;;  %v5757_v61 = vmul.f32 %v5741_v19, %v11456_v48  ;;  %v5759_v13 = vmul.f32 %v5743_v29, %v11459_v21 }
 0xe67   : > { %9258 = vtanh.f32 %v5803_v31  ;;  %v5774_v23 = vmul.f32 0.044715, %v5758_v15  ;;  %v5760_v7 = vmul.f32 %v5744_v10, %v11464_v25  ;;  %v5762_v44 = vmul.f32 %v5746_v8, %v11467_v24 }
 0xe68   : > { %v5788_v20 = vadd.f32 %v5772_v49, %v11448_v0  ;;  %v5773_v11 = vmul.f32 0.044715, %v5757_v61  ;;  %v5775_v33 = vmul.f32 0.044715, %v5759_v13  ;;  %v11485_v37 = vadd.f32 %v5676_v22, %v11386_v6 }
 0xe69   : > { %v5790_v40 = vadd.f32 %v5774_v23, %v11451_v2  ;;  %v5776_v43 = vmul.f32 0.044715, %v5760_v7  ;;  %v5778_v62 = vmul.f32 0.044715, %v5762_v44  ;;  %v11489_v51 = vadd.f32 %v5729_v38, %v11389_v12 }
 0xe6a   : > { %v9245_v16 = vpop.eup %9244  ;;  %v5804_v42 = vmul.f32 0.7978846, %v5788_v20  ;;  %v5789_v28 = vadd.f32 %v5773_v11, %v11456_v48  ;;  %v5791_v4 = vadd.f32 %v5775_v33, %v11459_v21  ;;  %v5745_v26 = vmul.f32 %v11485_v37, %v11485_v37 }
 0xe6b   : > { %v9247_v31 = vpop.eup %9246  ;;  %v5828_v39 = vadd.f32 1.0, %v9245_v16  ;;  %v5806_v6 = vmul.f32 0.7978846, %v5790_v40  ;;  %v5792_v22 = vadd.f32 %v5776_v43, %v11464_v25  ;;  %v5794_v45 = vadd.f32 %v5778_v62, %v11467_v24 }
 0xe6c   : > { %v9249_v5 = vpop.eup %9248  ;;  %v5830_v19 = vadd.f32 1.0, %v9247_v31  ;;  %9260 = vtanh.f32 %v5804_v42  ;;  %v5805_v12 = vmul.f32 0.7978846, %v5789_v28  ;;  %v5807_v38 = vmul.f32 0.7978846, %v5791_v4 }
 0xe6d   : > { %v9251_v29 = vpop.eup %9250  ;;  %v5844_v15 = vmul.f32 0.5, %v5828_v39  ;;  %9262 = vtanh.f32 %v5806_v6  ;;  %v5808_v10 = vmul.f32 0.7978846, %v5792_v22  ;;  %v5810_v8 = vmul.f32 0.7978846, %v5794_v45 }
 0xe6e   : > { %v9253_v49 = vpop.eup %9252  ;;  %v5846_v61 = vmul.f32 0.5, %v5830_v19  ;;  %9264 = vtanh.f32 %v5805_v12  ;;  %v5761_v13 = vmul.f32 %v5745_v26, %v11485_v37  ;;  %v5747_v23 = vmul.f32 %v11489_v51, %v11489_v51 }
 0xe6f   : > { %v9255_v7 = vpop.eup %9254  ;;  %v5860_v44 = vmul.f32 %v5844_v15, %v11392_v63  ;;  %v5832_v20 = vadd.f32 1.0, %v9253_v49  ;;  %9266 = vtanh.f32 %v5807_v38  ;;  %v5829_v11 = vadd.f32 1.0, %v9249_v5 }
 0xe70   : > { %v9257_v33 = vpop.eup %9256  ;;  %v11502_v40 = vmul.f32 %v5846_v61, %v11395_v9  ;;  %v5834_v43 = vadd.f32 1.0, %v9255_v7  ;;  %9268 = vtanh.f32 %v5808_v10  ;;  %v5777_v62 = vmul.f32 0.044715, %v5761_v13 }
 0xe71   : > { %v9259_v16 = vpop.eup %9258  ;;  %v5848_v42 = vmul.f32 0.5, %v5832_v20  ;;  %9270 = vtanh.f32 %v5810_v8  ;;  %v5763_v28 = vmul.f32 %v5747_v23, %v11489_v51  ;;  %v5833_v4 = vadd.f32 1.0, %v9257_v33  ;;  %v9148_v23 = vld [vmem:[%s10241_s21 + $0x100] ss:$8 sps:$4 sm:$0xff]  }
 0xe72   : > { %v5850_v26 = vmul.f32 0.5, %v5834_v43  ;;  %v5793_v31 = vadd.f32 %v5777_v62, %v11485_v37  ;;  %v5845_v63 = vmul.f32 0.5, %v5829_v11  ;;  %v5831_v39 = vadd.f32 1.0, %v9251_v29 }
 0xe73   : > { %v5864_v6 = vmul.f32 %v5848_v42, %v11408_v47  ;;  %v5779_v22 = vmul.f32 0.044715, %v5763_v28  ;;  %v5849_v45 = vmul.f32 0.5, %v5833_v4  ;;  %v5835_v9 = vadd.f32 1.0, %v9259_v16  ;;  %v9151_v16 = vld [vmem:[%s10241_s21 + $0x110] ss:$8 sps:$4 sm:$0xff]  }
 0xe74   : > { %v11508_v5 = vmul.f32 %v5850_v26, %v11411_v57  ;;  %v5809_v19 = vmul.f32 0.7978846, %v5793_v31  ;;  %v5861_v12 = vmul.f32 %v5845_v63, %v11398_v30  ;;  %v5847_v38 = vmul.f32 0.5, %v5831_v39 }
 0xe75   : > { %v5876_v15 = vpack.c.bf16 %v5864_v6, %v5860_v44  ;;  %v5795_v10 = vadd.f32 %v5779_v22, %v11489_v51  ;;  %v5865_v8 = vmul.f32 %v5849_v45, %v11418_v27  ;;  %v5851_v29 = vmul.f32 0.5, %v5835_v9  ;;  %v9153_v27 = vld [vmem:[%s10241_s21 + $0x114] ss:$8 sps:$4 sm:$0xff]   ;;  %v9154_v6 = vld [vmem:[%s10241_s21 + $0x120] ss:$8 sps:$4 sm:$0xff]  }
 0xe76   : > { %v9261_v49 = vpop.eup %9260  ;;  %v5878_v47 = vpack.c.bf16 %v11508_v5, %v11502_v40  ;;  %9272 = vtanh.f32 %v5809_v19  ;;  %v11516_v61 = vmul.f32 %v5847_v38, %v11401_v3  ;;  %v9159_v19 = vld [vmem:[%s10241_s21 + $0x134] ss:$8 sps:$4 sm:$0xff]  }
 0xe77   : > { %v9263_v57 = vpop.eup %9262  ;;  %v5811_v13 = vmul.f32 0.7978846, %v5795_v10  ;;  %v5877_v30 = vpack.c.bf16 %v5865_v8, %v5861_v12  ;;  %v5836_v7 = vadd.f32 1.0, %v9261_v49  ;;  %v5867_v44 = vmul.f32 %v5851_v29, %v11421_v59  ;;  %v9156_v59 = vld [vmem:[%s10241_s21 + $0x124] ss:$8 sps:$4 sm:$0xff]  }
 0xe78   : > { %v9265_v20 = vpop.eup %9264  ;;  %v5838_v11 = vadd.f32 1.0, %v9263_v57  ;;  %v9162_v57 = vld [vmem:[%s10241_s21 + $0x144] ss:$8 sps:$4 sm:$0xff]  }
 0xe79   : > { %v9267_v33 = vpop.eup %9266  ;;  %9274 = vtanh.f32 %v5811_v13  ;;  %6312 = vmatprep.mubr.bf16.mxu1 %v5877_v30  ;;  %v5879_v43 = vpack.c.bf16 %v5867_v44, %v11516_v61  ;;  %v5852_v28 = vmul.f32 0.5, %v5836_v7  ;;  %v5837_v31 = vadd.f32 1.0, %v9265_v20  ;;  %v9157_v61 = vld [vmem:[%s10241_s21 + $0x130] ss:$8 sps:$4 sm:$0xff]   ;;  %v9160_v44 = vld [vmem:[%s10241_s21 + $0x140] ss:$8 sps:$4 sm:$0xff]  }
 0xe7a   : > { %v9269_v3 = vpop.eup %9268  ;;  %6313 = vmatmul.mubr.bf16.vlgmr.msra.gmra.mrb[56].mxu1 %v5876_v15  ;;  %v5854_v26 = vmul.f32 0.5, %v5838_v11  ;;  %v5839_v12 = vadd.f32 1.0, %v9267_v33  ;;  %v9165_v20 = vld [vmem:[%s10241_s21 + $0x154] ss:$8 sps:$4 sm:$0xff]   ;;  %v9168_v33 = vld [vmem:[%s10241_s21 + $0x164] ss:$8 sps:$4 sm:$0xff]  }
 0xe7b   : > { %v9271_v62 = vpop.eup %9270  ;;  %6334 = vmatpush1.bf16.msra.mxu1 %v9148_v23  ;;  %v5840_v42 = vadd.f32 1.0, %v9269_v3  ;;  %v5868_v22 = vmul.f32 %v5852_v28, %v11448_v0  ;;  %v5853_v8 = vmul.f32 0.5, %v5837_v31  ;;  %v9166_v3 = vld [vmem:[%s10241_s21 + $0x160] ss:$8 sps:$4 sm:$0xff]   ;;  %v9180_v28 = vld [vmem:[%s10241_s21 + $0x1a4] ss:$8 sps:$4 sm:$0xff]  }
 0xe7c   : > { %6335 = vmatprep.subr.bf16.mxu1 %v9153_v27  ;;  %v5842_v4 = vadd.f32 1.0, %v9271_v62  ;;  %v11529_v38 = vmul.f32 %v5854_v26, %v11451_v2  ;;  %v5855_v2 = vmul.f32 0.5, %v5839_v12  ;;  %v9174_v62 = vld [vmem:[%s10241_s21 + $0x184] ss:$8 sps:$4 sm:$0xff]   ;;  %v9181_v26 = vld [vmem:[%s10241_s21 + $0x1b0] ss:$8 sps:$4 sm:$0xff]   ;;  %v3430_v12 = vrot.slane %v3423_v36, %v10556_v14 }
 0xe7d   : > { %v5856_v63 = vmul.f32 0.5, %v5840_v42  ;;  %v9175_v42 = vld [vmem:[%s10241_s21 + $0x190] ss:$8 sps:$4 sm:$0xff]   ;;  %v9186_v31 = vld [vmem:[%s10241_s21 + $0x1c4] ss:$8 sps:$4 sm:$0xff]  }
 0xe7e   : > { %v5858_v39 = vmul.f32 0.5, %v5842_v4  ;;  %v5871_v27 = vmul.f32 %v5855_v2, %v11459_v21  ;;  %v9171_v21 = vld [vmem:[%s10241_s21 + $0x174] ss:$8 sps:$4 sm:$0xff]   ;;  %v3431_v40 = vcombine.high %v3430_v12, %v3430_v12 }
 0xe7f   : > { %6336 = vmatpush1.bf16.msra.mxu1 %v9151_v16  ;;  %v5872_v45 = vmul.f32 %v5856_v63, %v11464_v25  ;;  %v9177_v16 = vld [vmem:[%s10241_s21 + $0x194] ss:$8 sps:$4 sm:$0xff]   ;;  %v9184_v63 = vld [vmem:[%s10241_s21 + $0x1c0] ss:$8 sps:$4 sm:$0xff]  }
 0xe80   : > { %v9273_v9 = vpop.eup %9272  ;;  %6337 = vmatprep.subr.bf16.mxu1 %v9156_v59  ;;  %v11532_v15 = vmul.f32 %v5858_v39, %v11467_v24  ;;  %v5869_v24 = vmul.f32 %v5853_v8, %v11456_v48  ;;  %v9178_v59 = vld [vmem:[%s10241_s21 + $0x1a0] ss:$8 sps:$4 sm:$0xff]   ;;  %v9183_v4 = vld [vmem:[%s10241_s21 + $0x1b4] ss:$8 sps:$4 sm:$0xff]   ;;  %v3438_v8 = vrot.slane %v3430_v12, %v10556_v14 }
 0xe81   : > { %v5841_v10 = vadd.f32 1.0, %v9273_v9  ;;  %v5880_v29 = vpack.c.bf16 %v5872_v45, %v5868_v22  ;;  %v9189_v39 = vld [vmem:[%s10241_s21 + $0x1d4] ss:$8 sps:$4 sm:$0xff]   ;;  %v9192_v22 = vld [vmem:[%s10241_s21 + $0x1e4] ss:$8 sps:$4 sm:$0xff]  }
 0xe82   : > { %v5882_v0 = vpack.c.bf16 %v11532_v15, %v11529_v38  ;;  %v9190_v45 = vld [vmem:[%s10241_s21 + $0x1e0] ss:$8 sps:$4 sm:$0xff]   ;;  %v9195_v9 = vld [vmem:[%s10241_s21 + $0x1f4] ss:$8 sps:$4 sm:$0xff]   ;;  %v6393_v15 = vrot.slane %v3438_v8, %v10833_v52 }
 0xe83   : > { %v9275_v25 = vpop.eup %9274  ;;  %v5857_v49 = vmul.f32 0.5, %v5841_v10  ;;  %6338 = vmatpush1.bf16.msra.mxu1 %v9154_v6  ;;  %v9187_v6 = vld [vmem:[%s10241_s21 + $0x1d0] ss:$8 sps:$4 sm:$0xff]   ;;  %v5948_v10 = vld [vmem:[%s10243_s3] sm:$0x3] }
 0xe84   : > { %6339 = vmatprep.subr.bf16.mxu1 %v9159_v19  ;;  %v5843_v13 = vadd.f32 1.0, %v9275_v25  ;;  %v9193_v19 = vld [vmem:[%s10241_s21 + $0x1f0] ss:$8 sps:$4 sm:$0xff]   ;;  %v5957_v25 = vrot.slane %v5948_v10, %v10833_v52 }
 0xe85   : > { %v5873_v30 = vmul.f32 %v5857_v49, %v11485_v37  ;;  %v9163_v37 = vld [vmem:[%s10241_s21 + $0x150] ss:$8 sps:$4 sm:$0xff]  }
 0xe86   : > { %v5859_v23 = vmul.f32 0.5, %v5843_v13  ;;  %v9309_v12 = vld [vmem:[#allocation12 + $0x6c] ss:$16 sps:$4 sm:$0xff] (!%p8077_p1)  }
 0xe87   : > { %v5881_v7 = vpack.c.bf16 %v5873_v30, %v5869_v24  ;;  %6340 = vmatpush1.bf16.msra.mxu1 %v9157_v61  ;;  %v3445_v30 = vrot.slane %v3431_v40, %v10556_v14  ;;  %v9319_v40 = vld [vmem:[#allocation12 + $0x84] ss:$16 sps:$4 sm:$0xff] (!%p8077_p1)  }
 0xe88   : > { %6341 = vmatprep.subr.bf16.mxu1 %v9162_v57  ;;  %v5875_v11 = vmul.f32 %v5859_v23, %v11489_v51  ;;  %v9169_v51 = vld [vmem:[%s10241_s21 + $0x170] ss:$8 sps:$4 sm:$0xff]  }
 0xe89   : > { %6322 = vmatprep.mubr.bf16.mxu1 %v5881_v7 }
 0xe8a   : > { %6323 = vmatmul.mubr.bf16.gmra.mrb[60].mxu1 %v5880_v29  ;;  %v5883_v48 = vpack.c.bf16 %v5875_v11, %v5871_v27  ;;  %v5953_v29 = vrot.slane %v5948_v10, %v10827_v50  ;;  %v6397_v11 = vrot.slane %v3445_v30, %v10827_v50  ;;  %v9311_v10 = vld [vmem:[#allocation12 + $0x40] ss:$16 sps:$4 sm:$0xff] (!%p8077_p1)  }
 0xe8b   : > { %6365 = vmatprep.mubr.bf16.mxu1 %v5879_v43  ;;  %6342 = vmatpush1.bf16.msra.mxu1 %v9160_v44  ;;  %v9172_v43 = vld [vmem:[%s10241_s21 + $0x180] ss:$8 sps:$4 sm:$0xff]  }
 0xe8c   : > { %6343 = vmatprep.subr.bf16.mxu1 %v9165_v20 }
 0xe8f   : > { %6344 = vmatpush1.bf16.msra.mxu1 %v9163_v37  ;;  %v6401_v37 = vrot.slane %v3445_v30, %v10833_v52  ;;  %v9336_v30 = vld [vmem:[#allocation12 + $0xe8] ss:$16 sps:$4 sm:$0xff] (!%p8077_p1)  }
 0xe90   : > { %6345 = vmatprep.subr.bf16.mxu1 %v9168_v33 }
 0xe93   : > { %6346 = vmatpush1.bf16.msra.mxu1 %v9166_v3 }
 0xe94   : > { %6347 = vmatprep.subr.bf16.mxu1 %v9171_v21 }
 0xe97   : > { %6348 = vmatpush1.bf16.msra.mxu1 %v9169_v51 }
 0xe98   : > { %6349 = vmatprep.subr.bf16.mxu1 %v9174_v62 }
 0xe9b   : > { %6350 = vmatpush1.bf16.msra.mxu1 %v9172_v43 }
 0xe9c   : > { %6351 = vmatprep.subr.bf16.mxu1 %v9177_v16 }
 0xe9f   : > { %6352 = vmatpush1.bf16.msra.mxu1 %v9175_v42 }
 0xea0   : > { %6353 = vmatprep.subr.bf16.mxu1 %v9180_v28 }
 0xea3   : > { %6354 = vmatpush1.bf16.msra.mxu1 %v9178_v59 }
 0xea4   : > { %6355 = vmatprep.subr.bf16.mxu1 %v9183_v4  ;;  %v9294_v4 = vld [vmem:[#allocation12 + $0x8] ss:$16 sps:$4 sm:$0xff] (!%p8077_p1)  }
 0xea7   : > { %6356 = vmatpush1.bf16.msra.mxu1 %v9181_v26 }
 0xea8   : > { %6357 = vmatprep.subr.bf16.mxu1 %v9186_v31  ;;  %v9295_v31 = vld [vmem:[#allocation12 + $0x4] ss:$16 sps:$4 sm:$0xff] (!%p8077_p1)  }
 0xea9   : > { %6840 = vmatprep.subr.bf16.mxu0 (!%p8077_p1), %v9295_v31  ;;  %v9371_v31 = vld [vmem:[#allocation12 + $0x180] ss:$16 sps:$4 sm:$0xff] (!%p8077_p1)  }
 0xeab   : > { %6358 = vmatpush1.bf16.msra.mxu1 %v9184_v63  ;;  %v9297_v63 = vld [vmem:[#allocation12 + $0x2c] ss:$16 sps:$4 sm:$0xff] (!%p8077_p1)  }
 0xeac   : > { %6359 = vmatprep.subr.bf16.mxu1 %v9189_v39  ;;  %v9299_v39 = vld [vmem:[#allocation12] ss:$16 sps:$4 sm:$0xff] (!%p8077_p1)  }
 0xead   : > { %6841 = vmatpush1.bf16.msra.mxu0 (!%p8077_p1), %v9299_v39  ;;  %v9372_v39 = vld [vmem:[#allocation12 + $0x1a8] ss:$16 sps:$4 sm:$0xff] (!%p8077_p1)  }
 0xeaf   : > { %6360 = vmatpush1.bf16.msra.mxu1 %v9187_v6  ;;  %v9300_v6 = vld [vmem:[#allocation12 + $0x28] ss:$16 sps:$4 sm:$0xff] (!%p8077_p1)  }
 0xeb0   : > { %6361 = vmatprep.subr.bf16.mxu1 %v9192_v22  ;;  %v9301_v22 = vld [vmem:[#allocation12 + $0x24] ss:$16 sps:$4 sm:$0xff] (!%p8077_p1)  }
 0xeb1   : > { %6842 = vmatprep.subr.bf16.mxu0 (!%p8077_p1), %v9301_v22  ;;  %v9377_v22 = vld [vmem:[#allocation12 + $0x1a0] ss:$16 sps:$4 sm:$0xff] (!%p8077_p1)  }
 0xeb3   : > { %6362 = vmatpush1.bf16.msra.mxu1 %v9190_v45  ;;  %v9303_v45 = vld [vmem:[#allocation12 + $0x4c] ss:$16 sps:$4 sm:$0xff] (!%p8077_p1)  }
 0xeb4   : > { %6363 = vmatprep.subr.bf16.mxu1 %v9195_v9  ;;  %v9307_v9 = vld [vmem:[#allocation12 + $0x44] ss:$16 sps:$4 sm:$0xff] (!%p8077_p1)  }
 0xeb7   : > { %6364 = vmatpush1.bf16.msra.mxu1 %v9193_v19  ;;  %v9306_v19 = vld [vmem:[#allocation12 + $0x48] ss:$16 sps:$4 sm:$0xff] (!%p8077_p1)  }
 0xeba   : > { %6366 = vmatmul.mubr.bf16.vlgmr.msra.gmra.mrb[56].mxu1 %v5878_v47  ;;  %v6389_v47 = vrot.slane %v3438_v8, %v10827_v50  ;;  %v9313_v8 = vld [vmem:[#allocation12 + $0x64] ss:$16 sps:$4 sm:$0xff] (!%p8077_p1)  }
 0xebb   : > { %6375 = vmatprep.mubr.bf16.mxu1 %v5883_v48 }
 0xec2   : > { %6376 = vmatmul.mubr.bf16.gmra.mrb[60].mxu1 %v5882_v0 }
 0xec3   : > { %6913 = vmatprep.mubr.bf16.mxu1 (!%p8077_p1), %v10560_v18  ;;  %v9305_v18 = vld [vmem:[#allocation12 + $0x20] ss:$16 sps:$4 sm:$0xff] (!%p8077_p1)  }
 0xec4   : > { %6843 = vmatpush1.bf16.msra.mxu0 (!%p8077_p1), %v9305_v18  ;;  %v9378_v18 = vld [vmem:[#allocation12 + $0x1c8] ss:$16 sps:$4 sm:$0xff] (!%p8077_p1)  }
 0xec5   : > { %6844 = vmatprep.subr.bf16.mxu0 (!%p8077_p1), %v9307_v9  ;;  %v9381_v9 = vld [vmem:[#allocation12 + $0x1ec] ss:$16 sps:$4 sm:$0xff] (!%p8077_p1)  }
 0xec8   : > { %6845 = vmatpush1.bf16.msra.mxu0 (!%p8077_p1), %v9311_v10  ;;  %v9384_v10 = vld [vmem:[#allocation12 + $0x1e8] ss:$16 sps:$4 sm:$0xff] (!%p8077_p1)  }
 0xec9   : > { %6846 = vmatprep.subr.bf16.mxu0 (!%p8077_p1), %v9313_v8  ;;  %v9387_v8 = vld [vmem:[#allocation12 + $0x1e0] ss:$16 sps:$4 sm:$0xff] (!%p8077_p1)  }
 0xf8d   : > { %v6367_v49 = vpop.f32.mrb[56].mxu1 }
 0xf8e   : > { %v8258_v5 = vadd.f32 %v6367_v49, %v5953_v29  ;;  %v6369_v61 = vpop.f32.mrb[57].mxu1  ;;  %v9317_v49 = vld [vmem:[#allocation12 + $0x60] ss:$16 sps:$4 sm:$0xff] (!%p8077_p1)  }
 0xf8f   : > { %v8259_v38 = vadd.f32 %v6369_v61, %v5957_v25  ;;  %v6371_v0 = vpop.f32.mrb[58].mxu1  ;;  %6847 = vmatpush1.bf16.msra.mxu0 (!%p8077_p1), %v9317_v49  ;;  %v9323_v61 = vld [vmem:[#allocation12 + $0x80] ss:$16 sps:$4 sm:$0xff] (!%p8077_p1)  }
 0xf90   : > { %v6406_v57 = vmul.f32 %v8258_v5, %v6389_v47  ;;  %v8260_v34 = vadd.f32 %v6371_v0, %v5953_v29  ;;  %v6373_v35 = vpop.f32.mrb[59].mxu1  ;;  %v9318_v5 = vld [vmem:[#allocation12 + $0x88] ss:$16 sps:$4 sm:$0xff] (!%p8077_p1)   ;;  %6848 = vmatprep.subr.bf16.mxu0 (!%p8077_p1), %v9319_v40  ;;  %v9327_v0 = vld [vmem:[#allocation12 + $0xcc] ss:$16 sps:$4 sm:$0xff] (!%p8077_p1)  }
 0xf91   : > { %v6407_v36 = vmul.f32 %v8259_v38, %v6393_v15  ;;  %v8261_v13 = vadd.f32 %v6373_v35, %v5957_v25  ;;  %v9325_v38 = vld [vmem:[#allocation12 + $0xa4] ss:$16 sps:$4 sm:$0xff] (!%p8077_p1)   ;;  %v9330_v35 = vld [vmem:[#allocation12 + $0xc8] ss:$16 sps:$4 sm:$0xff] (!%p8077_p1)  }
 0xf92   : > { %v11582_v2 = vadd.f32 %v6406_v57, %v11186_v53  ;;  %v6408_v24 = vmul.f32 %v8260_v34, %v6389_v47  ;;  %v9321_v47 = vld [vmem:[#allocation12 + $0xac] ss:$16 sps:$4 sm:$0xff] (!%p8077_p1)   ;;  %v9329_v57 = vld [vmem:[#allocation12 + $0xa0] ss:$16 sps:$4 sm:$0xff] (!%p8077_p1)   ;;  %v9331_v34 = vld [vmem:[#allocation12 + $0xc4] ss:$16 sps:$4 sm:$0xff] (!%p8077_p1)  }
 0xf93   : > { %v11586_v23 = vadd.f32 %v6407_v36, %v11189_v60  ;;  %v6409_v7 = vmul.f32 %v8261_v13, %v6393_v15  ;;  %v9324_v15 = vld [vmem:[#allocation12 + $0xa8] ss:$16 sps:$4 sm:$0xff] (!%p8077_p1)   ;;  %6849 = vmatpush1.bf16.msra.mxu0 (!%p8077_p1), %v9323_v61  ;;  %v9333_v36 = vld [vmem:[#allocation12 + $0xec] ss:$16 sps:$4 sm:$0xff] (!%p8077_p1)   ;;  %v9335_v13 = vld [vmem:[#allocation12 + $0xc0] ss:$16 sps:$4 sm:$0xff] (!%p8077_p1)  }
 0xf94   : > { %6422 = vst [vmem:[#allocation2] sm:$0xff] %v11582_v2  ;;  %v11590_v44 = vadd.f32 %v6408_v24, %v11191_v41  ;;  %6850 = vmatprep.subr.bf16.mxu0 (!%p8077_p1), %v9325_v38  ;;  %v9337_v24 = vld [vmem:[#allocation12 + $0xe4] ss:$16 sps:$4 sm:$0xff] (!%p8077_p1)  }
 0xf95   : > { %6423 = vst [vmem:[#allocation2 + $0x8] sm:$0xff] %v11586_v23  ;;  %v11594_v20 = vadd.f32 %v6409_v7, %v11193_v54  ;;  %v6377_v27 = vpop.f32.mrb[60].mxu1  ;;  %v9339_v7 = vld [vmem:[#allocation12 + $0x10c] ss:$16 sps:$4 sm:$0xff] (!%p8077_p1)  }
 0xf96   : > { %6424 = vst [vmem:[#allocation2 + $0x10] sm:$0xff] %v11590_v44  ;;  %v8262_v53 = vadd.f32 %v6377_v27, %v5953_v29  ;;  %v6379_v48 = vpop.f32.mrb[61].mxu1  ;;  %v9341_v27 = vld [vmem:[#allocation12 + $0xe0] ss:$16 sps:$4 sm:$0xff] (!%p8077_p1)  }
 0xf97   : > { %6425 = vst [vmem:[#allocation2 + $0x18] sm:$0xff] %v11594_v20  ;;  %v8263_v60 = vadd.f32 %v6379_v48, %v5957_v25  ;;  %v6381_v33 = vpop.f32.mrb[62].mxu1  ;;  %6851 = vmatpush1.bf16.msra.mxu0 (!%p8077_p1), %v9329_v57  ;;  %v9345_v48 = vld [vmem:[#allocation12 + $0x12c] ss:$16 sps:$4 sm:$0xff] (!%p8077_p1)  }
 0xf98   : > { %v6410_v41 = vmul.f32 %v8262_v53, %v6397_v11  ;;  %v8264_v3 = vadd.f32 %v6381_v33, %v5953_v29  ;;  %v6383_v21 = vpop.f32.mrb[63].mxu1  ;;  %v9312_v29 = vld [vmem:[#allocation12 + $0x68] ss:$16 sps:$4 sm:$0xff] (!%p8077_p1)   ;;  %6852 = vmatprep.subr.bf16.mxu0 (!%p8077_p1), %v9331_v34  ;;  %v9343_v53 = vld [vmem:[#allocation12 + $0x104] ss:$16 sps:$4 sm:$0xff] (!%p8077_p1)  }
 0xf99   : > { %v6411_v51 = vmul.f32 %v8263_v60, %v6401_v37  ;;  %v8265_v62 = vadd.f32 %v6383_v21, %v5957_v25  ;;  %6433 = sbr.rel (%p8077_p1) target bundleno = 4540 (0x11bc), region = 176  ;;  %v9315_v25 = vld [vmem:[#allocation12 + $0x8c] ss:$16 sps:$4 sm:$0xff] (!%p8077_p1)   ;;  %v9347_v60 = vld [vmem:[#allocation12 + $0x100] ss:$16 sps:$4 sm:$0xff] (!%p8077_p1)  }
 0xf9a   : > { %v11601_v54 = vadd.f32 %v6410_v41, %v11201_v1  ;;  %v6412_v43 = vmul.f32 %v8264_v3, %v6397_v11  ;;  %v6974_v1 = vadd.f32 (!%p8077_p1), %v11586_v23, %v11582_v2  ;;  %v9342_v11 = vld [vmem:[#allocation12 + $0x108] ss:$16 sps:$4 sm:$0xff] (!%p8077_p1)   ;;  %v9351_v41 = vld [vmem:[#allocation12 + $0x14c] ss:$16 sps:$4 sm:$0xff] (!%p8077_p1)   ;;  %v9353_v3 = vld [vmem:[#allocation12 + $0x120] ss:$16 sps:$4 sm:$0xff] (!%p8077_p1)  }
 0xf9b   : > { %v11604_v16 = vadd.f32 %v6411_v51, %v11203_v17  ;;  %v6413_v42 = vmul.f32 %v8265_v62, %v6401_v37  ;;  %6853 = vmatpush1.bf16.msra.mxu0 (!%p8077_p1), %v9335_v13  ;;  %v9349_v37 = vld [vmem:[#allocation12 + $0x124] ss:$16 sps:$4 sm:$0xff] (!%p8077_p1)   ;;  %v9348_v33 = vld [vmem:[#allocation12 + $0x128] ss:$16 sps:$4 sm:$0xff] (!%p8077_p1)   ;;  %v9357_v62 = vld [vmem:[#allocation12 + $0x16c] ss:$16 sps:$4 sm:$0xff] (!%p8077_p1)  }
 0xf9c   : > { %6426 = vst [vmem:[#allocation2 + $0x20] sm:$0xff] %v11601_v54  ;;  %v11608_v28 = vadd.f32 %v6412_v43, %v11205_v32  ;;  %v9292_v32 = vld [vmem:[#allocation12 + $0xc] ss:$16 sps:$4 sm:$0xff] (!%p8077_p1)   ;;  %6975 = vadd.xlane.f32.xlu0 (!%p8077_p1), %v6974_v1  ;;  %6854 = vmatprep.subr.bf16.mxu0 (!%p8077_p1), %v9337_v24  ;;  %v9355_v21 = vld [vmem:[#allocation12 + $0x144] ss:$16 sps:$4 sm:$0xff] (!%p8077_p1)  }
 0xf9d   : > { %6427 = vst [vmem:[#allocation2 + $0x28] sm:$0xff] %v11604_v16  ;;  %v11612_v59 = vadd.f32 %v6413_v42, %v11207_v56  ;;  %v6980_v17 = vadd.f32 (!%p8077_p1), %v11604_v16, %v11601_v54  ;;  %v6977_v56 = vadd.f32 (!%p8077_p1), %v11594_v20, %v11590_v44  ;;  %6881 = vmatprep.subr.bf16.mxu1 (!%p8077_p1), %v9292_v32  ;;  %v9354_v51 = vld [vmem:[#allocation12 + $0x148] ss:$16 sps:$4 sm:$0xff] (!%p8077_p1)   ;;  %v9359_v43 = vld [vmem:[#allocation12 + $0x140] ss:$16 sps:$4 sm:$0xff] (!%p8077_p1)  }
 0xf9e   : > { %6428 = vst [vmem:[#allocation2 + $0x30] sm:$0xff] %v11608_v28  ;;  %6882 = vmatpush1.bf16.msra.mxu1 (!%p8077_p1), %v9294_v4  ;;  %v9360_v42 = vld [vmem:[#allocation12 + $0x168] ss:$16 sps:$4 sm:$0xff] (!%p8077_p1)   ;;  %v9361_v1 = vld [vmem:[#allocation12 + $0x164] ss:$16 sps:$4 sm:$0xff] (!%p8077_p1)  }
 0xf9f   : > { %6429 = vst [vmem:[#allocation2 + $0x38] sm:$0xff] %v11612_v59  ;;  %6981 = vadd.xlane.f32.xlu1 (!%p8077_p1), %v6980_v17  ;;  %v6983_v26 = vadd.f32 (!%p8077_p1), %v11612_v59, %v11608_v28  ;;  %6883 = vmatprep.subr.bf16.mxu1 (!%p8077_p1), %v9297_v63  ;;  %v9363_v17 = vld [vmem:[#allocation12 + $0x18c] ss:$16 sps:$4 sm:$0xff] (!%p8077_p1)   ;;  %v9365_v32 = vld [vmem:[#allocation12 + $0x160] ss:$16 sps:$4 sm:$0xff] (!%p8077_p1)  }
 0xfa0   : > { %6978 = vadd.xlane.f32.xlu0 %v6977_v56  ;;  %6855 = vmatpush1.bf16.msra.mxu0 %v9341_v27  ;;  %v9367_v4 = vld [vmem:[#allocation12 + $0x184] ss:$16 sps:$4 sm:$0xff]   ;;  %v9366_v56 = vld [vmem:[#allocation12 + $0x188] ss:$16 sps:$4 sm:$0xff]  }
 0xfa1   : > { %6856 = vmatprep.subr.bf16.mxu0 %v9343_v53  ;;  %v9373_v63 = vld [vmem:[#allocation12 + $0x1a4] ss:$16 sps:$4 sm:$0xff]  }
 0xfa2   : > { %6884 = vmatpush1.bf16.msra.mxu1 %v9300_v6  ;;  %v9375_v6 = vld [vmem:[#allocation12 + $0x1cc] ss:$16 sps:$4 sm:$0xff]  }
 0xfa3   : > { %6984 = vadd.xlane.f32.xlu1 %v6983_v26  ;;  %6885 = vmatprep.subr.bf16.mxu1 %v9303_v45  ;;  %v9369_v26 = vld [vmem:[#allocation12 + $0x1ac] ss:$16 sps:$4 sm:$0xff]   ;;  %v9379_v45 = vld [vmem:[#allocation12 + $0x1c4] ss:$16 sps:$4 sm:$0xff]  }
 0xfa4   : > { %6857 = vmatpush1.bf16.msra.mxu0 %v9347_v60  ;;  %v9391_v60 = vld [vmem:[#allocation15 + $0x8] sm:$0xff]  }
 0xfa5   : > { %6858 = vmatprep.subr.bf16.mxu0 %v9349_v37  ;;  %v9392_v37 = vld [vmem:[#allocation15 + $0x50] sm:$0xff]  }
 0xfa6   : > { %6886 = vmatpush1.bf16.msra.mxu1 %v9306_v19  ;;  %v9383_v19 = vld [vmem:[#allocation12 + $0x1c0] ss:$16 sps:$4 sm:$0xff]  }
 0xfa7   : > { %6887 = vmatprep.subr.bf16.mxu1 %v9309_v12  ;;  %v9385_v12 = vld [vmem:[#allocation12 + $0x1e4] ss:$16 sps:$4 sm:$0xff]  }
 0xfa8   : > { %6859 = vmatpush1.bf16.msra.mxu0 %v9353_v3  ;;  %v9395_v3 = vld [vmem:[#allocation15 + $0x18] sm:$0xff]  }
 0xfa9   : > { %6860 = vmatprep.subr.bf16.mxu0 %v9355_v21  ;;  %v9396_v21 = vld [vmem:[#allocation15 + $0x60] sm:$0xff]  }
 0xfaa   : > { %6888 = vmatpush1.bf16.msra.mxu1 %v9312_v29  ;;  %v9388_v29 = vld [vmem:[#allocation15 + $0x40] sm:$0xff]  }
 0xfab   : > { %6889 = vmatprep.subr.bf16.mxu1 %v9315_v25  ;;  %v9389_v25 = vld [vmem:[#allocation15] sm:$0xff]  }
 0xfac   : > { %6861 = vmatpush1.bf16.msra.mxu0 %v9359_v43  ;;  %v9399_v43 = vld [vmem:[#allocation15 + $0x28] sm:$0xff]  }
 0xfad   : > { %6862 = vmatprep.subr.bf16.mxu0 %v9361_v1  ;;  %v9401_v1 = vld [vmem:[#allocation15 + $0x30] sm:$0xff]  }
 0xfae   : > { %6890 = vmatpush1.bf16.msra.mxu1 %v9318_v5 }
 0xfaf   : > { %6891 = vmatprep.subr.bf16.mxu1 %v9321_v47 }
 0xfb0   : > { %6863 = vmatpush1.bf16.msra.mxu0 %v9365_v32  ;;  %v9403_v32 = vld [vmem:[#allocation15 + $0x38] sm:$0xff]  }
 0xfb1   : > { %6864 = vmatprep.subr.bf16.mxu0 %v9367_v4  ;;  %v6498_v4 = vld [vmem:[#allocation13] sm:$0xf] }
 0xfb2   : > { %6892 = vmatpush1.bf16.msra.mxu1 %v9324_v15 }
 0xfb3   : > { %6893 = vmatprep.subr.bf16.mxu1 %v9327_v0 }
 0xfb4   : > { %6865 = vmatpush1.bf16.msra.mxu0 %v9371_v31  ;;  %v6503_v31 = vrot.slane %v6498_v4, %v10827_v50 }
 0xfb5   : > { %6866 = vmatprep.subr.bf16.mxu0 %v9373_v63  ;;  %v6507_v63 = vrot.slane %v6498_v4, %v10833_v52 }
 0xfb6   : > { %6894 = vmatpush1.bf16.msra.mxu1 %v9330_v35 }
 0xfb7   : > { %6895 = vmatprep.subr.bf16.mxu1 %v9333_v36 }
 0xfb8   : > { %6867 = vmatpush1.bf16.msra.mxu0 %v9377_v22 }
 0xfb9   : > { %6868 = vmatprep.subr.bf16.mxu0 %v9379_v45 }
 0xfba   : > { %6896 = vmatpush1.bf16.msra.mxu1 %v9336_v30 }
 0xfbb   : > { %6897 = vmatprep.subr.bf16.mxu1 %v9339_v7 }
 0xfbc   : > { %6869 = vmatpush1.bf16.msra.mxu0 %v9383_v19 }
 0xfbd   : > { %6870 = vmatprep.subr.bf16.mxu0 %v9385_v12 }
 0xfbe   : > { %6898 = vmatpush1.bf16.msra.mxu1 %v9342_v11 }
 0xfbf   : > { %6899 = vmatprep.subr.bf16.mxu1 %v9345_v48 }
 0xfc0   : > { %6871 = vmatpush1.bf16.msra.mxu0 %v9387_v8 }
 0xfc1   : > { %8182 = vmatprep.subr.bf16.mxu0 %v9388_v29 }
 0xfc2   : > { %6900 = vmatpush1.bf16.msra.mxu1 %v9348_v33  ;;  %v9393_v33 = vld [vmem:[#allocation15 + $0x10] sm:$0xff]  }
 0xfc3   : > { %6901 = vmatprep.subr.bf16.mxu1 %v9351_v41  ;;  %6873 = vmatmul.mubr.bf16.vlgmr.msra.gmra.mrb[0].mxu0 %v10591_v46  ;;  %v9394_v41 = vld [vmem:[#allocation15 + $0x58] sm:$0xff]  }
 0xfc4   : > { %8183 = vmatpush3.bf16.msra.mxu0 %v9389_v25 }
 0xfc6   : > { %6902 = vmatpush1.bf16.msra.mxu1 %v9354_v51  ;;  %v9397_v51 = vld [vmem:[#allocation15 + $0x20] sm:$0xff]  }
 0xfc7   : > { %6903 = vmatprep.subr.bf16.mxu1 %v9357_v62  ;;  %v9398_v62 = vld [vmem:[#allocation15 + $0x68] sm:$0xff]  }
 0xfca   : > { %6904 = vmatpush1.bf16.msra.mxu1 %v9360_v42  ;;  %v9400_v42 = vld [vmem:[#allocation15 + $0x70] sm:$0xff]  }
 0xfcb   : > { %6905 = vmatprep.subr.bf16.mxu1 %v9363_v17  ;;  %v9402_v17 = vld [vmem:[#allocation15 + $0x78] sm:$0xff]  }
 0xfce   : > { %6906 = vmatpush1.bf16.msra.mxu1 %v9366_v56  ;;  %v6511_v56 = vrot.slane %v6498_v4, %v10880_v55 }
 0xfcf   : > { %6907 = vmatprep.subr.bf16.mxu1 %v9369_v26  ;;  %v6515_v26 = vrot.slane %v6498_v4, %v10883_v58 }
 0xfd2   : > { %6908 = vmatpush1.bf16.msra.mxu1 %v9372_v39 }
 0xfd3   : > { %6909 = vmatprep.subr.bf16.mxu1 %v9375_v6 }
 0xfd6   : > { %6910 = vmatpush1.bf16.msra.mxu1 %v9378_v18 }
 0xfd7   : > { %6911 = vmatprep.subr.bf16.mxu1 %v9381_v9 }
 0xfda   : > { %6912 = vmatpush1.bf16.msra.mxu1 %v9384_v10 }
 0xfdb   : > { %8274 = vmatprep.subr.bf16.mxu1 %v9388_v29 }
 0xfdd   : > { %6914 = vmatmul.mubr.bf16.vlgmr.msra.gmra.mrb[0].mxu1 %v10591_v46 }
 0xfde   : > { %8282 = vmatpush3.bf16.msra.mxu1 %v9389_v25 }
0x1029   : > { %v6976_v49 = vpop.xlane.xlu0 %6975 }
0x102a   : > { %v6986_v5 = vmul.f32 0.00390625, %v6976_v49 }
0x102c   : > { %v6982_v40 = vpop.xlane.xlu1 %6981  ;;  %v11630_v61 = vsub.f32 %v11582_v2, %v6986_v5  ;;  %v11633_v38 = vsub.f32 %v11586_v23, %v6986_v5 }
0x102d   : > { %v6988_v47 = vmul.f32 0.00390625, %v6982_v40  ;;  %v6979_v57 = vpop.xlane.xlu0 %6978 }
0x102e   : > { %v6987_v34 = vmul.f32 0.00390625, %v6979_v57  ;;  %v6998_v36 = vmul.f32 %v11630_v61, %v11630_v61  ;;  %v6999_v2 = vmul.f32 %v11633_v38, %v11633_v38 }
0x102f   : > { %v11636_v15 = vsub.f32 %v11601_v54, %v6988_v47  ;;  %v11639_v0 = vsub.f32 %v11604_v16, %v6988_v47 }
0x1030   : > { %v6985_v46 = vpop.xlane.xlu1 %6984  ;;  %v11650_v13 = vsub.f32 %v11590_v44, %v6987_v34  ;;  %v11653_v16 = vsub.f32 %v11594_v20, %v6987_v34  ;;  %v7006_v7 = vadd.f32 %v6999_v2, %v6998_v36 }
0x1031   : > { %v6989_v35 = vmul.f32 0.00390625, %v6985_v46  ;;  %v7002_v23 = vmul.f32 %v11636_v15, %v11636_v15  ;;  %v7003_v54 = vmul.f32 %v11639_v0, %v11639_v0 }
0x1032   : > { %v7000_v27 = vmul.f32 %v11650_v13, %v11650_v13  ;;  %v7001_v53 = vmul.f32 %v11653_v16, %v11653_v16  ;;  %7007 = vadd.xlane.f32.xlu0 %v7006_v7 }
0x1033   : > { %v11656_v24 = vsub.f32 %v11608_v28, %v6989_v35  ;;  %v11659_v30 = vsub.f32 %v11612_v59, %v6989_v35  ;;  %v7012_v11 = vadd.f32 %v7003_v54, %v7002_v23  ;;  %v9390_v59 = vld [vmem:[#allocation15 + $0x48] sm:$0xff]  }
0x1034   : > { %v7009_v28 = vadd.f32 %v7001_v53, %v7000_v27  ;;  %8184 = vmatprep.subr.bf16.mxu0 %v9390_v59  ;;  %8275 = vmatprep.subr.bf16.mxu1 %v9390_v59 }
0x1035   : > { %v7004_v44 = vmul.f32 %v11656_v24, %v11656_v24  ;;  %v7005_v20 = vmul.f32 %v11659_v30, %v11659_v30  ;;  %8185 = vmatpush3.bf16.msra.mxu0 %v9391_v60  ;;  %8283 = vmatpush3.bf16.msra.mxu1 %v9391_v60 }
0x1036   : > { %7010 = vadd.xlane.f32.xlu1 %v7009_v28  ;;  %7013 = vadd.xlane.f32.xlu0 %v7012_v11 }
0x1037   : > { %v7015_v48 = vadd.f32 %v7005_v20, %v7004_v44  ;;  %8186 = vmatprep.subr.bf16.mxu0 %v9392_v37  ;;  %8276 = vmatprep.subr.bf16.mxu1 %v9392_v37 }
0x1039   : > { %8187 = vmatpush3.bf16.msra.mxu0 %v9393_v33  ;;  %8284 = vmatpush3.bf16.msra.mxu1 %v9393_v33 }
0x103a   : > { %7016 = vadd.xlane.f32.xlu1 %v7015_v48  ;;  %8188 = vmatprep.subr.bf16.mxu0 %v9394_v41 }
0x103b   : > { %8277 = vmatprep.subr.bf16.mxu1 %v9394_v41 }
0x103d   : > { %8189 = vmatpush3.bf16.msra.mxu0 %v9395_v3  ;;  %8285 = vmatpush3.bf16.msra.mxu1 %v9395_v3 }
0x103e   : > { %8190 = vmatprep.subr.bf16.mxu0 %v9396_v21  ;;  %8278 = vmatprep.subr.bf16.mxu1 %v9396_v21 }
0x1041   : > { %8191 = vmatpush3.bf16.msra.mxu0 %v9397_v51  ;;  %8286 = vmatpush3.bf16.msra.mxu1 %v9397_v51 }
0x1042   : > { %8192 = vmatprep.subr.bf16.mxu0 %v9398_v62  ;;  %8279 = vmatprep.subr.bf16.mxu1 %v9398_v62 }
0x1045   : > { %8193 = vmatpush3.bf16.msra.mxu0 %v9399_v43  ;;  %8287 = vmatpush3.bf16.msra.mxu1 %v9399_v43 }
0x1046   : > { %8194 = vmatprep.subr.bf16.mxu0 %v9400_v42  ;;  %8280 = vmatprep.subr.bf16.mxu1 %v9400_v42 }
0x1049   : > { %8195 = vmatpush3.bf16.msra.mxu0 %v9401_v1  ;;  %8288 = vmatpush3.bf16.msra.mxu1 %v9401_v1 }
0x104a   : > { %8196 = vmatprep.subr.bf16.mxu0 %v9402_v17  ;;  %8281 = vmatprep.subr.bf16.mxu1 %v9402_v17 }
0x104d   : > { %8197 = vmatpush3.bf16.msra.mxu0 %v9403_v32  ;;  %8289 = vmatpush3.bf16.msra.mxu1 %v9403_v32 }
0x1096   : > { %v6874_v45 = vpop.f32.mrb[0].mxu0 }
0x1097   : > { %v6875_v9 = vadd.f32 %v6874_v45, %v6503_v31  ;;  %v6876_v19 = vpop.f32.mrb[1].mxu0 }
0x1098   : > { %v6877_v10 = vadd.f32 %v6876_v19, %v6507_v63  ;;  %v6878_v29 = vpop.f32.mrb[2].mxu0 }
0x1099   : > { %v6879_v49 = vpop.f32.mrb[3].mxu0 }
0x109a   : > { %v6924_v55 = vcombine.low %v6875_v9, %v6877_v10 }
0x109c   : > { %v6931_v53 = vrot.slane %v6924_v55, %v10556_v14 }
0x109e   : > { %v6932_v28 = vcombine.high %v6931_v53, %v6931_v53  ;;  %v6939_v48 = vrot.slane %v6931_v53, %v10556_v14 }
0x10a0   : > { %v6946_v41 = vrot.slane %v6932_v28, %v10556_v14  ;;  %v7073_v21 = vrot.slane %v6939_v48, %v10827_v50  ;;  %v7077_v51 = vrot.slane %v6939_v48, %v10833_v52 }
0x10b0   : > { %v6915_v39 = vpop.f32.mrb[0].mxu1 }
0x10b1   : > { %v6916_v6 = vadd.f32 %v6915_v39, %v6511_v56  ;;  %v6917_v22 = vpop.f32.mrb[1].mxu1 }
0x10b2   : > { %v6918_v18 = vadd.f32 %v6917_v22, %v6515_v26  ;;  %v6919_v12 = vpop.f32.mrb[2].mxu1 }
0x10b3   : > { %v6920_v8 = vpop.f32.mrb[3].mxu1 }
0x10b4   : > { %v6949_v25 = vcombine.low %v6916_v6, %v6918_v18 }
0x10b6   : > { %v6956_v5 = vrot.slane %v6949_v25, %v10556_v14 }
0x10b8   : > { %v6957_v2 = vcombine.high %v6956_v5, %v6956_v5  ;;  %v6964_v23 = vrot.slane %v6956_v5, %v10556_v14 }
0x10ba   : > { %v6971_v44 = vrot.slane %v6957_v2, %v10556_v14  ;;  %v7038_v20 = vadd.f32 1.0, %v6964_v23  ;;  %v7081_v14 = vrot.slane %v6946_v41, %v10827_v50 }
0x10bc   : > { %v7039_v59 = vadd.f32 1.0, %v6971_v44  ;;  %v7045_v60 = vrot.slane %v7038_v20, %v10827_v50  ;;  %v7049_v37 = vrot.slane %v7038_v20, %v10833_v52 }
0x10be   : > { %v7053_v42 = vrot.slane %v7039_v59, %v10827_v50  ;;  %v7057_v1 = vrot.slane %v7039_v59, %v10833_v52 }
0x10bf   : > { %v7008_v40 = vpop.xlane.xlu0 %7007 }
0x10c0   : > { %v7018_v58 = vmul.f32 0.00390625, %v7008_v40 }
0x10c2   : > { %v7022_v47 = vadd.f32 1e-05, %v7018_v58 }
0x10c3   : > { %v7011_v57 = vpop.xlane.xlu1 %7010  ;;  %v7014_v34 = vpop.xlane.xlu0 %7013 }
0x10c4   : > { %v7019_v46 = vmul.f32 0.00390625, %v7011_v57  ;;  %9404 = vrsqrt.f32 %v7022_v47  ;;  %v7020_v35 = vmul.f32 0.00390625, %v7014_v34 }
0x10c6   : > { %v7023_v36 = vadd.f32 1e-05, %v7019_v46  ;;  %v7024_v54 = vadd.f32 1e-05, %v7020_v35 }
0x10c7   : > { %v7017_v7 = vpop.xlane.xlu1 %7016 }
0x10c8   : > { %9406 = vrsqrt.f32 %v7023_v36  ;;  %v7021_v27 = vmul.f32 0.00390625, %v7017_v7 }
0x10c9   : > { %9408 = vrsqrt.f32 %v7024_v54 }
0x10ca   : > { %v7025_v11 = vadd.f32 1e-05, %v7021_v27 }
0x10cc   : > { %9410 = vrsqrt.f32 %v7025_v11 }
0x10ce   : > { %v9405_v33 = vpop.eup %9404 }
0x10cf   : > { %v7030_v3 = vmul.f32 %v9405_v33, %v11630_v61  ;;  %v7031_v62 = vmul.f32 %v9405_v33, %v11633_v38  ;;  %v7085_v61 = vrot.slane %v6946_v41, %v10833_v52 }
0x10d1   : > { %v7062_v17 = vmul.f32 %v7045_v60, %v7030_v3  ;;  %v7063_v32 = vmul.f32 %v7049_v37, %v7031_v62 }
0x10d2   : > { %v9407_v43 = vpop.eup %9406 }
0x10d3   : > { %v9409_v4 = vpop.eup %9408  ;;  %v7032_v56 = vmul.f32 %v9407_v43, %v11650_v13  ;;  %v7033_v26 = vmul.f32 %v9407_v43, %v11653_v16  ;;  %v7090_v63 = vadd.f32 %v7073_v21, %v7062_v17  ;;  %v7091_v38 = vadd.f32 %v7077_v51, %v7063_v32 }
0x10d4   : > { %v7034_v31 = vmul.f32 %v9409_v4, %v11636_v15  ;;  %v7035_v39 = vmul.f32 %v9409_v4, %v11639_v0 }
0x10d5   : > { %v7064_v6 = vmul.f32 %v7045_v60, %v7032_v56  ;;  %v7065_v22 = vmul.f32 %v7049_v37, %v7033_v26 }
0x10d6   : > { %v9411_v45 = vpop.eup %9410  ;;  %v7066_v18 = vmul.f32 %v7053_v42, %v7034_v31  ;;  %v7067_v9 = vmul.f32 %v7057_v1, %v7035_v39 }
0x10d7   : > { %v7036_v19 = vmul.f32 %v9411_v45, %v11656_v24  ;;  %v7092_v13 = vadd.f32 %v7073_v21, %v7064_v6  ;;  %v7093_v12 = vadd.f32 %v7077_v51, %v7065_v22  ;;  %v7037_v50 = vmul.f32 %v9411_v45, %v11659_v30  ;;  %v8142_v24 = vld [vmem:[#allocation16] ss:$0 sm:$0xff] }
0x10d8   : > { %v7095_v52 = vadd.f32 %v7085_v61, %v7067_v9  ;;  %v7094_v10 = vadd.f32 %v7081_v14, %v7066_v18 }
0x10d9   : > { %v7099_v16 = vpack.c.bf16 %v7093_v12, %v7091_v38  ;;  %v7098_v8 = vpack.c.bf16 %v7092_v13, %v7090_v63  ;;  %v7069_v15 = vmul.f32 %v7057_v1, %v7037_v50  ;;  %v7068_v29 = vmul.f32 %v7053_v42, %v7036_v19 }
0x10db   : > { %7269 = vmatprep.mubr.bf16.mxu0 %v7099_v16  ;;  %v7097_v25 = vadd.f32 %v7085_v61, %v7069_v15  ;;  %v7096_v0 = vadd.f32 %v7081_v14, %v7068_v29 }
0x10dc   : > { %7270 = vmatmul.mubr.bf16.vlgmr.msra.gmra.mrb[4].mxu0 %v7098_v8 }
0x10dd   : > { %v7101_v49 = vpack.c.bf16 %v7097_v25, %v7095_v52  ;;  %v7100_v55 = vpack.c.bf16 %v7096_v0, %v7094_v10 }
0x10df   : > { %7277 = vmatprep.mubr.bf16.mxu1 %v7101_v49 }
0x10e0   : > { %7278 = vmatmul.mubr.bf16.vlgmr.msra.gmra.mrb[4].mxu1 %v7100_v55 }
0x11af   : > { %v8198_v40 = vpop.f32.mrb[4].mxu0 }
0x11b0   : > { %v8199_v58 = vpop.f32.mrb[5].mxu0 }
0x11b1   : > { %v8200_v5 = vadd.f32 %v8199_v58, %v8198_v40  ;;  %v8201_v47 = vpop.f32.mrb[6].mxu0 }
0x11b2   : > { %v8202_v30 = vpop.f32.mrb[7].mxu0 }
0x11b3   : > { %v7272_v57 = vadd.f32 %v8200_v5, %v8142_v24  ;;  %v8203_v46 = vadd.f32 %v8202_v30, %v8201_v47  ;;  %v8204_v34 = vpop.f32.mrb[4].mxu1 }
0x11b4   : > { %v8205_v35 = vpop.f32.mrb[5].mxu1 }
0x11b5   : > { %7286 = vst [vmem:[%s11867_s28] sm:$0xff] %v7272_v57  ;;  %v7275_v36 = vadd.f32 %v8203_v46, %v8142_v24  ;;  %v8206_v2 = vadd.f32 %v8205_v35, %v8204_v34  ;;  %v8207_v23 = vpop.f32.mrb[6].mxu1 }
0x11b6   : > { %v8208_v54 = vpop.f32.mrb[7].mxu1 }
0x11b7   : > { %7287 = vst [vmem:[%s11867_s28 + $0x8] sm:$0xff] %v7275_v36  ;;  %v7280_v7 = vadd.f32 %v8206_v2, %v8142_v24  ;;  %v8209_v27 = vadd.f32 %v8208_v54, %v8207_v23 }
0x11b9   : > { %7288 = vst [vmem:[%s11867_s28 + $0x10] sm:$0xff] %v7280_v7  ;;  %v7283_v53 = vadd.f32 %v8209_v27, %v8142_v24 }
0x11bb   : > { %7289 = vst [vmem:[%s11867_s28 + $0x18] sm:$0xff] %v7283_v53 }
0x11bc PF: > { %s11868_s30 = sld [smem:[#allocation25_spill]]  ;;  %s11869_s0 = sld [smem:[#allocation24_spill]] }
0x11bd   : > { %s11870_s8 = sld [smem:[#allocation26_spill]]  ;;  %s11871_s7 = smov %s9746_s4 }
0x11c2   : > { %p38_p2 = scmp.ge.s32.totalorder %s11868_s30, 4   ;;  %s11872_s4 = smov %s11869_s0 }
0x11c4   :  { %40 = sbr.rel (!%p38_p2) target bundleno = 32 (0x20), region = 246 }
0x11cb   :  { %7301 = vsyncpa [#allocation5], 1 }
0x11cc   :  { %7303 = vsyncpa [#allocation5 + $0x1], 1 }
0x11cd   :  { %7304 = vsyncpa [#allocation7], 1 }
0x11ce   :  { %7305 = vsyncpa [#allocation14], 1 }
0x11cf   :  { %7306 = vsyncpa [#allocation17], 1 }

</bundles_post_ra>
